<compile_context>
chip_gen: v7x
topology: tpu7x:2x2x1
jax: 0.10.0
libtpu: 0.0.40
codegen_flags: <defaults>
</compile_context>

<pallas_src>
import jax
import jax.numpy as jnp
from jax.experimental import pallas as pl
from jax.experimental.pallas import tpu as pltpu

EPS = 1e-5


# ----------------------------------------------------------------------------
# small helpers
# ----------------------------------------------------------------------------
def _pick_nb(n, per_image_bytes, budget=6 << 20):
    """Images per conv grid step: as many as fit a modest VMEM budget (must divide n)."""
    nb = int(max(1, min(n, budget // max(per_image_bytes, 1))))
    while n % nb:
        nb -= 1
    return nb


def _pick_rows(total_rows, lanes, budget_bytes=2 << 20):
    """Rows per elementwise tile: whole array if small, else the largest divisor that is a
    multiple of 8 and keeps one (rows, lanes) f32 tile under ~budget_bytes."""
    cap = max(8, budget_bytes // (lanes * 4))
    if total_rows <= cap:
        return total_rows
    best = 0
    t = 8
    while t <= cap:
        if total_rows % t == 0:
            best = t
        t += 8
    return best if best else total_rows  # TODO(synk): awkward M -> single full block


# ----------------------------------------------------------------------------
# Kernels
# ----------------------------------------------------------------------------
def _bn_stats_epilogue(acc, g_ref, be_ref, sc_ref, sh_ref, count):
    """Accumulate per-channel sum / sum-of-squares across the (sequential) batch grid axis in
    the resident scale/shift output refs; on the last step convert them in place to the
    BatchNorm affine pair (scale, shift)."""
    step = pl.program_id(0)

    @pl.when(step == 0)
    def _():
        sc_ref[...] = jnp.zeros_like(sc_ref)
        sh_ref[...] = jnp.zeros_like(sh_ref)

    sc_ref[...] += jnp.sum(acc, axis=0, keepdims=True)          # running sum
    sh_ref[...] += jnp.sum(acc * acc, axis=0, keepdims=True)    # running sum of squares

    @pl.when(step == pl.num_programs(0) - 1)
    def _():
        mean = sc_ref[...] / count
        var = jnp.maximum(sh_ref[...] / count - mean * mean, 0.0)   # biased var, clamped >= 0
        scale = g_ref[...] * jax.lax.rsqrt(var + EPS)
        sc_ref[...] = scale
        sh_ref[...] = be_ref[...] - mean * scale


def _make_conv3x3_s1_kernel(n_total, nb, h, w, c_in, c_out, fuse_input_bn):
    """3x3 conv, stride 1, padding 1, NB images per grid step.

    If `fuse_input_bn`, applies y = relu(x*scale_in + shift_in) to the zero-padded input tile
    first (fused BN+ReLU of the previous conv); the padded border is re-zeroed with an iota
    mask so the affine shift never leaks into the padding.

    The conv is a 9-tap accumulation of (NB*H*W, Cin) x (Cin, Cout) dots (no im2col concat).
    BN batch statistics are accumulated across the batch grid axis and converted to
    (scale, shift) in the last-step epilogue."""
    m_step = nb * h * w
    count = float(n_total * h * w)

    def kernel(*refs):
        if fuse_input_bn:
            (x_ref, si_ref, ti_ref, w_ref, b_ref, g_ref, be_ref,
             o_ref, sc_ref, sh_ref) = refs
        else:
            (x_ref, w_ref, b_ref, g_ref, be_ref,
             o_ref, sc_ref, sh_ref) = refs

        xv = x_ref[...]                                          # (NB, H+2, W+2, Cin)
        if fuse_input_bn:
            s_in = si_ref[...].reshape(1, 1, 1, c_in)
            t_in = ti_ref[...].reshape(1, 1, 1, c_in)
            xv = jnp.maximum(xv * s_in + t_in, 0.0)
            ri = jax.lax.broadcasted_iota(jnp.int32, xv.shape, 1)
            ci = jax.lax.broadcasted_iota(jnp.int32, xv.shape, 2)
            inside = (ri >= 1) & (ri <= h) & (ci >= 1) & (ci <= w)
            xv = jnp.where(inside, xv, 0.0)                      # keep zero padding exact

        wv = w_ref[...]                                          # (9*Cin, Cout)
        acc = jnp.zeros((m_step, c_out), jnp.float32)
        for kh in range(3):
            for kw in range(3):
                tap = kh * 3 + kw
                win = xv[:, kh:kh + h, kw:kw + w, :].reshape(m_step, c_in)
                acc = acc + jnp.dot(win, wv[tap * c_in:(tap + 1) * c_in, :],
                                    preferred_element_type=jnp.float32)
        acc = acc + b_ref[...]
        o_ref[...] = acc.reshape(nb, h, w, c_out)

        _bn_stats_epilogue(acc, g_ref, be_ref, sc_ref, sh_ref, count)

    return kernel


def _make_conv3x3_s2_kernel(n_total, nb, h_out, w_out, c_in, c_out):
    """3x3 conv, stride 2, padding 1.  The padded input was pre-split into its four (row, col)
    parity planes, so each tap reads a dense (unstrided) window of the matching plane."""
    m_step = nb * h_out * w_out
    count = float(n_total * h_out * w_out)

    def kernel(p00_ref, p01_ref, p10_ref, p11_ref, w_ref, b_ref, g_ref, be_ref,
               o_ref, sc_ref, sh_ref):
        planes = (p00_ref[...], p01_ref[...], p10_ref[...], p11_ref[...])
        wv = w_ref[...]
        acc = jnp.zeros((m_step, c_out), jnp.float32)
        for kh in range(3):
            for kw in range(3):
                tap = kh * 3 + kw
                p = planes[(kh % 2) * 2 + (kw % 2)]
                win = p[:, kh // 2:kh // 2 + h_out, kw // 2:kw // 2 + w_out, :]
                acc = acc + jnp.dot(win.reshape(m_step, c_in),
                                    wv[tap * c_in:(tap + 1) * c_in, :],
                                    preferred_element_type=jnp.float32)
        acc = acc + b_ref[...]
        o_ref[...] = acc.reshape(nb, h_out, w_out, c_out)

        _bn_stats_epilogue(acc, g_ref, be_ref, sc_ref, sh_ref, count)

    return kernel


def _affine_addres_relu_kernel(x_ref, r_ref, s_ref, t_ref, o_ref):
    o_ref[...] = jnp.maximum(x_ref[...] * s_ref[...] + t_ref[...] + r_ref[...], 0.0)


def _make_affine_projres_relu_kernel(c_in):
    def kernel(x_ref, xs_ref, wr_ref, br_ref, s_ref, t_ref, o_ref):
        acc = x_ref[...] * s_ref[...] + t_ref[...] + br_ref[...]
        xs = xs_ref[...]
        wr = wr_ref[...]
        # 1x1 stride-2 projection residual as Cin broadcast FMAs (tiny K -> VPU, not MXU).
        for ci in range(c_in):
            acc = acc + xs[:, ci:ci + 1] * wr[ci:ci + 1, :]
        o_ref[...] = jnp.maximum(acc, 0.0)
    return kernel


# ----------------------------------------------------------------------------
# Pallas wrappers
# ----------------------------------------------------------------------------
def conv3x3_bn_s1(x_nhwc, w9, b, gamma, beta, in_scale=None, in_shift=None):
    """Stride-1 3x3 conv + fused BN batch statistics (optionally with a fused input BN+ReLU).
    Returns (conv_out (N,H,W,Cout), bn_scale (1,Cout), bn_shift (1,Cout))."""
    n, h, w, c_in = x_nhwc.shape
    c_out = w9.shape[-1]
    fuse = in_scale is not None

    # TODO(synk): zero-padding is still a wrapper-side XLA op; folding it into the kernel
    #             (zeroed VMEM scratch) would remove one HBM pass over the input.
    xpad = jnp.pad(x_nhwc, ((0, 0), (1, 1), (1, 1), (0, 0)))

    per_img = 4 * ((h + 2) * (w + 2) * c_in * 3 + h * w * (2 * c_out + c_in))
    nb = _pick_nb(n, per_img)
    steps = n // nb

    kernel = _make_conv3x3_s1_kernel(n, nb, h, w, c_in, c_out, fuse)

    vec_in = pl.BlockSpec((1, c_in), lambda i: (0, 0))
    vec_out = pl.BlockSpec((1, c_out), lambda i: (0, 0))

    args = [xpad]
    in_specs = [pl.BlockSpec((nb, h + 2, w + 2, c_in), lambda i: (i, 0, 0, 0))]
    if fuse:
        args += [in_scale, in_shift]
        in_specs += [vec_in, vec_in]
    args += [w9, b, gamma, beta]
    in_specs += [pl.BlockSpec((9 * c_in, c_out), lambda i: (0, 0)),
                 vec_out, vec_out, vec_out]
    assert len(args) == len(in_specs)

    out_shape = (jax.ShapeDtypeStruct((n, h, w, c_out), jnp.float32),
                 jax.ShapeDtypeStruct((1, c_out), jnp.float32),
                 jax.ShapeDtypeStruct((1, c_out), jnp.float32))
    out_specs = (pl.BlockSpec((nb, h, w, c_out), lambda i: (i, 0, 0, 0)),
                 vec_out, vec_out)

    return pl.pallas_call(
        kernel,
        out_shape=out_shape,
        grid=(steps,),
        in_specs=in_specs,
        out_specs=out_specs,
        compiler_params=pltpu.CompilerParams(
            # BN statistics accumulate in the resident scale/shift outputs -> sequential axis.
            # TODO(synk): emit per-step partial sums instead so v7x can split this axis
            #             across its two TensorCores.
            dimension_semantics=("arbitrary",)),
    )(*args)


def conv3x3_bn_s2(x_nhwc, w9, b, gamma, beta):
    """Stride-2 3x3 conv (padding 1) + fused BN batch statistics.
    Returns (conv_out (N,H/2,W/2,Cout), bn_scale (1,Cout), bn_shift (1,Cout))."""
    n, h, w, c_in = x_nhwc.shape
    assert h % 2 == 0 and w % 2 == 0, "stride-2 path assumes even H, W"
    c_out = w9.shape[-1]
    h_out, w_out = h // 2, w // 2

    xpad = jnp.pad(x_nhwc, ((0, 0), (1, 1), (1, 1), (0, 0)))
    # Fold stride 2 into the conv: split the padded input into its four (row, col) parity
    # planes so the kernel only reads the quarter of pixels it actually uses.
    planes = tuple(xpad[:, i::2, j::2, :] for i in range(2) for j in range(2))
    ph, pw = planes[0].shape[1], planes[0].shape[2]

    per_img = 4 * (4 * ph * pw * c_in + h_out * w_out * (2 * c_out + c_in))
    nb = _pick_nb(n, per_img)
    steps = n // nb

    kernel = _make_conv3x3_s2_kernel(n, nb, h_out, w_out, c_in, c_out)

    vec_out = pl.BlockSpec((1, c_out), lambda i: (0, 0))
    plane_spec = pl.BlockSpec((nb, ph, pw, c_in), lambda i: (i, 0, 0, 0))
    in_specs = [plane_spec] * 4 + [pl.BlockSpec((9 * c_in, c_out), lambda i: (0, 0)),
                                   vec_out, vec_out, vec_out]
    args = list(planes) + [w9, b, gamma, beta]
    assert len(args) == len(in_specs)

    out_shape = (jax.ShapeDtypeStruct((n, h_out, w_out, c_out), jnp.float32),
                 jax.ShapeDtypeStruct((1, c_out), jnp.float32),
                 jax.ShapeDtypeStruct((1, c_out), jnp.float32))
    out_specs = (pl.BlockSpec((nb, h_out, w_out, c_out), lambda i: (i, 0, 0, 0)),
                 vec_out, vec_out)

    return pl.pallas_call(
        kernel,
        out_shape=out_shape,
        grid=(steps,),
        in_specs=in_specs,
        out_specs=out_specs,
        compiler_params=pltpu.CompilerParams(dimension_semantics=("arbitrary",)),
    )(*args)


def affine_addres_relu(x_flat, res_flat, scale, shift):
    """y = relu(x*scale + shift + res); runs lane-dense on a (M*C/128, 128) view when C | 128."""
    m, c = x_flat.shape
    if (m * c) % 128 == 0 and 128 % c == 0:
        rows, lanes, rep = (m * c) // 128, 128, 128 // c
        x2, r2 = x_flat.reshape(rows, lanes), res_flat.reshape(rows, lanes)
        s2, t2 = jnp.tile(scale, (1, rep)), jnp.tile(shift, (1, rep))
    else:
        rows, lanes = m, c
        x2, r2, s2, t2 = x_flat, res_flat, scale, shift

    tr = _pick_rows(rows, lanes)
    tile = pl.BlockSpec((tr, lanes), lambda i: (i, 0))
    vec = pl.BlockSpec((1, lanes), lambda i: (0, 0))
    out = pl.pallas_call(
        _affine_addres_relu_kernel,
        out_shape=jax.ShapeDtypeStruct((rows, lanes), jnp.float32),
        grid=(rows // tr,),
        in_specs=[tile, tile, vec, vec],
        out_specs=tile,
        compiler_params=pltpu.CompilerParams(dimension_semantics=("parallel",)),
    )(x2, r2, s2, t2)
    return out.reshape(m, c)


def affine_projres_relu(x_flat, xs_flat, wr, br, scale, shift):
    """y = relu(x*scale + shift + (xs @ wr + br)) -- projection residual via VPU FMAs."""
    m, c_out = x_flat.shape
    c_in = xs_flat.shape[-1]
    tm = _pick_rows(m, c_out)
    tile_o = pl.BlockSpec((tm, c_out), lambda i: (i, 0))
    tile_s = pl.BlockSpec((tm, c_in), lambda i: (i, 0))
    vec = pl.BlockSpec((1, c_out), lambda i: (0, 0))
    in_specs = [tile_o, tile_s,
                pl.BlockSpec((c_in, c_out), lambda i: (0, 0)),
                vec, vec, vec]
    args = [x_flat, xs_flat, wr, br, scale, shift]
    assert len(args) == len(in_specs)        # (this was the bug in the previous revision)
    return pl.pallas_call(
        _make_affine_projres_relu_kernel(c_in),
        out_shape=jax.ShapeDtypeStruct((m, c_out), jnp.float32),
        grid=(m // tm,),
        in_specs=in_specs,
        out_specs=tile_o,
        compiler_params=pltpu.CompilerParams(dimension_semantics=("parallel",)),
    )(*args)


# ----------------------------------------------------------------------------
# ResBlock forward (Pallas) and parameter init
# ----------------------------------------------------------------------------
def init_resblock_params(key, cin, cout):
    ks = jax.random.split(key, 6)
    p = {
        "w1": jax.random.normal(ks[0], (cout, cin, 3, 3), jnp.float32) * 0.1,   # OIHW
        "b1": jax.random.normal(ks[1], (cout,), jnp.float32) * 0.1,
        "g1": jnp.ones((cout,), jnp.float32),
        "be1": jnp.zeros((cout,), jnp.float32),
        "w2": jax.random.normal(ks[2], (cout, cout, 3, 3), jnp.float32) * 0.1,
        "b2": jax.random.normal(ks[3], (cout,), jnp.float32) * 0.1,
        "g2": jnp.ones((cout,), jnp.float32),
        "be2": jnp.zeros((cout,), jnp.float32),
    }
    if cin != cout:
        p["wr"] = jax.random.normal(ks[4], (cout, cin, 1, 1), jnp.float32) * 0.1
        p["br"] = jax.random.normal(ks[5], (cout,), jnp.float32) * 0.1
    return p


def res_block_forward(x_nchw, params, cin, cout):
    stride = 1 if cin == cout else 2
    # TODO(synk): the NCHW<->NHWC transposes are kept at the module boundary (PyTorch layout);
    #             in a full network they would be hoisted to run once per network.
    x = jnp.transpose(x_nchw, (0, 2, 3, 1)).astype(jnp.float32)          # NCHW -> NHWC
    n = x.shape[0]

    w1 = jnp.transpose(params["w1"], (2, 3, 1, 0)).reshape(9 * cin, cout)
    b1 = params["b1"].reshape(1, -1)
    g1, be1 = params["g1"].reshape(1, -1), params["be1"].reshape(1, -1)

    # block1 conv: 3x3 (stride s) + BN1 batch statistics -> (scale1, shift1) in the epilogue.
    if stride == 1:
        o1, sc1, sh1 = conv3x3_bn_s1(x, w1, b1, g1, be1)
    else:
        o1, sc1, sh1 = conv3x3_bn_s2(x, w1, b1, g1, be1)
    n1, h1, w1_, _ = o1.shape

    # block2 conv: BN1+ReLU fused into the prologue, 3x3 stride-1 conv, BN2 statistics.
    w2 = jnp.transpose(params["w2"], (2, 3, 1, 0)).reshape(9 * cout, cout)
    o2, sc2, sh2 = conv3x3_bn_s1(
        o1, w2, params["b2"].reshape(1, -1),
        params["g2"].reshape(1, -1), params["be2"].reshape(1, -1),
        in_scale=sc1, in_shift=sh1)

    m = n1 * h1 * w1_
    o2_flat = o2.reshape(m, cout)
    if cin == cout:
        out_flat = affine_addres_relu(o2_flat, x.reshape(m, cin), sc2, sh2)
    else:
        xs = x[:, ::2, ::2, :].reshape(m, cin)
        wr = params["wr"][:, :, 0, 0].T                                   # (Cin, Cout)
        out_flat = affine_projres_relu(o2_flat, xs, wr,
                                       params["br"].reshape(1, -1), sc2, sh2)

    out = out_flat.reshape(n1, h1, w1_, cout)
    return jnp.transpose(out, (0, 3, 1, 2))                               # NHWC -> NCHW


# ----------------------------------------------------------------------------
# Pure-JAX reference (mirrors the PyTorch forward in training mode)
# ----------------------------------------------------------------------------
def ref_res_block(x, params, cin, cout):
    stride = 1 if cin == cout else 2

    def conv(x, w, b, s, p):
        y = jax.lax.conv_general_dilated(
            x, w, (s, s), [(p, p), (p, p)],
            dimension_numbers=("NCHW", "OIHW", "NCHW"))
        return y + b.reshape(1, -1, 1, 1)

    def bn(x, g, be):
        mean = jnp.mean(x, axis=(0, 2, 3), keepdims=True)
        var = jnp.mean((x - mean) ** 2, axis=(0, 2, 3), keepdims=True)
        return (x - mean) * jax.lax.rsqrt(var + EPS) * g.reshape(1, -1, 1, 1) \
               + be.reshape(1, -1, 1, 1)

    o = jax.nn.relu(bn(conv(x, params["w1"], params["b1"], stride, 1),
                       params["g1"], params["be1"]))
    o = bn(conv(o, params["w2"], params["b2"], 1, 1), params["g2"], params["be2"])
    res = conv(x, params["wr"], params["br"], stride, 0) if cin != cout else x
    return jax.nn.relu(o + res)


# ----------------------------------------------------------------------------
if __name__ == "__main__":
    key = jax.random.PRNGKey(0)
    kx, kp1, kp2 = jax.random.split(key, 3)
    x = jax.random.normal(kx, (2, 4, 16, 16), jnp.float32)   # NCHW, like PyTorch

    # Case 1: in_channels == out_channels  (stride 1, identity residual)
    p_same = init_resblock_params(kp1, 4, 4)
    y_same = jax.block_until_ready(res_block_forward(x, p_same, 4, 4))
    r_same = ref_res_block(x, p_same, 4, 4)
    assert y_same.shape == (2, 4, 16, 16)
    assert jnp.allclose(y_same, r_same, atol=1e-3, rtol=1e-3)

    # Case 2: in_channels != out_channels  (stride 2, 1x1-conv residual)
    p_down = init_resblock_params(kp2, 4, 8)
    y_down = jax.block_until_ready(res_block_forward(x, p_down, 4, 8))
    r_down = ref_res_block(x, p_down, 4, 8)
    assert y_down.shape == (2, 8, 8, 8)
    assert jnp.allclose(y_down, r_down, atol=1e-3, rtol=1e-3)

    print("KERNEL_OK")
</pallas_src>

<mosaic_0001>
module attributes {stable_mosaic.version = 11 : i64} {
  func.func @kernel(%arg0: i32, %arg1: memref<2x18x18x4xf32, #tpu.memory_space<vmem>>, %arg2: memref<36x4xf32, #tpu.memory_space<vmem>>, %arg3: memref<1x4xf32, #tpu.memory_space<vmem>>, %arg4: memref<1x4xf32, #tpu.memory_space<vmem>>, %arg5: memref<1x4xf32, #tpu.memory_space<vmem>>, %arg6: memref<2x16x16x4xf32, #tpu.memory_space<vmem>>, %arg7: memref<1x4xf32, #tpu.memory_space<vmem>>, %arg8: memref<1x4xf32, #tpu.memory_space<vmem>>) attributes {dimension_semantics = [#tpu.dimension_semantics<arbitrary>], iteration_bounds = array<i64: 1>, scalar_prefetch = 0 : i64, scratch_operands = 0 : i64, tpu.core_type = #tpu.core_type<tc>, window_params = [{transform_indices = @transform_0, window_bounds = array<i64: 2, 18, 18, 4>}, {pipeline_mode = #tpu.pipeline_mode<synchronous>, transform_indices = @transform_1, window_bounds = array<i64: 36, 4>}, {pipeline_mode = #tpu.pipeline_mode<synchronous>, transform_indices = @transform_2, window_bounds = array<i64: 1, 4>}, {pipeline_mode = #tpu.pipeline_mode<synchronous>, transform_indices = @transform_3, window_bounds = array<i64: 1, 4>}, {pipeline_mode = #tpu.pipeline_mode<synchronous>, transform_indices = @transform_4, window_bounds = array<i64: 1, 4>}, {transform_indices = @transform_5, window_bounds = array<i64: 2, 16, 16, 4>}, {pipeline_mode = #tpu.pipeline_mode<synchronous>, transform_indices = @transform_6, window_bounds = array<i64: 1, 4>}, {pipeline_mode = #tpu.pipeline_mode<synchronous>, transform_indices = @transform_7, window_bounds = array<i64: 1, 4>}]} {
    %c0 = arith.constant 0 : index
    %c0_0 = arith.constant 0 : index
    %c0_1 = arith.constant 0 : index
    %c0_2 = arith.constant 0 : index
    %0 = vector.load %arg1[%c0, %c0_0, %c0_1, %c0_2] : memref<2x18x18x4xf32, #tpu.memory_space<vmem>>, vector<2x18x18x4xf32>
    %c0_3 = arith.constant 0 : index
    %c0_4 = arith.constant 0 : index
    %1 = vector.load %arg2[%c0_3, %c0_4] : memref<36x4xf32, #tpu.memory_space<vmem>>, vector<36x4xf32>
    %cst = arith.constant 0.000000e+00 : f32
    %2 = vector.broadcast %cst : f32 to vector<512x4xf32>
    %3 = vector.extract_strided_slice %0 {offsets = [0, 0, 0, 0], sizes = [2, 16, 16, 4], strides = [1, 1, 1, 1]} : vector<2x18x18x4xf32> to vector<2x16x16x4xf32>
    %4 = vector.shape_cast %3 : vector<2x16x16x4xf32> to vector<512x4xf32>
    %5 = vector.extract_strided_slice %1 {offsets = [0, 0], sizes = [4, 4], strides = [1, 1]} : vector<36x4xf32> to vector<4x4xf32>
    %cst_5 = arith.constant dense<0.000000e+00> : vector<512x4xf32>
    %6 = tpu.matmul %4, %5, %cst_5 {dimension_numbers = #tpu.dot_dimension_numbers<[1], [0], [0], [1], [0, 0, 1, 1], [], []>} : vector<512x4xf32>, vector<4x4xf32>, vector<512x4xf32> -> vector<512x4xf32>
    %7 = arith.addf %2, %6 : vector<512x4xf32>
    %8 = vector.extract_strided_slice %0 {offsets = [0, 0, 1, 0], sizes = [2, 16, 16, 4], strides = [1, 1, 1, 1]} : vector<2x18x18x4xf32> to vector<2x16x16x4xf32>
    %9 = vector.shape_cast %8 : vector<2x16x16x4xf32> to vector<512x4xf32>
    %10 = vector.extract_strided_slice %1 {offsets = [4, 0], sizes = [4, 4], strides = [1, 1]} : vector<36x4xf32> to vector<4x4xf32>
    %cst_6 = arith.constant dense<0.000000e+00> : vector<512x4xf32>
    %11 = tpu.matmul %9, %10, %cst_6 {dimension_numbers = #tpu.dot_dimension_numbers<[1], [0], [0], [1], [0, 0, 1, 1], [], []>} : vector<512x4xf32>, vector<4x4xf32>, vector<512x4xf32> -> vector<512x4xf32>
    %12 = arith.addf %7, %11 : vector<512x4xf32>
    %13 = vector.extract_strided_slice %0 {offsets = [0, 0, 2, 0], sizes = [2, 16, 16, 4], strides = [1, 1, 1, 1]} : vector<2x18x18x4xf32> to vector<2x16x16x4xf32>
    %14 = vector.shape_cast %13 : vector<2x16x16x4xf32> to vector<512x4xf32>
    %15 = vector.extract_strided_slice %1 {offsets = [8, 0], sizes = [4, 4], strides = [1, 1]} : vector<36x4xf32> to vector<4x4xf32>
    %cst_7 = arith.constant dense<0.000000e+00> : vector<512x4xf32>
    %16 = tpu.matmul %14, %15, %cst_7 {dimension_numbers = #tpu.dot_dimension_numbers<[1], [0], [0], [1], [0, 0, 1, 1], [], []>} : vector<512x4xf32>, vector<4x4xf32>, vector<512x4xf32> -> vector<512x4xf32>
    %17 = arith.addf %12, %16 : vector<512x4xf32>
    %18 = vector.extract_strided_slice %0 {offsets = [0, 1, 0, 0], sizes = [2, 16, 16, 4], strides = [1, 1, 1, 1]} : vector<2x18x18x4xf32> to vector<2x16x16x4xf32>
    %19 = vector.shape_cast %18 : vector<2x16x16x4xf32> to vector<512x4xf32>
    %20 = vector.extract_strided_slice %1 {offsets = [12, 0], sizes = [4, 4], strides = [1, 1]} : vector<36x4xf32> to vector<4x4xf32>
    %cst_8 = arith.constant dense<0.000000e+00> : vector<512x4xf32>
    %21 = tpu.matmul %19, %20, %cst_8 {dimension_numbers = #tpu.dot_dimension_numbers<[1], [0], [0], [1], [0, 0, 1, 1], [], []>} : vector<512x4xf32>, vector<4x4xf32>, vector<512x4xf32> -> vector<512x4xf32>
    %22 = arith.addf %17, %21 : vector<512x4xf32>
    %23 = vector.extract_strided_slice %0 {offsets = [0, 1, 1, 0], sizes = [2, 16, 16, 4], strides = [1, 1, 1, 1]} : vector<2x18x18x4xf32> to vector<2x16x16x4xf32>
    %24 = vector.shape_cast %23 : vector<2x16x16x4xf32> to vector<512x4xf32>
    %25 = vector.extract_strided_slice %1 {offsets = [16, 0], sizes = [4, 4], strides = [1, 1]} : vector<36x4xf32> to vector<4x4xf32>
    %cst_9 = arith.constant dense<0.000000e+00> : vector<512x4xf32>
    %26 = tpu.matmul %24, %25, %cst_9 {dimension_numbers = #tpu.dot_dimension_numbers<[1], [0], [0], [1], [0, 0, 1, 1], [], []>} : vector<512x4xf32>, vector<4x4xf32>, vector<512x4xf32> -> vector<512x4xf32>
    %27 = arith.addf %22, %26 : vector<512x4xf32>
    %28 = vector.extract_strided_slice %0 {offsets = [0, 1, 2, 0], sizes = [2, 16, 16, 4], strides = [1, 1, 1, 1]} : vector<2x18x18x4xf32> to vector<2x16x16x4xf32>
    %29 = vector.shape_cast %28 : vector<2x16x16x4xf32> to vector<512x4xf32>
    %30 = vector.extract_strided_slice %1 {offsets = [20, 0], sizes = [4, 4], strides = [1, 1]} : vector<36x4xf32> to vector<4x4xf32>
    %cst_10 = arith.constant dense<0.000000e+00> : vector<512x4xf32>
    %31 = tpu.matmul %29, %30, %cst_10 {dimension_numbers = #tpu.dot_dimension_numbers<[1], [0], [0], [1], [0, 0, 1, 1], [], []>} : vector<512x4xf32>, vector<4x4xf32>, vector<512x4xf32> -> vector<512x4xf32>
    %32 = arith.addf %27, %31 : vector<512x4xf32>
    %33 = vector.extract_strided_slice %0 {offsets = [0, 2, 0, 0], sizes = [2, 16, 16, 4], strides = [1, 1, 1, 1]} : vector<2x18x18x4xf32> to vector<2x16x16x4xf32>
    %34 = vector.shape_cast %33 : vector<2x16x16x4xf32> to vector<512x4xf32>
    %35 = vector.extract_strided_slice %1 {offsets = [24, 0], sizes = [4, 4], strides = [1, 1]} : vector<36x4xf32> to vector<4x4xf32>
    %cst_11 = arith.constant dense<0.000000e+00> : vector<512x4xf32>
    %36 = tpu.matmul %34, %35, %cst_11 {dimension_numbers = #tpu.dot_dimension_numbers<[1], [0], [0], [1], [0, 0, 1, 1], [], []>} : vector<512x4xf32>, vector<4x4xf32>, vector<512x4xf32> -> vector<512x4xf32>
    %37 = arith.addf %32, %36 : vector<512x4xf32>
    %38 = vector.extract_strided_slice %0 {offsets = [0, 2, 1, 0], sizes = [2, 16, 16, 4], strides = [1, 1, 1, 1]} : vector<2x18x18x4xf32> to vector<2x16x16x4xf32>
    %39 = vector.shape_cast %38 : vector<2x16x16x4xf32> to vector<512x4xf32>
    %40 = vector.extract_strided_slice %1 {offsets = [28, 0], sizes = [4, 4], strides = [1, 1]} : vector<36x4xf32> to vector<4x4xf32>
    %cst_12 = arith.constant dense<0.000000e+00> : vector<512x4xf32>
    %41 = tpu.matmul %39, %40, %cst_12 {dimension_numbers = #tpu.dot_dimension_numbers<[1], [0], [0], [1], [0, 0, 1, 1], [], []>} : vector<512x4xf32>, vector<4x4xf32>, vector<512x4xf32> -> vector<512x4xf32>
    %42 = arith.addf %37, %41 : vector<512x4xf32>
    %43 = vector.extract_strided_slice %0 {offsets = [0, 2, 2, 0], sizes = [2, 16, 16, 4], strides = [1, 1, 1, 1]} : vector<2x18x18x4xf32> to vector<2x16x16x4xf32>
    %44 = vector.shape_cast %43 : vector<2x16x16x4xf32> to vector<512x4xf32>
    %45 = vector.extract_strided_slice %1 {offsets = [32, 0], sizes = [4, 4], strides = [1, 1]} : vector<36x4xf32> to vector<4x4xf32>
    %cst_13 = arith.constant dense<0.000000e+00> : vector<512x4xf32>
    %46 = tpu.matmul %44, %45, %cst_13 {dimension_numbers = #tpu.dot_dimension_numbers<[1], [0], [0], [1], [0, 0, 1, 1], [], []>} : vector<512x4xf32>, vector<4x4xf32>, vector<512x4xf32> -> vector<512x4xf32>
    %47 = arith.addf %42, %46 : vector<512x4xf32>
    %c0_14 = arith.constant 0 : index
    %c0_15 = arith.constant 0 : index
    %48 = vector.load %arg3[%c0_14, %c0_15] : memref<1x4xf32, #tpu.memory_space<vmem>>, vector<1x4xf32>
    %49 = vector.broadcast %48 : vector<1x4xf32> to vector<512x4xf32>
    %50 = arith.addf %47, %49 : vector<512x4xf32>
    %51 = vector.shape_cast %50 : vector<512x4xf32> to vector<2x16x16x4xf32>
    %c0_16 = arith.constant 0 : index
    %c0_17 = arith.constant 0 : index
    %c0_18 = arith.constant 0 : index
    %c0_19 = arith.constant 0 : index
    %52 = vector.load %arg6[%c0_16, %c0_17, %c0_18, %c0_19] : memref<2x16x16x4xf32, #tpu.memory_space<vmem>>, vector<2x16x16x4xf32>
    tpu.vector_store %arg6[%c0_16, %c0_17, %c0_18, %c0_19], %51 {strides = array<i32>} : memref<2x16x16x4xf32, #tpu.memory_space<vmem>>, vector<2x16x16x4xf32>,
    %c0_i32 = arith.constant 0 : i32
    %53 = arith.cmpi eq, %arg0, %c0_i32 : i32
    %54 = arith.extui %53 : i1 to i32
    %c0_i32_20 = arith.constant 0 : i32
    %55 = arith.cmpi ne, %54, %c0_i32_20 : i32
    scf.if %55 {
      %cst_33 = arith.constant 0.000000e+00 : f32
      %70 = vector.broadcast %cst_33 : f32 to vector<1x4xf32>
      %c0_34 = arith.constant 0 : index
      %c0_35 = arith.constant 0 : index
      %71 = vector.load %arg7[%c0_34, %c0_35] : memref<1x4xf32, #tpu.memory_space<vmem>>, vector<1x4xf32>
      tpu.vector_store %arg7[%c0_34, %c0_35], %70 {strides = array<i32>} : memref<1x4xf32, #tpu.memory_space<vmem>>, vector<1x4xf32>,
      %cst_36 = arith.constant 0.000000e+00 : f32
      %72 = vector.broadcast %cst_36 : f32 to vector<1x4xf32>
      %c0_37 = arith.constant 0 : index
      %c0_38 = arith.constant 0 : index
      %73 = vector.load %arg8[%c0_37, %c0_38] : memref<1x4xf32, #tpu.memory_space<vmem>>, vector<1x4xf32>
      tpu.vector_store %arg8[%c0_37, %c0_38], %72 {strides = array<i32>} : memref<1x4xf32, #tpu.memory_space<vmem>>, vector<1x4xf32>,
    } else {
    }
    %c0_21 = arith.constant 0 : index
    %c0_22 = arith.constant 0 : index
    %56 = vector.load %arg7[%c0_21, %c0_22] : memref<1x4xf32, #tpu.memory_space<vmem>>, vector<1x4xf32>
    %cst_23 = arith.constant dense<0.000000e+00> : vector<4xf32>
    %57 = vector.multi_reduction <add>, %50, %cst_23 [0] : vector<512x4xf32> to vector<4xf32>
    %58 = vector.shape_cast %57 : vector<4xf32> to vector<1x4xf32>
    %59 = arith.addf %56, %58 : vector<1x4xf32>
    %c0_24 = arith.constant 0 : index
    %c0_25 = arith.constant 0 : index
    %60 = vector.load %arg7[%c0_24, %c0_25] : memref<1x4xf32, #tpu.memory_space<vmem>>, vector<1x4xf32>
    tpu.vector_store %arg7[%c0_24, %c0_25], %59 {strides = array<i32>} : memref<1x4xf32, #tpu.memory_space<vmem>>, vector<1x4xf32>,
    %c0_26 = arith.constant 0 : index
    %c0_27 = arith.constant 0 : index
    %61 = vector.load %arg8[%c0_26, %c0_27] : memref<1x4xf32, #tpu.memory_space<vmem>>, vector<1x4xf32>
    %62 = arith.mulf %50, %50 : vector<512x4xf32>
    %cst_28 = arith.constant dense<0.000000e+00> : vector<4xf32>
    %63 = vector.multi_reduction <add>, %62, %cst_28 [0] : vector<512x4xf32> to vector<4xf32>
    %64 = vector.shape_cast %63 : vector<4xf32> to vector<1x4xf32>
    %65 = arith.addf %61, %64 : vector<1x4xf32>
    %c0_29 = arith.constant 0 : index
    %c0_30 = arith.constant 0 : index
    %66 = vector.load %arg8[%c0_29, %c0_30] : memref<1x4xf32, #tpu.memory_space<vmem>>, vector<1x4xf32>
    tpu.vector_store %arg8[%c0_29, %c0_30], %65 {strides = array<i32>} : memref<1x4xf32, #tpu.memory_space<vmem>>, vector<1x4xf32>,
    %c0_i32_31 = arith.constant 0 : i32
    %67 = arith.cmpi eq, %arg0, %c0_i32_31 : i32
    %68 = arith.extui %67 : i1 to i32
    %c0_i32_32 = arith.constant 0 : i32
    %69 = arith.cmpi ne, %68, %c0_i32_32 : i32
    scf.if %69 {
      %c0_33 = arith.constant 0 : index
      %c0_34 = arith.constant 0 : index
      %70 = vector.load %arg7[%c0_33, %c0_34] : memref<1x4xf32, #tpu.memory_space<vmem>>, vector<1x4xf32>
      %cst_35 = arith.constant 5.120000e+02 : f32
      %71 = vector.broadcast %cst_35 : f32 to vector<1x4xf32>
      %72 = arith.divf %70, %71 : vector<1x4xf32>
      %c0_36 = arith.constant 0 : index
      %c0_37 = arith.constant 0 : index
      %73 = vector.load %arg8[%c0_36, %c0_37] : memref<1x4xf32, #tpu.memory_space<vmem>>, vector<1x4xf32>
      %cst_38 = arith.constant 5.120000e+02 : f32
      %74 = vector.broadcast %cst_38 : f32 to vector<1x4xf32>
      %75 = arith.divf %73, %74 : vector<1x4xf32>
      %76 = arith.mulf %72, %72 : vector<1x4xf32>
      %77 = arith.subf %75, %76 : vector<1x4xf32>
      %cst_39 = arith.constant 0.000000e+00 : f32
      %78 = vector.broadcast %cst_39 : f32 to vector<1x4xf32>
      %79 = arith.maximumf %77, %78 : vector<1x4xf32>
      %c0_40 = arith.constant 0 : index
      %c0_41 = arith.constant 0 : index
      %80 = vector.load %arg4[%c0_40, %c0_41] : memref<1x4xf32, #tpu.memory_space<vmem>>, vector<1x4xf32>
      %cst_42 = arith.constant 9.99999974E-6 : f32
      %81 = vector.broadcast %cst_42 : f32 to vector<1x4xf32>
      %82 = arith.addf %79, %81 : vector<1x4xf32>
      %83 = math.rsqrt %82 : vector<1x4xf32>
      %84 = arith.mulf %80, %83 : vector<1x4xf32>
      %c0_43 = arith.constant 0 : index
      %c0_44 = arith.constant 0 : index
      %85 = vector.load %arg7[%c0_43, %c0_44] : memref<1x4xf32, #tpu.memory_space<vmem>>, vector<1x4xf32>
      tpu.vector_store %arg7[%c0_43, %c0_44], %84 {strides = array<i32>} : memref<1x4xf32, #tpu.memory_space<vmem>>, vector<1x4xf32>,
      %c0_45 = arith.constant 0 : index
      %c0_46 = arith.constant 0 : index
      %86 = vector.load %arg5[%c0_45, %c0_46] : memref<1x4xf32, #tpu.memory_space<vmem>>, vector<1x4xf32>
      %87 = arith.mulf %72, %84 : vector<1x4xf32>
      %88 = arith.subf %86, %87 : vector<1x4xf32>
      %c0_47 = arith.constant 0 : index
      %c0_48 = arith.constant 0 : index
      %89 = vector.load %arg8[%c0_47, %c0_48] : memref<1x4xf32, #tpu.memory_space<vmem>>, vector<1x4xf32>
      tpu.vector_store %arg8[%c0_47, %c0_48], %88 {strides = array<i32>} : memref<1x4xf32, #tpu.memory_space<vmem>>, vector<1x4xf32>,
    } else {
    }
    return
  }
  func.func @transform_0(%arg0: i32) -> (i32, i32, i32, i32) {
    %c0_i32 = arith.constant 0 : i32
    %c0_i32_0 = arith.constant 0 : i32
    %c0_i32_1 = arith.constant 0 : i32
    %c0_i32_2 = arith.constant 0 : i32
    return %arg0, %c0_i32, %c0_i32_0, %c0_i32_1 : i32, i32, i32, i32
  }
  func.func @transform_1(%arg0: i32) -> (i32, i32) {
    %c0_i32 = arith.constant 0 : i32
    %c0_i32_0 = arith.constant 0 : i32
    %c0_i32_1 = arith.constant 0 : i32
    return %c0_i32, %c0_i32_0 : i32, i32
  }
  func.func @transform_2(%arg0: i32) -> (i32, i32) {
    %c0_i32 = arith.constant 0 : i32
    %c0_i32_0 = arith.constant 0 : i32
    %c0_i32_1 = arith.constant 0 : i32
    return %c0_i32, %c0_i32_0 : i32, i32
  }
  func.func @transform_3(%arg0: i32) -> (i32, i32) {
    %c0_i32 = arith.constant 0 : i32
    %c0_i32_0 = arith.constant 0 : i32
    %c0_i32_1 = arith.constant 0 : i32
    return %c0_i32, %c0_i32_0 : i32, i32
  }
  func.func @transform_4(%arg0: i32) -> (i32, i32) {
    %c0_i32 = arith.constant 0 : i32
    %c0_i32_0 = arith.constant 0 : i32
    %c0_i32_1 = arith.constant 0 : i32
    return %c0_i32, %c0_i32_0 : i32, i32
  }
  func.func @transform_5(%arg0: i32) -> (i32, i32, i32, i32) {
    %c0_i32 = arith.constant 0 : i32
    %c0_i32_0 = arith.constant 0 : i32
    %c0_i32_1 = arith.constant 0 : i32
    %c0_i32_2 = arith.constant 0 : i32
    return %arg0, %c0_i32, %c0_i32_0, %c0_i32_1 : i32, i32, i32, i32
  }
  func.func @transform_6(%arg0: i32) -> (i32, i32) {
    %c0_i32 = arith.constant 0 : i32
    %c0_i32_0 = arith.constant 0 : i32
    %c0_i32_1 = arith.constant 0 : i32
    return %c0_i32, %c0_i32_0 : i32, i32
  }
  func.func @transform_7(%arg0: i32) -> (i32, i32) {
    %c0_i32 = arith.constant 0 : i32
    %c0_i32_0 = arith.constant 0 : i32
    %c0_i32_1 = arith.constant 0 : i32
    return %c0_i32, %c0_i32_0 : i32, i32
  }
}

</mosaic_0001>

<bundles_post_ra>
// kernel: tpu_custom_call.1
= control target key start
LH: loop header
LB: loop body
LE: loop exit
PB: predicated region body
PF: predicated region fallthrough
CT: control target
= control target key end

     0   :  { %13 = vsyncpa [#allocation3], 0  ;;  %vm526_vm0 = vcmask 1043456   ;;  %vm234_vm1 = vcmask 1046528   ;;  %vm397_vm2 = vcmask 31744   ;;  %s11383_s0 = inlined_call_operand.vmem [shape: f32[2,18,18,4], index: 0, kind: input, shape index: {}]   ;;  %s11384_s1 = inlined_call_operand.vmem [shape: f32[36,4], index: 1, kind: input, shape index: {}]   ;;  %s11385_s2 = inlined_call_operand.vmem [shape: f32[1,4], index: 2, kind: input, shape index: {}]   ;;  %s11386_s3 = inlined_call_operand.vmem [shape: f32[1,4], index: 3, kind: input, shape index: {}]   ;;  %s11387_s4 = inlined_call_operand.vmem [shape: f32[1,4], index: 4, kind: input, shape index: {}]   ;;  %s11388_s5 = inlined_call_operand.vmem [shape: f32[2,16,16,4], index: 5, kind: output, shape index: {0}]   ;;  %s11389_s6 = inlined_call_operand.hbm [shape: f32[1,4], index: 6, kind: output, shape index: {1}]   ;;  %s11390_s7 = inlined_call_operand.hbm [shape: f32[1,4], index: 7, kind: output, shape index: {2}]  }
   0x1   :  { %v133_v0 = vld [vmem:[%s11384_s1] sm:$0xff]  ;;  %v135_v1 = vld [vmem:[%s11384_s1 + $0x10] sm:$0xff]  ;;  %v8261_v4 = vld [vmem:[%s11383_s0 + $0x8] sm:$0xff] }
   0x2   :  { %v8255_v2 = vld [vmem:[%s11383_s0] sm:$0xff]  ;;  %v396_v3 = vrot.slane %v133_v0, 4  ;;  %7076 = vmatprep.subr.msk.mxu0 %vm526_vm0, %v135_v1  ;;  %11638 = vst [vmem:[#allocation9_spill] sm:$0xff] %v8261_v4  ;;  %v8267_v6 = vld [vmem:[%s11383_s0 + $0x18] sm:$0xff]  ;;  %v3116_v8 = vrot.slane %v135_v1, 4  ;;  %v236_v9 = vrot.slane %v8261_v4, 1 }
   0x3   :  { %11637 = vst [vmem:[#allocation8_spill] sm:$0xff] %v8255_v2  ;;  %v235_v5 = vrot.slane %v8255_v2, 1  ;;  %11639 = vst [vmem:[#allocation10_spill] sm:$0xff] %v8267_v6  ;;  %v8272_v7 = vld [vmem:[%s11383_s0 + $0x20] sm:$0xff]  ;;  %7077 = vmatpush3.msk.msra.mxu0 %vm526_vm0, %v135_v1  ;;  %v240_v10 = vrot.slane %v8267_v6, 1  ;;  %v8284_v13 = vld [vmem:[%s11383_s0 + $0x30] sm:$0xff] }
   0x4   :  { %11640 = vst [vmem:[#allocation11_spill] sm:$0xff] %v8272_v7  ;;  %v241_v11 = vrot.slane %v8272_v7, 1  ;;  %v27_v12 = vld [vmem:[%s11383_s0 + $0x10] sm:$0x3]  ;;  %11641 = vst [vmem:[#allocation12_spill] sm:$0xff] %v8284_v13  ;;  %6684 = vmatprep.subr.msk.mxu1 %vm526_vm0, %v396_v3  ;;  %7174 = vmatprep.subr.msk.mxu0 %vm526_vm0, %v3116_v8  ;;  %v8296_v16 = vld [vmem:[%s11383_s0 + $0x38] sm:$0xff] }
   0x5   :  { %v238_v14 = vrot.slane %v27_v12, 1  ;;  %v8290_v15 = vld [vmem:[%s11383_s0 + $0x28] sm:$0x3]  ;;  %11642 = vst [vmem:[#allocation13_spill] sm:$0xff] %v8296_v16  ;;  %v245_v17 = vrot.slane %v8284_v13, 1  ;;  %6685 = vmatpush3.msk.msra.mxu1 %vm526_vm0, %v396_v3  ;;  %v237_v18 = vsel %vm234_vm1, %v235_v5, %v236_v9  ;;  %v8316_v23 = vld [vmem:[%s11383_s0 + $0x50] sm:$0xff] }
   0x6   :  { %v242_v19 = vsel %vm234_vm1, %v240_v10, %v241_v11  ;;  %v243_v20 = vrot.slane %v8290_v15, 1  ;;  %v8306_v21 = vld [vmem:[%s11383_s0 + $0x40] sm:$0x3]  ;;  %v8311_v22 = vld [vmem:[%s11383_s0 + $0x48] sm:$0xff]  ;;  %11643 = vst [vmem:[#allocation14_spill] sm:$0xff] %v8316_v23  ;;  %6686 = vmatprep.mubr.msk.f32.mxu1 %vm397_vm2, %v237_v18  ;;  %v246_v25 = vrot.slane %v8296_v16, 1  ;;  %6782 = vmatprep.subr.msk.mxu1 %vm526_vm0, %v133_v0 }
   0x7   :  { %7078 = vmatprep.mubr.msk.f32.mxu0 %vm397_vm2, %v242_v19  ;;  %v239_v24 = vsel %vm234_vm1, %v236_v9, %v238_v14  ;;  %v248_v26 = vrot.slane %v8306_v21, 1  ;;  %v250_v27 = vrot.slane %v8311_v22, 1  ;;  %v8327_v28 = vld [vmem:[%s11383_s0 + $0x58] sm:$0x3]  ;;  %v251_v30 = vrot.slane %v8316_v23, 1  ;;  %v8336_v31 = vld [vmem:[%s11383_s0 + $0x60] sm:$0xff] }
   0x8   :  { %6687 = vmatmul.mubr.msk.f32.vlgmr.msra.gmra.mrb[0].mxu1 %vm397_vm2, %v239_v24  ;;  %v244_v29 = vsel %vm234_vm1, %v241_v11, %v243_v20  ;;  %11644 = vst [vmem:[#allocation15_spill] sm:$0xff] %v8336_v31  ;;  %v8341_v32 = vld [vmem:[%s11383_s0 + $0x68] sm:$0xff]  ;;  %v8346_v33 = vsel %vm234_vm1, %v245_v17, %v246_v25  ;;  %v253_v35 = vrot.slane %v8327_v28, 1  ;;  %v255_v37 = vrot.slane %v8336_v31, 1  ;;  %v8364_v39 = vld [vmem:[%s11383_s0 + $0x70] sm:$0x3] }
   0x9   :  { %11645 = vst [vmem:[#allocation16_spill] sm:$0xff] %v8341_v32  ;;  %7079 = vmatmul.mubr.msk.f32.vlgmr.msra.gmra.mrb[0].mxu0 %vm397_vm2, %v244_v29  ;;  %6783 = vmatpush3.msk.msra.mxu1 %vm526_vm0, %v133_v0  ;;  %11646 = vst [vmem:[#allocation17_spill] sm:$0xff] %v8346_v33  ;;  %v8351_v34 = vsel %vm234_vm1, %v246_v25, %v248_v26  ;;  %v8357_v36 = vsel %vm234_vm1, %v250_v27, %v251_v30  ;;  %v256_v38 = vrot.slane %v8341_v32, 1  ;;  %v8370_v40 = vld [vmem:[%s11383_s0 + $0x78] sm:$0xff]  ;;  %v8375_v41 = vld [vmem:[%s11383_s0 + $0x80] sm:$0xff] }
   0xa   :  { %7175 = vmatpush3.msk.msra.mxu0 %vm526_vm0, %v3116_v8  ;;  %6689 = vmatprep.mubr.msk.f32.mxu1 %vm397_vm2, %v242_v19  ;;  %11647 = vst [vmem:[#allocation18_spill] sm:$0xff] %v8351_v34  ;;  %11648 = vst [vmem:[#allocation19_spill] sm:$0xff] %v8357_v36  ;;  %v8384_v42 = vsel %vm234_vm1, %v251_v30, %v253_v35  ;;  %v258_v43 = vrot.slane %v8364_v39, 1  ;;  %v260_v45 = vrot.slane %v8370_v40, 1  ;;  %v261_v46 = vrot.slane %v8375_v41, 1  ;;  %v8402_v48 = vld [vmem:[%s11383_s0 + $0x90] sm:$0xff] }
   0xb   :  { %7081 = vmatprep.mubr.msk.f32.mxu0 %vm397_vm2, %v8346_v33  ;;  %11649 = vst [vmem:[#allocation20_spill] sm:$0xff] %v8375_v41  ;;  %11650 = vst [vmem:[#allocation21_spill] sm:$0xff] %v8384_v42  ;;  %v8388_v44 = vsel %vm234_vm1, %v255_v37, %v256_v38  ;;  %v8395_v47 = vld [vmem:[%s11383_s0 + $0x88] sm:$0x3]  ;;  %v8407_v49 = vld [vmem:[%s11383_s0 + $0x98] sm:$0xff]  ;;  %v265_v53 = vrot.slane %v8402_v48, 1 }
   0xc   :  { %6690 = vmatmul.mubr.msk.f32.gmra.mrb[2].mxu1 %vm397_vm2, %v244_v29  ;;  %11651 = vst [vmem:[#allocation22_spill] sm:$0xff] %v8388_v44  ;;  %11652 = vst [vmem:[#allocation23_spill] sm:$0xff] %v8402_v48  ;;  %v8416_v50 = vsel %vm234_vm1, %v256_v38, %v258_v43  ;;  %v263_v51 = vrot.slane %v8395_v47, 1  ;;  %v8420_v52 = vsel %vm234_vm1, %v260_v45, %v261_v46  ;;  %v266_v54 = vrot.slane %v8407_v49, 1  ;;  %v8427_v55 = vld [vmem:[%s11383_s0 + $0xa0] sm:$0x3] }
   0xd   :  { %7082 = vmatmul.mubr.msk.f32.gmra.mrb[2].mxu0 %vm397_vm2, %v8351_v34  ;;  %6692 = vmatprep.mubr.msk.f32.mxu1 %vm397_vm2, %v8346_v33  ;;  %11653 = vst [vmem:[#allocation24_spill] sm:$0xff] %v8407_v49  ;;  %11654 = vst [vmem:[#allocation25_spill] sm:$0xff] %v8416_v50  ;;  %v8434_v56 = vld [vmem:[%s11383_s0 + $0xa8] sm:$0xff]  ;;  %v8439_v57 = vld [vmem:[%s11383_s0 + $0xb0] sm:$0xff]  ;;  %v268_v59 = vrot.slane %v8427_v55, 1 }
   0xe   :  { %7084 = vmatprep.mubr.msk.f32.mxu0 %vm397_vm2, %v8357_v36  ;;  %11655 = vst [vmem:[#allocation26_spill] sm:$0xff] %v8420_v52  ;;  %11656 = vst [vmem:[#allocation27_spill] sm:$0xff] %v8434_v56  ;;  %v8448_v58 = vsel %vm234_vm1, %v261_v46, %v263_v51  ;;  %v8454_v60 = vld [vmem:[%s11384_s1 + $0x18] sm:$0xff]  ;;  %v8457_v61 = vsel %vm234_vm1, %v265_v53, %v266_v54  ;;  %v270_v62 = vrot.slane %v8434_v56, 1  ;;  %v271_v63 = vrot.slane %v8439_v57, 1  ;;  %v8473_v1 = vld [vmem:[%s11383_s0 + $0xc0] sm:$0xff] }
   0xf   :  { %11657 = vst [vmem:[#allocation28_spill] sm:$0xff] %v8439_v57  ;;  %11658 = vst [vmem:[#allocation29_spill] sm:$0xff] %v8448_v58  ;;  %v8464_v0 = vld [vmem:[%s11383_s0 + $0xb8] sm:$0x3]  ;;  %7272 = vmatprep.subr.msk.mxu0 %vm526_vm0, %v8454_v60  ;;  %v8478_v3 = vld [vmem:[%s11383_s0 + $0xc8] sm:$0xff]  ;;  %v8487_v5 = vsel %vm234_vm1, %v266_v54, %v268_v59  ;;  %v275_v10 = vrot.slane %v8473_v1, 1 }
  0x10   :  { %6693 = vmatmul.mubr.msk.f32.gmra.mrb[4].mxu1 %vm397_vm2, %v8351_v34  ;;  %11659 = vst [vmem:[#allocation30_spill] sm:$0xff] %v8454_v60  ;;  %11660 = vst [vmem:[#allocation31_spill] sm:$0xff] %v8457_v61  ;;  %v273_v8 = vrot.slane %v8464_v0, 1  ;;  %v8491_v9 = vsel %vm234_vm1, %v270_v62, %v271_v63  ;;  %v276_v11 = vrot.slane %v8478_v3, 1  ;;  %v8498_v12 = vld [vmem:[%s11383_s0 + $0xd0] sm:$0x3] }
  0x11   :  { %7085 = vmatmul.mubr.msk.f32.gmra.mrb[4].mxu0 %vm397_vm2, %v8384_v42  ;;  %6695 = vmatprep.mubr.msk.f32.mxu1 %vm397_vm2, %v8357_v36  ;;  %11661 = vst [vmem:[#allocation32_spill] sm:$0xff] %v8473_v1  ;;  %11662 = vst [vmem:[#allocation33_spill] sm:$0xff] %v8478_v3  ;;  %v8505_v14 = vld [vmem:[%s11383_s0 + $0xd8] sm:$0xff]  ;;  %v8510_v17 = vld [vmem:[%s11383_s0 + $0xe0] sm:$0xff]  ;;  %v278_v19 = vrot.slane %v8498_v12, 1 }
  0x12   :  { %7087 = vmatprep.mubr.msk.f32.mxu0 %vm397_vm2, %v8388_v44  ;;  %11663 = vst [vmem:[#allocation34_spill] sm:$0xff] %v8487_v5  ;;  %11664 = vst [vmem:[#allocation35_spill] sm:$0xff] %v8491_v9  ;;  %v8519_v18 = vsel %vm234_vm1, %v271_v63, %v273_v8  ;;  %v8523_v20 = vsel %vm234_vm1, %v275_v10, %v276_v11  ;;  %v280_v24 = vrot.slane %v8505_v14, 1  ;;  %v281_v25 = vrot.slane %v8510_v17, 1  ;;  %v8530_v26 = vld [vmem:[%s11383_s0 + $0xe8] sm:$0x3] }
  0x13   :  { %11665 = vst [vmem:[#allocation36_spill] sm:$0xff] %v8505_v14  ;;  %11666 = vst [vmem:[#allocation37_spill] sm:$0xff] %v8510_v17  ;;  %v8537_v27 = vld [vmem:[%s11383_s0 + $0xf0] sm:$0xff]  ;;  %v8542_v29 = vld [vmem:[%s11383_s0 + $0xf8] sm:$0xff]  ;;  %v8551_v30 = vsel %vm234_vm1, %v276_v11, %v278_v19  ;;  %v283_v35 = vrot.slane %v8530_v26, 1 }
  0x14   :  { %6696 = vmatmul.mubr.msk.f32.gmra.mrb[6].mxu1 %vm397_vm2, %v8384_v42  ;;  %11667 = vst [vmem:[#allocation38_spill] sm:$0xff] %v8519_v18  ;;  %11668 = vst [vmem:[#allocation39_spill] sm:$0xff] %v8523_v20  ;;  %v8555_v37 = vsel %vm234_vm1, %v280_v24, %v281_v25  ;;  %v285_v38 = vrot.slane %v8537_v27, 1  ;;  %v286_v43 = vrot.slane %v8542_v29, 1  ;;  %v8562_v45 = vld [vmem:[%s11383_s0 + $0x100] sm:$0x3] }
  0x15   :  { %7088 = vmatmul.mubr.msk.f32.gmra.mrb[6].mxu0 %vm397_vm2, %v8416_v50  ;;  %6698 = vmatprep.mubr.msk.f32.mxu1 %vm397_vm2, %v8388_v44  ;;  %11669 = vst [vmem:[#allocation40_spill] sm:$0xff] %v8537_v27  ;;  %11670 = vst [vmem:[#allocation41_spill] sm:$0xff] %v8542_v29  ;;  %v8569_v46 = vld [vmem:[%s11383_s0 + $0x108] sm:$0xff]  ;;  %v8574_v51 = vld [vmem:[%s11383_s0 + $0x110] sm:$0xff]  ;;  %v8583_v53 = vsel %vm234_vm1, %v281_v25, %v283_v35  ;;  %v288_v54 = vrot.slane %v8562_v45, 1 }
  0x16   :  { %7090 = vmatprep.mubr.msk.f32.mxu0 %vm397_vm2, %v8420_v52  ;;  %11671 = vst [vmem:[#allocation42_spill] sm:$0xff] %v8551_v30  ;;  %11672 = vst [vmem:[#allocation43_spill] sm:$0xff] %v8555_v37  ;;  %v8587_v59 = vsel %vm234_vm1, %v285_v38, %v286_v43  ;;  %v290_v62 = vrot.slane %v8569_v46, 1  ;;  %v291_v63 = vrot.slane %v8574_v51, 1  ;;  %v8594_v8 = vld [vmem:[%s11383_s0 + $0x118] sm:$0x3] }
  0x17   :  { %11673 = vst [vmem:[#allocation44_spill] sm:$0xff] %v8569_v46  ;;  %11674 = vst [vmem:[#allocation45_spill] sm:$0xff] %v8574_v51  ;;  %v8601_v10 = vld [vmem:[%s11383_s0 + $0x120] sm:$0xff]  ;;  %v8606_v11 = vld [vmem:[%s11383_s0 + $0x128] sm:$0xff] }
  0x18   :  { %6699 = vmatmul.mubr.msk.f32.gmra.mrb[8].mxu1 %vm397_vm2, %v8416_v50  ;;  %11675 = vst [vmem:[#allocation46_spill] sm:$0xff] %v8583_v53  ;;  %11676 = vst [vmem:[#allocation47_spill] sm:$0xff] %v8587_v59  ;;  %v8611_v19 = vld [vmem:[%s11384_s1 + $0x8] sm:$0xff] }
  0x19   :  { %7091 = vmatmul.mubr.msk.f32.gmra.mrb[8].mxu0 %vm397_vm2, %v8448_v58  ;;  %6701 = vmatprep.mubr.msk.f32.mxu1 %vm397_vm2, %v8420_v52  ;;  %11677 = vst [vmem:[#allocation48_spill] sm:$0xff] %v8601_v10  ;;  %11678 = vst [vmem:[#allocation49_spill] sm:$0xff] %v8606_v11 }
  0x1a   :  { %7093 = vmatprep.mubr.msk.f32.mxu0 %vm397_vm2, %v8457_v61  ;;  %11679 = vst [vmem:[#allocation50_spill] sm:$0xff] %v8611_v19 }
  0x1c   :  { %6702 = vmatmul.mubr.msk.f32.gmra.mrb[10].mxu1 %vm397_vm2, %v8448_v58 }
  0x1d   :  { %7094 = vmatmul.mubr.msk.f32.gmra.mrb[10].mxu0 %vm397_vm2, %v8487_v5  ;;  %6704 = vmatprep.mubr.msk.f32.mxu1 %vm397_vm2, %v8457_v61 }
  0x1e   :  { %7096 = vmatprep.mubr.msk.f32.mxu0 %vm397_vm2, %v8491_v9 }
  0x20   :  { %6705 = vmatmul.mubr.msk.f32.gmra.mrb[12].mxu1 %vm397_vm2, %v8487_v5 }
  0x21   :  { %7097 = vmatmul.mubr.msk.f32.gmra.mrb[12].mxu0 %vm397_vm2, %v8519_v18  ;;  %6707 = vmatprep.mubr.msk.f32.mxu1 %vm397_vm2, %v8491_v9 }
  0x22   :  { %7099 = vmatprep.mubr.msk.f32.mxu0 %vm397_vm2, %v8523_v20 }
  0x24   :  { %6708 = vmatmul.mubr.msk.f32.gmra.mrb[14].mxu1 %vm397_vm2, %v8519_v18 }
  0x25   :  { %7100 = vmatmul.mubr.msk.f32.gmra.mrb[14].mxu0 %vm397_vm2, %v8551_v30  ;;  %6710 = vmatprep.mubr.msk.f32.mxu1 %vm397_vm2, %v8523_v20 }
  0x26   :  { %7102 = vmatprep.mubr.msk.f32.mxu0 %vm397_vm2, %v8555_v37 }
  0x28   :  { %6711 = vmatmul.mubr.msk.f32.gmra.mrb[16].mxu1 %vm397_vm2, %v8551_v30 }
  0x29   :  { %7103 = vmatmul.mubr.msk.f32.gmra.mrb[16].mxu0 %vm397_vm2, %v8583_v53  ;;  %6713 = vmatprep.mubr.msk.f32.mxu1 %vm397_vm2, %v8555_v37 }
  0x2a   :  { %14 = vsyncpa [#allocation5], 0  ;;  %7105 = vmatprep.mubr.msk.f32.mxu0 %vm397_vm2, %v8587_v59  ;;  %v8620_v24 = vsel %vm234_vm1, %v286_v43, %v288_v54  ;;  %v293_v25 = vrot.slane %v8594_v8, 1  ;;  %6880 = vmatprep.subr.msk.mxu1 %vm526_vm0, %v8611_v19  ;;  %v8626_v35 = vsel %vm234_vm1, %v290_v62, %v291_v63  ;;  %v295_v38 = vrot.slane %v8601_v10, 1  ;;  %v8633_v37 = vld [vmem:[%s11383_s0 + $0x130] sm:$0x3] }
  0x2b   :  { %11680 = vst [vmem:[#allocation51_spill] sm:$0xff] %v8620_v24  ;;  %11681 = vst [vmem:[#allocation52_spill] sm:$0xff] %v8626_v35  ;;  %v296_v30 = vrot.slane %v8606_v11, 1  ;;  %v8640_v43 = vld [vmem:[%s11383_s0 + $0x138] sm:$0xff]  ;;  %v8645_v54 = vld [vmem:[%s11383_s0 + $0x140] sm:$0xff]  ;;  %vm1429_vm3 = vcmask 1045504  }
  0x2c   :  { %6714 = vmatmul.mubr.msk.f32.gmra.mrb[18].mxu1 %vm397_vm2, %v8583_v53  ;;  %11682 = vst [vmem:[#allocation53_spill] sm:$0xff] %v8640_v43  ;;  %11683 = vst [vmem:[#allocation54_spill] sm:$0xff] %v8645_v54  ;;  %v8654_v62 = vsel %vm234_vm1, %v291_v63, %v293_v25  ;;  %v298_v53 = vrot.slane %v8633_v37, 1  ;;  %v300_v18 = vrot.slane %v8640_v43, 1  ;;  %v301_v9 = vrot.slane %v8645_v54, 1  ;;  %v8672_v63 = vld [vmem:[%s11383_s0 + $0x150] sm:$0xff] }
  0x2d   :  { %7106 = vmatmul.mubr.msk.f32.gmra.mrb[18].mxu0 %vm397_vm2, %v8620_v24  ;;  %6716 = vmatprep.mubr.msk.f32.mxu1 %vm397_vm2, %v8587_v59  ;;  %11684 = vst [vmem:[#allocation55_spill] sm:$0xff] %v8654_v62  ;;  %v8658_v20 = vsel %vm234_vm1, %v295_v38, %v296_v30  ;;  %v8665_v5 = vld [vmem:[%s11383_s0 + $0x148] sm:$0x3]  ;;  %11686 = vst [vmem:[#allocation57_spill] sm:$0xff] %v8672_v63  ;;  %v8677_v25 = vld [vmem:[%s11383_s0 + $0x158] sm:$0xff]  ;;  %v305_v61 = vrot.slane %v8672_v63, 1 }
  0x2e   :  { %7108 = vmatprep.mubr.msk.f32.mxu0 %vm397_vm2, %v8626_v35  ;;  %11685 = vst [vmem:[#allocation56_spill] sm:$0xff] %v8658_v20  ;;  %11687 = vst [vmem:[#allocation58_spill] sm:$0xff] %v8677_v25  ;;  %v8686_v38 = vsel %vm234_vm1, %v296_v30, %v298_v53  ;;  %v8690_v59 = vsel %vm234_vm1, %v300_v18, %v301_v9  ;;  %v306_v58 = vrot.slane %v8677_v25, 1  ;;  %v8697_v52 = vld [vmem:[%s11383_s0 + $0x160] sm:$0x3]  ;;  %v8704_v30 = vld [vmem:[%s11383_s0 + $0x168] sm:$0xff] }
  0x2f   :  { %11688 = vst [vmem:[#allocation59_spill] sm:$0xff] %v8686_v38  ;;  %11689 = vst [vmem:[#allocation60_spill] sm:$0xff] %v8690_v59  ;;  %v8709_v18 = vld [vmem:[%s11383_s0 + $0x170] sm:$0xff]  ;;  %v310_v50 = vrot.slane %v8704_v30, 1  ;;  %v8729_v42 = vld [vmem:[%s11383_s0 + $0x178] sm:$0x3] }
  0x30   :  { %6717 = vmatmul.mubr.msk.f32.gmra.mrb[20].mxu1 %vm397_vm2, %v8620_v24  ;;  %v303_v24 = vrot.slane %v8665_v5, 1  ;;  %11690 = vst [vmem:[#allocation61_spill] sm:$0xff] %v8704_v30  ;;  %11691 = vst [vmem:[#allocation62_spill] sm:$0xff] %v8709_v18  ;;  %v311_v44 = vrot.slane %v8709_v18, 1  ;;  %v8761_v33 = vld [vmem:[%s11383_s0 + $0x190] sm:$0x3] }
  0x31   :  { %7109 = vmatmul.mubr.msk.f32.gmra.mrb[20].mxu0 %vm397_vm2, %v8654_v62  ;;  %6719 = vmatprep.mubr.msk.f32.mxu1 %vm397_vm2, %v8626_v35  ;;  %v8722_v35 = vsel %vm234_vm1, %v305_v61, %v306_v58  ;;  %v8741_v61 = vld [vmem:[%s11383_s0 + $0x188] sm:$0xff]  ;;  %vm5121_vm4 = vcmask 24576   ;;  %s8204_s22 = smov [#allocation2]   ;;  %s8205_s26 = smov [#allocation4]  }
  0x32   :  { %7111 = vmatprep.mubr.msk.f32.mxu0 %vm397_vm2, %v8658_v20  ;;  %v8718_v53 = vsel %vm234_vm1, %v301_v9, %v303_v24  ;;  %11693 = vst [vmem:[#allocation64_spill] sm:$0xff] %v8722_v35  ;;  %v8736_v9 = vld [vmem:[%s11383_s0 + $0x180] sm:$0xff]  ;;  %11694 = vst [vmem:[#allocation65_spill] sm:$0xff] %v8741_v61  ;;  %v2637_v34 = vrot.slane %v8741_v61, 1  ;;  %v1436_v61 = vrot.slane %v8272_v7, 2  ;;  %s5489_s23 = sshll.u32 %s8204_s22, 4  ;;  %s5490_s23 = int_to_ptr.vmem [resolvable:$true] %s5489_s23 }
  0x33   :  { %11692 = vst [vmem:[#allocation63_spill] sm:$0xff] %v8718_v53  ;;  %v2636_v36 = vrot.slane %v8736_v9, 1  ;;  %s5499_s27 = sshll.u32 %s8205_s26, 4  ;;  %s8155_s28 = scalar_lea.vmem %s5490_s23, 16  ;;  %s5500_s27 = int_to_ptr.vmem [resolvable:$true] %s5499_s27 }
  0x34   :  { %6720 = vmatmul.mubr.msk.f32.gmra.mrb[22].mxu1 %vm397_vm2, %v8654_v62  ;;  %v308_v62 = vrot.slane %v8697_v52, 1  ;;  %p8156_p0 = scmp.ne.s32.totalorder %s5490_s23, %s8155_s28  ;;  %p8160_p1 = scmp.lt.s32.totalorder %s5490_s23, %s5490_s23 }
  0x35   :  { %7112 = vmatmul.mubr.msk.f32.gmra.mrb[22].mxu0 %vm397_vm2, %v8686_v38  ;;  %6722 = vmatprep.mubr.msk.f32.mxu1 %vm397_vm2, %v8658_v20  ;;  %v8754_v20 = vsel %vm234_vm1, %v310_v50, %v311_v44  ;;  %v8791_v2 = vsel %vm234_vm1, %v2636_v36, %v2637_v34  ;;  %v1438_v36 = vrot.slane %v8290_v15, 2  ;;  %v8823_v15 = vld [vmem:[%s11383_s0 + $0x1d8] sm:$0x3] }
  0x36   :  { %7114 = vmatprep.mubr.msk.f32.mxu0 %vm397_vm2, %v8690_v59  ;;  %v8750_v24 = vsel %vm234_vm1, %v306_v58, %v308_v62  ;;  %11696 = vst [vmem:[#allocation67_spill] sm:$0xff] %v8754_v20  ;;  %v8771_v58 = vld [vmem:[%s11383_s0 + $0x1b8] sm:$0xff]  ;;  %v2639_v62 = vrot.slane %v8761_v33, 1  ;;  %11700 = vst [vmem:[#allocation71_spill] sm:$0xff] %v8791_v2 }
  0x37   :  { %11695 = vst [vmem:[#allocation66_spill] sm:$0xff] %v8750_v24  ;;  %11698 = vst [vmem:[#allocation69_spill] sm:$0xff] %v8771_v58  ;;  %v316_v19 = vrot.slane %v8771_v58, 1 }
  0x38   :  { %6723 = vmatmul.mubr.msk.f32.gmra.mrb[24].mxu1 %vm397_vm2, %v8686_v38  ;;  %v313_v38 = vrot.slane %v8729_v42, 1 }
  0x39   :  { %7115 = vmatmul.mubr.msk.f32.gmra.mrb[24].mxu0 %vm397_vm2, %v8718_v53  ;;  %6725 = vmatprep.mubr.msk.f32.mxu1 %vm397_vm2, %v8690_v59  ;;  %v8766_v59 = vld [vmem:[%s11383_s0 + $0x1b0] sm:$0xff] }
  0x3a   :  { %7117 = vmatprep.mubr.msk.f32.mxu0 %vm397_vm2, %v8722_v35  ;;  %11697 = vst [vmem:[#allocation68_spill] sm:$0xff] %v8766_v59  ;;  %v8782_v50 = vsel %vm234_vm1, %v311_v44, %v313_v38  ;;  %v315_v4 = vrot.slane %v8766_v59, 1  ;;  %v8798_v44 = vld [vmem:[%s11383_s0 + $0x1c8] sm:$0xff]  ;;  %v8803_v38 = vld [vmem:[%s11383_s0 + $0x1d0] sm:$0xff]  ;;  %v8815_v59 = vsel %vm234_vm1, %v2637_v34, %v2639_v62  ;;  %v323_v62 = vrot.slane %v8823_v15, 1 }
  0x3b   :  { %11699 = vst [vmem:[#allocation70_spill] sm:$0xff] %v8782_v50  ;;  %11701 = vst [vmem:[#allocation72_spill] sm:$0xff] %v8803_v38  ;;  %v8838_v34 = vld [vmem:[%s11383_s0 + $0x1e8] sm:$0xff] }
  0x3c   :  { %6726 = vmatmul.mubr.msk.f32.gmra.mrb[26].mxu1 %vm397_vm2, %v8718_v53  ;;  %v81_v53 = vld [vmem:[%s11383_s0 + $0x1c0] sm:$0x3]  ;;  %11702 = vst [vmem:[#allocation73_spill] sm:$0xff] %v8815_v59  ;;  %v317_v7 = vsel %vm234_vm1, %v315_v4, %v316_v19 }
  0x3d   :  { %7118 = vmatmul.mubr.msk.f32.gmra.mrb[26].mxu0 %vm397_vm2, %v8750_v24  ;;  %6728 = vmatprep.mubr.msk.f32.mxu1 %vm397_vm2, %v8722_v35  ;;  %v1435_v35 = vrot.slane %v8267_v6, 2  ;;  %v318_v58 = vrot.slane %v81_v53, 1  ;;  %v321_v6 = vrot.slane %v8803_v38, 1  ;;  %v1440_v53 = vrot.slane %v8284_v13, 2  ;;  %v8833_v4 = vld [vmem:[%s11383_s0 + $0x1e0] sm:$0xff] }
  0x3e   :  { %7120 = vmatprep.mubr.msk.f32.mxu0 %vm397_vm2, %v8754_v20  ;;  %v8851_v13 = vsel %vm1429_vm3, %v1436_v61, %v1438_v36  ;;  %v8877_v36 = vld [vmem:[%s11383_s0 + $0x200] sm:$0xff] }
  0x3f   :  { %11704 = vst [vmem:[#allocation75_spill] sm:$0xff] %v8851_v13 }
  0x40   :  { %6729 = vmatmul.mubr.msk.f32.gmra.mrb[28].mxu1 %vm397_vm2, %v8750_v24  ;;  %v320_v24 = vrot.slane %v8798_v44, 1 }
  0x41   :  { %7121 = vmatmul.mubr.msk.f32.gmra.mrb[28].mxu0 %vm397_vm2, %v8782_v50  ;;  %6731 = vmatprep.mubr.msk.f32.mxu1 %vm397_vm2, %v8754_v20  ;;  %v8826_v20 = vsel %vm1429_vm3, %v1435_v35, %v1436_v61  ;;  %v319_v35 = vsel %vm234_vm1, %v316_v19, %v318_v58  ;;  %v1445_v61 = vrot.slane %v8311_v22, 2  ;;  %v1446_v58 = vrot.slane %v8316_v23, 2 }
  0x42   :  { %7123 = vmatprep.mubr.msk.f32.mxu0 %vm397_vm2, %v8791_v2  ;;  %11703 = vst [vmem:[#allocation74_spill] sm:$0xff] %v8826_v20  ;;  %v1441_v2 = vrot.slane %v8296_v16, 2  ;;  %v1443_v16 = vrot.slane %v8306_v21, 2  ;;  %v8854_v38 = vsel %vm234_vm1, %v320_v24, %v321_v6  ;;  %v8872_v24 = vld [vmem:[%s11383_s0 + $0x1f8] sm:$0xff]  ;;  %v11711_v23 = vrot.slane %v8454_v60, 4 }
  0x43   :  { %11705 = vst [vmem:[#allocation76_spill] sm:$0xff] %v8854_v38 }
  0x44   :  { %6732 = vmatmul.mubr.msk.f32.gmra.mrb[30].mxu1 %vm397_vm2, %v8782_v50  ;;  %v325_v50 = vrot.slane %v8833_v4, 1  ;;  %v8865_v19 = vsel %vm1429_vm3, %v1440_v53, %v1441_v2  ;;  %v8885_v53 = vsel %vm234_vm1, %v321_v6, %v323_v62  ;;  %v8888_v21 = vsel %vm1429_vm3, %v1441_v2, %v1443_v16  ;;  %v8904_v2 = vld [vmem:[%s11383_s0 + $0x208] sm:$0x3] }
  0x45   :  { %7124 = vmatmul.mubr.msk.f32.gmra.mrb[30].mxu0 %vm397_vm2, %v8815_v59  ;;  %6734 = vmatprep.mubr.msk.f32.mxu1 %vm397_vm2, %v317_v7  ;;  %v326_v59 = vrot.slane %v8838_v34, 1  ;;  %v8861_v7 = vld [vmem:[%s11383_s0 + $0x1f0] sm:$0x3]  ;;  %11706 = vst [vmem:[#allocation77_spill] sm:$0xff] %v8865_v19  ;;  %11707 = vst [vmem:[#allocation78_spill] sm:$0xff] %v8885_v53  ;;  %v331_v6 = vrot.slane %v8877_v36, 1  ;;  %v8907_v16 = vsel %vm1429_vm3, %v1445_v61, %v1446_v58 }
  0x46   :  { %7176 = vmatprep.mubr.msk.f32.mxu0 %vm397_vm2, %v8826_v20  ;;  %11708 = vst [vmem:[#allocation79_spill] sm:$0xff] %v8888_v21  ;;  %v328_v20 = vrot.slane %v8861_v7, 1  ;;  %11710 = vst [vmem:[#allocation81_spill] sm:$0xff] %v8907_v16  ;;  %v1450_v62 = vrot.slane %v8336_v31, 2  ;;  %v1453_v31 = vrot.slane %v8364_v39, 2 }
  0x48   :  { %6735 = vmatmul.mubr.msk.f32.gmra.mrb[32].mxu1 %vm397_vm2, %v319_v35  ;;  %v8896_v35 = vsel %vm234_vm1, %v325_v50, %v326_v59  ;;  %v8919_v50 = vld [vmem:[%s11383_s0 + $0x218] sm:$0xff]  ;;  %v8931_v61 = vsel %vm234_vm1, %v326_v59, %v328_v20  ;;  %v8948_v20 = vld [vmem:[%s11383_s0 + $0x220] sm:$0x3]  ;;  %v1455_v59 = vrot.slane %v8370_v40, 2 }
  0x49   :  { %7177 = vmatmul.mubr.msk.f32.vlgmr.msra.gmra.mrb[0].mxu0 %vm397_vm2, %v8851_v13  ;;  %6737 = vmatprep.mubr.msk.f32.mxu1 %vm397_vm2, %v8854_v38  ;;  %11709 = vst [vmem:[#allocation80_spill] sm:$0xff] %v8896_v35  ;;  %v1448_v13 = vrot.slane %v8327_v28, 2  ;;  %v330_v38 = vrot.slane %v8872_v24, 1  ;;  %v8914_v28 = vld [vmem:[%s11383_s0 + $0x210] sm:$0xff]  ;;  %11712 = vst [vmem:[#allocation82_spill] sm:$0xff] %v8931_v61 }
  0x4a   :  { %7273 = vmatpush3.msk.msra.mxu0 %vm526_vm0, %v8454_v60  ;;  %7179 = vmatprep.mubr.msk.f32.mxu0 %vm397_vm2, %v8865_v19  ;;  %v1451_v19 = vrot.slane %v8341_v32, 2  ;;  %v333_v32 = vrot.slane %v8904_v2, 1  ;;  %v338_v60 = vrot.slane %v8948_v20, 1 }
  0x4b   :  { %7370 = vmatprep.subr.msk.mxu0 %vm526_vm0, %v11711_v23  ;;  %v8938_v23 = vsel %vm1429_vm3, %v1446_v58, %v1448_v13  ;;  %v1456_v13 = vrot.slane %v8375_v41, 2  ;;  %v8963_v58 = vld [vmem:[%s11383_s0 + $0x230] sm:$0xff] }
  0x4c   :  { %6738 = vmatmul.mubr.msk.f32.gmra.mrb[34].mxu1 %vm397_vm2, %v8885_v53  ;;  %11713 = vst [vmem:[#allocation83_spill] sm:$0xff] %v8938_v23  ;;  %v8941_v53 = vsel %vm234_vm1, %v330_v38, %v331_v6  ;;  %v8951_v39 = vsel %vm1429_vm3, %v1450_v62, %v1451_v19  ;;  %v8958_v38 = vld [vmem:[%s11383_s0 + $0x228] sm:$0xff]  ;;  %v8972_v62 = vsel %vm234_vm1, %v331_v6, %v333_v32  ;;  %v8989_v32 = vld [vmem:[%s11383_s0 + $0x238] sm:$0x3]  ;;  %v1461_v6 = vrot.slane %v8407_v49, 2 }
  0x4d   :  { %7180 = vmatmul.mubr.msk.f32.gmra.mrb[2].mxu0 %vm397_vm2, %v8888_v21  ;;  %6740 = vmatprep.mubr.msk.f32.mxu1 %vm397_vm2, %v8896_v35  ;;  %11714 = vst [vmem:[#allocation84_spill] sm:$0xff] %v8941_v53  ;;  %v335_v21 = vrot.slane %v8914_v28, 1  ;;  %v336_v35 = vrot.slane %v8919_v50, 1  ;;  %11715 = vst [vmem:[#allocation85_spill] sm:$0xff] %v8951_v39  ;;  %v1463_v49 = vrot.slane %v8427_v55, 2 }
  0x4e   :  { %7182 = vmatprep.mubr.msk.f32.mxu0 %vm397_vm2, %v8907_v16  ;;  %11716 = vst [vmem:[#allocation86_spill] sm:$0xff] %v8972_v62  ;;  %v8975_v16 = vsel %vm1429_vm3, %v1451_v19, %v1453_v31  ;;  %v8992_v31 = vsel %vm1429_vm3, %v1455_v59, %v1456_v13  ;;  %v1460_v19 = vrot.slane %v8402_v48, 2 }
  0x4f   :  { %11717 = vst [vmem:[#allocation87_spill] sm:$0xff] %v8975_v16  ;;  %v8981_v41 = vsel %vm234_vm1, %v335_v21, %v336_v35  ;;  %11719 = vst [vmem:[#allocation89_spill] sm:$0xff] %v8992_v31  ;;  %v9004_v21 = vld [vmem:[%s11383_s0 + $0x248] sm:$0xff]  ;;  %v9013_v59 = vsel %vm234_vm1, %v336_v35, %v338_v60  ;;  %v9030_v60 = vld [vmem:[%s11383_s0 + $0x250] sm:$0x3]  ;;  %v1465_v35 = vrot.slane %v8434_v56, 2 }
  0x50   :  { %6741 = vmatmul.mubr.msk.f32.gmra.mrb[36].mxu1 %vm397_vm2, %v8931_v61  ;;  %11718 = vst [vmem:[#allocation88_spill] sm:$0xff] %v8981_v41  ;;  %v1458_v61 = vrot.slane %v8395_v47, 2  ;;  %v8999_v47 = vld [vmem:[%s11383_s0 + $0x240] sm:$0xff]  ;;  %11720 = vst [vmem:[#allocation90_spill] sm:$0xff] %v9013_v59  ;;  %v9033_v55 = vsel %vm1429_vm3, %v1460_v19, %v1461_v6 }
  0x51   :  { %7183 = vmatmul.mubr.msk.f32.gmra.mrb[4].mxu0 %vm397_vm2, %v8938_v23  ;;  %6743 = vmatprep.mubr.msk.f32.mxu1 %vm397_vm2, %v8941_v53  ;;  %v340_v23 = vrot.slane %v8958_v38, 1  ;;  %v341_v53 = vrot.slane %v8963_v58, 1  ;;  %11723 = vst [vmem:[#allocation93_spill] sm:$0xff] %v9033_v55 }
  0x52   :  { %7185 = vmatprep.mubr.msk.f32.mxu0 %vm397_vm2, %v8951_v39  ;;  %v343_v39 = vrot.slane %v8989_v32, 1  ;;  %v9020_v48 = vsel %vm1429_vm3, %v1456_v13, %v1458_v61  ;;  %v1466_v61 = vrot.slane %v8439_v57, 2  ;;  %v9045_v13 = vld [vmem:[%s11383_s0 + $0x260] sm:$0xff]  ;;  %v348_v57 = vrot.slane %v9030_v60, 1 }
  0x53   :  { %11721 = vst [vmem:[#allocation91_spill] sm:$0xff] %v9020_v48 }
  0x54   :  { %6744 = vmatmul.mubr.msk.f32.gmra.mrb[38].mxu1 %vm397_vm2, %v8972_v62  ;;  %v9023_v62 = vsel %vm234_vm1, %v340_v23, %v341_v53  ;;  %v9040_v23 = vld [vmem:[%s11383_s0 + $0x258] sm:$0xff]  ;;  %v9054_v19 = vsel %vm234_vm1, %v341_v53, %v343_v39  ;;  %v9071_v53 = vld [vmem:[%s11383_s0 + $0x268] sm:$0x3]  ;;  %v1470_v39 = vrot.slane %v8473_v1, 2 }
  0x55   :  { %7186 = vmatmul.mubr.msk.f32.gmra.mrb[6].mxu0 %vm397_vm2, %v8975_v16  ;;  %6746 = vmatprep.mubr.msk.f32.mxu1 %vm397_vm2, %v8981_v41  ;;  %11722 = vst [vmem:[#allocation92_spill] sm:$0xff] %v9023_v62  ;;  %v345_v16 = vrot.slane %v8999_v47, 1  ;;  %v346_v41 = vrot.slane %v9004_v21, 1  ;;  %11724 = vst [vmem:[#allocation94_spill] sm:$0xff] %v9054_v19 }
  0x56   :  { %7188 = vmatprep.mubr.msk.f32.mxu0 %vm397_vm2, %v8992_v31  ;;  %v9057_v31 = vsel %vm1429_vm3, %v1461_v6, %v1463_v49  ;;  %v9074_v49 = vsel %vm1429_vm3, %v1465_v35, %v1466_v61  ;;  %v1471_v6 = vrot.slane %v8478_v3, 2  ;;  %v1473_v3 = vrot.slane %v8498_v12, 2 }
  0x57   :  { %11725 = vst [vmem:[#allocation95_spill] sm:$0xff] %v9057_v31  ;;  %v9063_v56 = vsel %vm234_vm1, %v345_v16, %v346_v41  ;;  %11727 = vst [vmem:[#allocation97_spill] sm:$0xff] %v9074_v49  ;;  %v9086_v16 = vld [vmem:[%s11383_s0 + $0x278] sm:$0xff]  ;;  %v9095_v35 = vsel %vm234_vm1, %v346_v41, %v348_v57  ;;  %v9112_v41 = vld [vmem:[%s11383_s0 + $0x280] sm:$0x3]  ;;  %v1475_v12 = vrot.slane %v8505_v14, 2 }
  0x58   :  { %6747 = vmatmul.mubr.msk.f32.gmra.mrb[40].mxu1 %vm397_vm2, %v9013_v59  ;;  %11726 = vst [vmem:[#allocation96_spill] sm:$0xff] %v9063_v56  ;;  %v1468_v59 = vrot.slane %v8464_v0, 2  ;;  %v9081_v0 = vld [vmem:[%s11383_s0 + $0x270] sm:$0xff]  ;;  %11728 = vst [vmem:[#allocation98_spill] sm:$0xff] %v9095_v35  ;;  %v9115_v57 = vsel %vm1429_vm3, %v1470_v39, %v1471_v6 }
  0x59   :  { %7189 = vmatmul.mubr.msk.f32.gmra.mrb[8].mxu0 %vm397_vm2, %v9020_v48  ;;  %6749 = vmatprep.mubr.msk.f32.mxu1 %vm397_vm2, %v9023_v62  ;;  %v350_v48 = vrot.slane %v9040_v23, 1  ;;  %v351_v62 = vrot.slane %v9045_v13, 1  ;;  %11731 = vst [vmem:[#allocation101_spill] sm:$0xff] %v9115_v57 }
  0x5a   :  { %7191 = vmatprep.mubr.msk.f32.mxu0 %vm397_vm2, %v9033_v55  ;;  %v353_v55 = vrot.slane %v9071_v53, 1  ;;  %v9102_v1 = vsel %vm1429_vm3, %v1466_v61, %v1468_v59  ;;  %v1476_v59 = vrot.slane %v8510_v17, 2  ;;  %v9127_v61 = vld [vmem:[%s11383_s0 + $0x290] sm:$0xff]  ;;  %v358_v17 = vrot.slane %v9112_v41, 1 }
  0x5b   :  { %11729 = vst [vmem:[#allocation99_spill] sm:$0xff] %v9102_v1 }
  0x5c   :  { %6750 = vmatmul.mubr.msk.f32.gmra.mrb[42].mxu1 %vm397_vm2, %v9054_v19  ;;  %v9105_v19 = vsel %vm234_vm1, %v350_v48, %v351_v62  ;;  %v9122_v48 = vld [vmem:[%s11383_s0 + $0x288] sm:$0xff]  ;;  %v9136_v39 = vsel %vm234_vm1, %v351_v62, %v353_v55  ;;  %v9153_v62 = vld [vmem:[%s11383_s0 + $0x298] sm:$0x3]  ;;  %v1480_v55 = vrot.slane %v8537_v27, 2 }
  0x5d   :  { %7192 = vmatmul.mubr.msk.f32.gmra.mrb[10].mxu0 %vm397_vm2, %v9057_v31  ;;  %6752 = vmatprep.mubr.msk.f32.mxu1 %vm397_vm2, %v9063_v56  ;;  %11730 = vst [vmem:[#allocation100_spill] sm:$0xff] %v9105_v19  ;;  %v355_v31 = vrot.slane %v9081_v0, 1  ;;  %v356_v56 = vrot.slane %v9086_v16, 1  ;;  %11732 = vst [vmem:[#allocation102_spill] sm:$0xff] %v9136_v39 }
  0x5e   :  { %7194 = vmatprep.mubr.msk.f32.mxu0 %vm397_vm2, %v9074_v49  ;;  %v9139_v49 = vsel %vm1429_vm3, %v1471_v6, %v1473_v3  ;;  %v9156_v3 = vsel %vm1429_vm3, %v1475_v12, %v1476_v59  ;;  %v1481_v6 = vrot.slane %v8542_v29, 2  ;;  %v1483_v29 = vrot.slane %v8562_v45, 2 }
  0x5f   :  { %11733 = vst [vmem:[#allocation103_spill] sm:$0xff] %v9139_v49  ;;  %v9145_v14 = vsel %vm234_vm1, %v355_v31, %v356_v56  ;;  %11735 = vst [vmem:[#allocation105_spill] sm:$0xff] %v9156_v3  ;;  %v9168_v31 = vld [vmem:[%s11383_s0 + $0x2a8] sm:$0xff]  ;;  %v9177_v12 = vsel %vm234_vm1, %v356_v56, %v358_v17  ;;  %v9194_v56 = vld [vmem:[%s11383_s0 + $0x2b0] sm:$0x3]  ;;  %v1485_v45 = vrot.slane %v8569_v46, 2 }
  0x60   :  { %6753 = vmatmul.mubr.msk.f32.gmra.mrb[44].mxu1 %vm397_vm2, %v9095_v35  ;;  %11734 = vst [vmem:[#allocation104_spill] sm:$0xff] %v9145_v14  ;;  %v1478_v35 = vrot.slane %v8530_v26, 2  ;;  %v9163_v26 = vld [vmem:[%s11383_s0 + $0x2a0] sm:$0xff]  ;;  %11736 = vst [vmem:[#allocation106_spill] sm:$0xff] %v9177_v12  ;;  %v9197_v17 = vsel %vm1429_vm3, %v1480_v55, %v1481_v6 }
  0x61   :  { %7195 = vmatmul.mubr.msk.f32.gmra.mrb[12].mxu0 %vm397_vm2, %v9102_v1  ;;  %6755 = vmatprep.mubr.msk.f32.mxu1 %vm397_vm2, %v9105_v19  ;;  %v360_v1 = vrot.slane %v9122_v48, 1  ;;  %v361_v19 = vrot.slane %v9127_v61, 1  ;;  %11739 = vst [vmem:[#allocation109_spill] sm:$0xff] %v9197_v17 }
  0x62   :  { %7197 = vmatprep.mubr.msk.f32.mxu0 %vm397_vm2, %v9115_v57  ;;  %v363_v57 = vrot.slane %v9153_v62, 1  ;;  %v9184_v27 = vsel %vm1429_vm3, %v1476_v59, %v1478_v35  ;;  %v1486_v35 = vrot.slane %v8574_v51, 2  ;;  %v9209_v59 = vld [vmem:[%s11383_s0 + $0x2c0] sm:$0xff]  ;;  %v368_v51 = vrot.slane %v9194_v56, 1 }
  0x63   :  { %11737 = vst [vmem:[#allocation107_spill] sm:$0xff] %v9184_v27 }
  0x64   :  { %6756 = vmatmul.mubr.msk.f32.gmra.mrb[46].mxu1 %vm397_vm2, %v9136_v39  ;;  %v9187_v39 = vsel %vm234_vm1, %v360_v1, %v361_v19  ;;  %v9204_v1 = vld [vmem:[%s11383_s0 + $0x2b8] sm:$0xff]  ;;  %v9218_v55 = vsel %vm234_vm1, %v361_v19, %v363_v57  ;;  %v9235_v19 = vld [vmem:[%s11383_s0 + $0x2c8] sm:$0x3]  ;;  %v1490_v57 = vrot.slane %v8601_v10, 2 }
  0x65   :  { %7198 = vmatmul.mubr.msk.f32.gmra.mrb[14].mxu0 %vm397_vm2, %v9139_v49  ;;  %6758 = vmatprep.mubr.msk.f32.mxu1 %vm397_vm2, %v9145_v14  ;;  %11738 = vst [vmem:[#allocation108_spill] sm:$0xff] %v9187_v39  ;;  %v365_v49 = vrot.slane %v9163_v26, 1  ;;  %v366_v14 = vrot.slane %v9168_v31, 1  ;;  %11740 = vst [vmem:[#allocation110_spill] sm:$0xff] %v9218_v55 }
  0x66   :  { %7200 = vmatprep.mubr.msk.f32.mxu0 %vm397_vm2, %v9156_v3  ;;  %v9221_v3 = vsel %vm1429_vm3, %v1481_v6, %v1483_v29  ;;  %v9238_v29 = vsel %vm1429_vm3, %v1485_v45, %v1486_v35  ;;  %v1491_v6 = vrot.slane %v8606_v11, 2  ;;  %v1493_v11 = vrot.slane %v8633_v37, 2 }
  0x67   :  { %11741 = vst [vmem:[#allocation111_spill] sm:$0xff] %v9221_v3  ;;  %v9227_v46 = vsel %vm234_vm1, %v365_v49, %v366_v14  ;;  %11743 = vst [vmem:[#allocation113_spill] sm:$0xff] %v9238_v29  ;;  %v9250_v49 = vld [vmem:[%s11383_s0 + $0x2d8] sm:$0xff]  ;;  %v9259_v45 = vsel %vm234_vm1, %v366_v14, %v368_v51  ;;  %v9276_v14 = vld [vmem:[%s11383_s0 + $0x2e0] sm:$0x3]  ;;  %v1495_v51 = vrot.slane %v8640_v43, 2 }
  0x68   :  { %6759 = vmatmul.mubr.msk.f32.gmra.mrb[48].mxu1 %vm397_vm2, %v9177_v12  ;;  %11742 = vst [vmem:[#allocation112_spill] sm:$0xff] %v9227_v46  ;;  %v1488_v12 = vrot.slane %v8594_v8, 2  ;;  %v9245_v8 = vld [vmem:[%s11383_s0 + $0x2d0] sm:$0xff]  ;;  %11744 = vst [vmem:[#allocation114_spill] sm:$0xff] %v9259_v45  ;;  %v9279_v37 = vsel %vm1429_vm3, %v1490_v57, %v1491_v6 }
  0x69   :  { %7201 = vmatmul.mubr.msk.f32.gmra.mrb[16].mxu0 %vm397_vm2, %v9184_v27  ;;  %6761 = vmatprep.mubr.msk.f32.mxu1 %vm397_vm2, %v9187_v39  ;;  %v370_v27 = vrot.slane %v9204_v1, 1  ;;  %v371_v39 = vrot.slane %v9209_v59, 1  ;;  %11747 = vst [vmem:[#allocation117_spill] sm:$0xff] %v9279_v37 }
  0x6a   :  { %7203 = vmatprep.mubr.msk.f32.mxu0 %vm397_vm2, %v9197_v17  ;;  %v373_v17 = vrot.slane %v9235_v19, 1  ;;  %v9266_v10 = vsel %vm1429_vm3, %v1486_v35, %v1488_v12  ;;  %v1496_v12 = vrot.slane %v8645_v54, 2  ;;  %v9291_v35 = vld [vmem:[%s11383_s0 + $0x2f0] sm:$0xff]  ;;  %v378_v54 = vrot.slane %v9276_v14, 1 }
  0x6b   :  { %11745 = vst [vmem:[#allocation115_spill] sm:$0xff] %v9266_v10 }
  0x6c   :  { %6762 = vmatmul.mubr.msk.f32.gmra.mrb[50].mxu1 %vm397_vm2, %v9218_v55  ;;  %v9269_v55 = vsel %vm234_vm1, %v370_v27, %v371_v39  ;;  %v9286_v27 = vld [vmem:[%s11383_s0 + $0x2e8] sm:$0xff]  ;;  %v9300_v57 = vsel %vm234_vm1, %v371_v39, %v373_v17  ;;  %v9317_v39 = vld [vmem:[%s11383_s0 + $0x2f8] sm:$0x3]  ;;  %v1500_v17 = vrot.slane %v8672_v63, 2 }
  0x6d   :  { %7204 = vmatmul.mubr.msk.f32.gmra.mrb[18].mxu0 %vm397_vm2, %v9221_v3  ;;  %6764 = vmatprep.mubr.msk.f32.mxu1 %vm397_vm2, %v9227_v46  ;;  %11746 = vst [vmem:[#allocation116_spill] sm:$0xff] %v9269_v55  ;;  %v375_v3 = vrot.slane %v9245_v8, 1  ;;  %v376_v46 = vrot.slane %v9250_v49, 1  ;;  %11748 = vst [vmem:[#allocation118_spill] sm:$0xff] %v9300_v57 }
  0x6e   :  { %7206 = vmatprep.mubr.msk.f32.mxu0 %vm397_vm2, %v9238_v29  ;;  %v9303_v29 = vsel %vm1429_vm3, %v1491_v6, %v1493_v11  ;;  %v9320_v11 = vsel %vm1429_vm3, %v1495_v51, %v1496_v12  ;;  %v1501_v6 = vrot.slane %v8677_v25, 2  ;;  %v1503_v25 = vrot.slane %v8697_v52, 2 }
  0x6f   :  { %11749 = vst [vmem:[#allocation119_spill] sm:$0xff] %v9303_v29  ;;  %v9309_v43 = vsel %vm234_vm1, %v375_v3, %v376_v46  ;;  %11751 = vst [vmem:[#allocation121_spill] sm:$0xff] %v9320_v11  ;;  %v9332_v3 = vld [vmem:[%s11383_s0 + $0x308] sm:$0xff]  ;;  %v9341_v51 = vsel %vm234_vm1, %v376_v46, %v378_v54  ;;  %v9358_v46 = vld [vmem:[%s11383_s0 + $0x310] sm:$0x3]  ;;  %v1505_v54 = vrot.slane %v8704_v30, 2 }
  0x70   :  { %6765 = vmatmul.mubr.msk.f32.gmra.mrb[52].mxu1 %vm397_vm2, %v9259_v45  ;;  %11750 = vst [vmem:[#allocation120_spill] sm:$0xff] %v9309_v43  ;;  %v1498_v45 = vrot.slane %v8665_v5, 2  ;;  %v9327_v5 = vld [vmem:[%s11383_s0 + $0x300] sm:$0xff]  ;;  %11752 = vst [vmem:[#allocation122_spill] sm:$0xff] %v9341_v51  ;;  %v9361_v52 = vsel %vm1429_vm3, %v1500_v17, %v1501_v6 }
  0x71   :  { %7207 = vmatmul.mubr.msk.f32.gmra.mrb[20].mxu0 %vm397_vm2, %v9266_v10  ;;  %6767 = vmatprep.mubr.msk.f32.mxu1 %vm397_vm2, %v9269_v55  ;;  %v380_v10 = vrot.slane %v9286_v27, 1  ;;  %v381_v55 = vrot.slane %v9291_v35, 1  ;;  %11755 = vst [vmem:[#allocation125_spill] sm:$0xff] %v9361_v52 }
  0x72   :  { %7209 = vmatprep.mubr.msk.f32.mxu0 %vm397_vm2, %v9279_v37  ;;  %v383_v37 = vrot.slane %v9317_v39, 1  ;;  %v9348_v63 = vsel %vm1429_vm3, %v1496_v12, %v1498_v45  ;;  %v1506_v45 = vrot.slane %v8709_v18, 2  ;;  %v9373_v12 = vld [vmem:[%s11383_s0 + $0x320] sm:$0xff]  ;;  %v388_v18 = vrot.slane %v9358_v46, 1 }
  0x73   :  { %11753 = vst [vmem:[#allocation123_spill] sm:$0xff] %v9348_v63 }
  0x74   :  { %6768 = vmatmul.mubr.msk.f32.gmra.mrb[54].mxu1 %vm397_vm2, %v9300_v57  ;;  %v9351_v57 = vsel %vm234_vm1, %v380_v10, %v381_v55  ;;  %v9368_v10 = vld [vmem:[%s11383_s0 + $0x318] sm:$0xff]  ;;  %v9382_v17 = vsel %vm234_vm1, %v381_v55, %v383_v37  ;;  %v9399_v55 = vld [vmem:[%s11383_s0 + $0x328] sm:$0x3]  ;;  %v3106_v37 = vrot.slane %v8736_v9, 2 }
  0x75   :  { %7210 = vmatmul.mubr.msk.f32.gmra.mrb[22].mxu0 %vm397_vm2, %v9303_v29  ;;  %6770 = vmatprep.mubr.msk.f32.mxu1 %vm397_vm2, %v9309_v43  ;;  %11754 = vst [vmem:[#allocation124_spill] sm:$0xff] %v9351_v57  ;;  %v385_v29 = vrot.slane %v9327_v5, 1  ;;  %v386_v43 = vrot.slane %v9332_v3, 1  ;;  %11756 = vst [vmem:[#allocation126_spill] sm:$0xff] %v9382_v17 }
  0x76   :  { %7212 = vmatprep.mubr.msk.f32.mxu0 %vm397_vm2, %v9320_v11  ;;  %v9385_v11 = vsel %vm1429_vm3, %v1501_v6, %v1503_v25  ;;  %v9402_v25 = vsel %vm1429_vm3, %v1505_v54, %v1506_v45  ;;  %v11760_v6 = vld [vmem:[#allocation65_spill] sm:$0xff] }
  0x77   :  { %11757 = vst [vmem:[#allocation127_spill] sm:$0xff] %v9385_v11  ;;  %v9391_v30 = vsel %vm234_vm1, %v385_v29, %v386_v43  ;;  %11759 = vst [vmem:[#allocation129_spill] sm:$0xff] %v9402_v25  ;;  %v393_v29 = vrot.slane %v9399_v55, 1 }
  0x78   :  { %6771 = vmatmul.mubr.msk.f32.gmra.mrb[56].mxu1 %vm397_vm2, %v9341_v51  ;;  %11758 = vst [vmem:[#allocation128_spill] sm:$0xff] %v9391_v30  ;;  %v1508_v51 = vrot.slane %v8729_v42, 2  ;;  %v9413_v42 = vsel %vm234_vm1, %v386_v43, %v388_v18  ;;  %v11764_v43 = vld [vmem:[#allocation72_spill] sm:$0xff] }
  0x79   :  { %7213 = vmatmul.mubr.msk.f32.gmra.mrb[24].mxu0 %vm397_vm2, %v9348_v63  ;;  %6773 = vmatprep.mubr.msk.f32.mxu1 %vm397_vm2, %v9351_v57  ;;  %v390_v63 = vrot.slane %v9368_v10, 1  ;;  %v391_v57 = vrot.slane %v9373_v12, 1  ;;  %11761 = vst [vmem:[#allocation65_spill] sm:$0xff] %v9413_v42  ;;  %v1516_v18 = vrot.slane %v11764_v43, 2 }
  0x7a   :  { %7215 = vmatprep.mubr.msk.f32.mxu0 %vm397_vm2, %v9361_v52  ;;  %v3107_v52 = vrot.slane %v11760_v6, 2  ;;  %v9419_v54 = vsel %vm1429_vm3, %v1506_v45, %v1508_v51  ;;  %v1518_v51 = vrot.slane %v8823_v15, 2 }
  0x7b   :  { %v9422_v6 = vsel %vm234_vm1, %v390_v63, %v391_v57  ;;  %v9437_v63 = vsel %vm234_vm1, %v391_v57, %v393_v29  ;;  %v11767_v57 = vld [vmem:[#allocation8_spill] sm:$0xff] }
  0x7c   :  { %6774 = vmatmul.mubr.msk.f32.gmra.mrb[58].mxu1 %vm397_vm2, %v9382_v17  ;;  %11762 = vst [vmem:[#allocation130_spill] sm:$0xff] %v9422_v6  ;;  %v3109_v17 = vrot.slane %v8761_v33, 2  ;;  %11765 = vst [vmem:[#allocation72_spill] sm:$0xff] %v9437_v63  ;;  %v9459_v15 = vsel %vm1429_vm3, %v1516_v18, %v1518_v51  ;;  %v1528_v51 = vrot.slane %v8904_v2, 2 }
  0x7d   :  { %7216 = vmatmul.mubr.msk.f32.gmra.mrb[26].mxu0 %vm397_vm2, %v9385_v11  ;;  %6776 = vmatprep.mubr.msk.f32.mxu1 %vm397_vm2, %v9391_v30  ;;  %v9426_v11 = vsel %vm1429_vm3, %v3106_v37, %v3107_v52  ;;  %v1515_v30 = vrot.slane %v8798_v44, 2  ;;  %v1520_v37 = vrot.slane %v8833_v4, 2 }
  0x7e   :  { %7218 = vmatprep.mubr.msk.f32.mxu0 %vm397_vm2, %v9402_v25  ;;  %11763 = vst [vmem:[#allocation131_spill] sm:$0xff] %v9426_v11  ;;  %v9442_v33 = vsel %vm1429_vm3, %v3107_v52, %v3109_v17  ;;  %v11768_v52 = vld [vmem:[#allocation50_spill] sm:$0xff] }
  0x7f   :  { %11766 = vst [vmem:[#allocation132_spill] sm:$0xff] %v9442_v33  ;;  %v9446_v45 = vsel %vm1429_vm3, %v1515_v30, %v1516_v18  ;;  %v1523_v30 = vrot.slane %v8861_v7, 2  ;;  %v11571_v17 = vrot.slane %v11768_v52, 4  ;;  %v11770_v18 = vld [vmem:[#allocation10_spill] sm:$0xff] }
  0x80   :  { %6777 = vmatmul.mubr.msk.f32.gmra.mrb[60].mxu1 %vm397_vm2, %v9413_v42  ;;  %v1521_v42 = vrot.slane %v8838_v34, 2 }
  0x81   :  { %7219 = vmatmul.mubr.msk.f32.gmra.mrb[28].mxu0 %vm397_vm2, %v9419_v54  ;;  %6779 = vmatprep.mubr.msk.f32.mxu1 %vm397_vm2, %v9422_v6  ;;  %v11774_v6 = vld [vmem:[#allocation13_spill] sm:$0xff] }
  0x82   :  { %7221 = vmatprep.mubr.msk.f32.mxu0 %vm397_vm2, %v9426_v11  ;;  %v9464_v29 = vsel %vm1429_vm3, %v1520_v37, %v1521_v42  ;;  %v1525_v11 = vrot.slane %v8872_v24, 2  ;;  %v9479_v7 = vsel %vm1429_vm3, %v1521_v42, %v1523_v30  ;;  %v11772_v42 = vld [vmem:[#allocation12_spill] sm:$0xff] }
  0x84   :  { %6780 = vmatmul.mubr.msk.f32.gmra.mrb[62].mxu1 %vm397_vm2, %v9437_v63  ;;  %v11769_v63 = vld [vmem:[#allocation9_spill] sm:$0xff] }
  0x85   :  { %7222 = vmatmul.mubr.msk.f32.gmra.mrb[30].mxu0 %vm397_vm2, %v9442_v33  ;;  %6784 = vmatprep.mubr.msk.f32.mxu1 %vm397_vm2, %v11767_v57  ;;  %v1526_v33 = vrot.slane %v8877_v36, 2  ;;  %v1531_v57 = vrot.slane %v8919_v50, 2 }
  0x86   :  { %7224 = vmatprep.mubr.msk.f32.mxu0 %vm397_vm2, %v9446_v45 }
  0x87   :  { %v9483_v37 = vsel %vm1429_vm3, %v1525_v11, %v1526_v33  ;;  %v9499_v2 = vsel %vm1429_vm3, %v1526_v33, %v1528_v51  ;;  %v1533_v11 = vrot.slane %v8948_v20, 2  ;;  %v1538_v33 = vrot.slane %v8989_v32, 2 }
  0x88   :  { %6785 = vmatmul.mubr.msk.f32.vlgmr.msra.gmra.mrb[0].mxu1 %vm397_vm2, %v11769_v63  ;;  %v1530_v63 = vrot.slane %v8914_v28, 2 }
  0x89   :  { %7225 = vmatmul.mubr.msk.f32.gmra.mrb[32].mxu0 %vm397_vm2, %v9459_v15  ;;  %6881 = vmatpush3.msk.msra.mxu1 %vm526_vm0, %v11768_v52  ;;  %v9516_v20 = vsel %vm1429_vm3, %v1531_v57, %v1533_v11  ;;  %v1545_v11 = vrot.slane %v9040_v23, 2 }
  0x8a   :  { %6787 = vmatprep.mubr.msk.f32.mxu1 %vm397_vm2, %v11770_v18  ;;  %7227 = vmatprep.mubr.msk.f32.mxu0 %vm397_vm2, %v9464_v29  ;;  %v11771_v18 = vld [vmem:[#allocation11_spill] sm:$0xff]  ;;  %v9503_v30 = vsel %vm1429_vm3, %v1530_v63, %v1531_v57  ;;  %v1540_v63 = vrot.slane %v8999_v47, 2 }
  0x8b   :  { %6978 = vmatprep.subr.msk.mxu1 %vm526_vm0, %v11571_v17  ;;  %11773 = vst [vmem:[#allocation8_spill] sm:$0xff] %v9503_v30  ;;  %v1535_v17 = vrot.slane %v8958_v38, 2 }
  0x8c   :  { %6788 = vmatmul.mubr.msk.f32.gmra.mrb[2].mxu1 %vm397_vm2, %v11771_v18  ;;  %v1536_v18 = vrot.slane %v8963_v58, 2 }
  0x8d   :  { %7228 = vmatmul.mubr.msk.f32.gmra.mrb[34].mxu0 %vm397_vm2, %v9479_v7  ;;  %6790 = vmatprep.mubr.msk.f32.mxu1 %vm397_vm2, %v11772_v42  ;;  %v11775_v42 = vld [vmem:[#allocation14_spill] sm:$0xff] }
  0x8e   :  { %7230 = vmatprep.mubr.msk.f32.mxu0 %vm397_vm2, %v9483_v37  ;;  %v9520_v51 = vsel %vm1429_vm3, %v1535_v17, %v1536_v18  ;;  %v9533_v32 = vsel %vm1429_vm3, %v1536_v18, %v1538_v33  ;;  %v1543_v17 = vrot.slane %v9030_v60, 2  ;;  %v1548_v18 = vrot.slane %v9071_v53, 2 }
  0x90   :  { %6791 = vmatmul.mubr.msk.f32.gmra.mrb[4].mxu1 %vm397_vm2, %v11774_v6  ;;  %v1541_v6 = vrot.slane %v9004_v21, 2 }
  0x91   :  { %7231 = vmatmul.mubr.msk.f32.gmra.mrb[36].mxu0 %vm397_vm2, %v9499_v2  ;;  %6793 = vmatprep.mubr.msk.f32.mxu1 %vm397_vm2, %v8311_v22  ;;  %v11776_v22 = vld [vmem:[#allocation15_spill] sm:$0xff] }
  0x92   :  { %7233 = vmatprep.mubr.msk.f32.mxu0 %vm397_vm2, %v9503_v30  ;;  %v9537_v57 = vsel %vm1429_vm3, %v1540_v63, %v1541_v6  ;;  %v11778_v30 = vld [vmem:[#allocation16_spill] sm:$0xff]  ;;  %v9550_v60 = vsel %vm1429_vm3, %v1541_v6, %v1543_v17  ;;  %v1550_v63 = vrot.slane %v9081_v0, 2  ;;  %v1553_v6 = vrot.slane %v9112_v41, 2 }
  0x93   :  { %11777 = vst [vmem:[#allocation50_spill] sm:$0xff] %v9537_v57 }
  0x94   :  { %6794 = vmatmul.mubr.msk.f32.gmra.mrb[6].mxu1 %vm397_vm2, %v11775_v42  ;;  %v1546_v42 = vrot.slane %v9045_v13, 2 }
  0x95   :  { %7234 = vmatmul.mubr.msk.f32.gmra.mrb[38].mxu0 %vm397_vm2, %v9516_v20  ;;  %6796 = vmatprep.mubr.msk.f32.mxu1 %vm397_vm2, %v11776_v22  ;;  %v11780_v22 = vld [vmem:[#allocation20_spill] sm:$0xff] }
  0x96   :  { %7236 = vmatprep.mubr.msk.f32.mxu0 %vm397_vm2, %v9520_v51  ;;  %v9554_v33 = vsel %vm1429_vm3, %v1545_v11, %v1546_v42  ;;  %v9567_v53 = vsel %vm1429_vm3, %v1546_v42, %v1548_v18  ;;  %v1555_v11 = vrot.slane %v9122_v48, 2  ;;  %v1558_v42 = vrot.slane %v9153_v62, 2 }
  0x97   :  { %11779 = vst [vmem:[#allocation9_spill] sm:$0xff] %v9554_v33  ;;  %11782 = vst [vmem:[#allocation10_spill] sm:$0xff] %v9567_v53 }
  0x98   :  { %6797 = vmatmul.mubr.msk.f32.gmra.mrb[8].mxu1 %vm397_vm2, %v11778_v30  ;;  %v1551_v30 = vrot.slane %v9086_v16, 2 }
  0x99   :  { %7237 = vmatmul.mubr.msk.f32.gmra.mrb[40].mxu0 %vm397_vm2, %v9533_v32  ;;  %6799 = vmatprep.mubr.msk.f32.mxu1 %vm397_vm2, %v8370_v40  ;;  %v11781_v40 = vld [vmem:[#allocation23_spill] sm:$0xff] }
  0x9a   :  { %7239 = vmatprep.mubr.msk.f32.mxu0 %vm397_vm2, %v9537_v57  ;;  %v9571_v17 = vsel %vm1429_vm3, %v1550_v63, %v1551_v30  ;;  %v11784_v57 = vld [vmem:[#allocation24_spill] sm:$0xff]  ;;  %v9584_v41 = vsel %vm1429_vm3, %v1551_v30, %v1553_v6  ;;  %v1560_v63 = vrot.slane %v9163_v26, 2  ;;  %v1563_v30 = vrot.slane %v9194_v56, 2 }
  0x9b   :  { %11783 = vst [vmem:[#allocation11_spill] sm:$0xff] %v9571_v17  ;;  %11786 = vst [vmem:[#allocation12_spill] sm:$0xff] %v9584_v41 }
  0x9c   :  { %6800 = vmatmul.mubr.msk.f32.gmra.mrb[10].mxu1 %vm397_vm2, %v11780_v22  ;;  %v1556_v22 = vrot.slane %v9127_v61, 2 }
  0x9d   :  { %7240 = vmatmul.mubr.msk.f32.gmra.mrb[42].mxu0 %vm397_vm2, %v9550_v60  ;;  %6802 = vmatprep.mubr.msk.f32.mxu1 %vm397_vm2, %v11781_v40  ;;  %v11785_v40 = vld [vmem:[#allocation27_spill] sm:$0xff] }
  0x9e   :  { %7242 = vmatprep.mubr.msk.f32.mxu0 %vm397_vm2, %v9554_v33  ;;  %v9588_v18 = vsel %vm1429_vm3, %v1555_v11, %v1556_v22  ;;  %v11788_v33 = vld [vmem:[#allocation28_spill] sm:$0xff]  ;;  %v9601_v62 = vsel %vm1429_vm3, %v1556_v22, %v1558_v42  ;;  %v1565_v11 = vrot.slane %v9204_v1, 2  ;;  %v1568_v22 = vrot.slane %v9235_v19, 2 }
  0x9f   :  { %11787 = vst [vmem:[#allocation13_spill] sm:$0xff] %v9588_v18  ;;  %11790 = vst [vmem:[#allocation14_spill] sm:$0xff] %v9601_v62 }
  0xa0   :  { %6803 = vmatmul.mubr.msk.f32.gmra.mrb[12].mxu1 %vm397_vm2, %v11784_v57  ;;  %v1561_v57 = vrot.slane %v9168_v31, 2 }
  0xa1   :  { %7243 = vmatmul.mubr.msk.f32.gmra.mrb[44].mxu0 %vm397_vm2, %v9567_v53  ;;  %6805 = vmatprep.mubr.msk.f32.mxu1 %vm397_vm2, %v11785_v40  ;;  %v11789_v40 = vld [vmem:[#allocation32_spill] sm:$0xff] }
  0xa2   :  { %7245 = vmatprep.mubr.msk.f32.mxu0 %vm397_vm2, %v9571_v17  ;;  %v9605_v6 = vsel %vm1429_vm3, %v1560_v63, %v1561_v57  ;;  %v11792_v17 = vld [vmem:[#allocation33_spill] sm:$0xff]  ;;  %v9618_v56 = vsel %vm1429_vm3, %v1561_v57, %v1563_v30  ;;  %v1570_v63 = vrot.slane %v9245_v8, 2  ;;  %v1573_v57 = vrot.slane %v9276_v14, 2 }
  0xa3   :  { %11791 = vst [vmem:[#allocation15_spill] sm:$0xff] %v9605_v6  ;;  %11794 = vst [vmem:[#allocation16_spill] sm:$0xff] %v9618_v56 }
  0xa4   :  { %6806 = vmatmul.mubr.msk.f32.gmra.mrb[14].mxu1 %vm397_vm2, %v11788_v33  ;;  %v1566_v33 = vrot.slane %v9209_v59, 2 }
  0xa5   :  { %7246 = vmatmul.mubr.msk.f32.gmra.mrb[46].mxu0 %vm397_vm2, %v9584_v41  ;;  %6808 = vmatprep.mubr.msk.f32.mxu1 %vm397_vm2, %v11789_v40  ;;  %v11793_v40 = vld [vmem:[#allocation36_spill] sm:$0xff] }
  0xa6   :  { %7248 = vmatprep.mubr.msk.f32.mxu0 %vm397_vm2, %v9588_v18  ;;  %v9622_v42 = vsel %vm1429_vm3, %v1565_v11, %v1566_v33  ;;  %v11796_v18 = vld [vmem:[#allocation37_spill] sm:$0xff]  ;;  %v9635_v19 = vsel %vm1429_vm3, %v1566_v33, %v1568_v22  ;;  %v1575_v11 = vrot.slane %v9286_v27, 2  ;;  %v1578_v33 = vrot.slane %v9317_v39, 2 }
  0xa7   :  { %11795 = vst [vmem:[#allocation20_spill] sm:$0xff] %v9622_v42  ;;  %11798 = vst [vmem:[#allocation23_spill] sm:$0xff] %v9635_v19 }
  0xa8   :  { %6809 = vmatmul.mubr.msk.f32.gmra.mrb[16].mxu1 %vm397_vm2, %v11792_v17  ;;  %v1571_v17 = vrot.slane %v9250_v49, 2 }
  0xa9   :  { %7249 = vmatmul.mubr.msk.f32.gmra.mrb[48].mxu0 %vm397_vm2, %v9601_v62  ;;  %6811 = vmatprep.mubr.msk.f32.mxu1 %vm397_vm2, %v11793_v40  ;;  %v11797_v40 = vld [vmem:[#allocation40_spill] sm:$0xff] }
  0xaa   :  { %7251 = vmatprep.mubr.msk.f32.mxu0 %vm397_vm2, %v9605_v6  ;;  %v9639_v30 = vsel %vm1429_vm3, %v1570_v63, %v1571_v17  ;;  %v11800_v6 = vld [vmem:[#allocation41_spill] sm:$0xff]  ;;  %v9652_v14 = vsel %vm1429_vm3, %v1571_v17, %v1573_v57  ;;  %v1580_v63 = vrot.slane %v9327_v5, 2  ;;  %v1583_v17 = vrot.slane %v9358_v46, 2 }
  0xab   :  { %11799 = vst [vmem:[#allocation24_spill] sm:$0xff] %v9639_v30  ;;  %11802 = vst [vmem:[#allocation27_spill] sm:$0xff] %v9652_v14  ;;  %v11809_v46 = vld [vmem:[#allocation53_spill] sm:$0xff] }
  0xac   :  { %6812 = vmatmul.mubr.msk.f32.gmra.mrb[18].mxu1 %vm397_vm2, %v11796_v18  ;;  %v1576_v18 = vrot.slane %v9291_v35, 2 }
  0xad   :  { %7252 = vmatmul.mubr.msk.f32.gmra.mrb[50].mxu0 %vm397_vm2, %v9618_v56  ;;  %6814 = vmatprep.mubr.msk.f32.mxu1 %vm397_vm2, %v11797_v40  ;;  %v11801_v40 = vld [vmem:[#allocation44_spill] sm:$0xff] }
  0xae   :  { %7254 = vmatprep.mubr.msk.f32.mxu0 %vm397_vm2, %v9622_v42  ;;  %v9656_v22 = vsel %vm1429_vm3, %v1575_v11, %v1576_v18  ;;  %v11804_v42 = vld [vmem:[#allocation45_spill] sm:$0xff]  ;;  %v9669_v39 = vsel %vm1429_vm3, %v1576_v18, %v1578_v33  ;;  %v1585_v11 = vrot.slane %v9368_v10, 2  ;;  %v9687_v18 = vld [vmem:[%s11383_s0 + $0x338] sm:$0xff]  ;;  %v1588_v33 = vrot.slane %v9399_v55, 2 }
  0xaf   :  { %11803 = vst [vmem:[#allocation28_spill] sm:$0xff] %v9656_v22  ;;  %11806 = vst [vmem:[#allocation32_spill] sm:$0xff] %v9669_v39 }
  0xb0   :  { %6815 = vmatmul.mubr.msk.f32.gmra.mrb[20].mxu1 %vm397_vm2, %v11800_v6  ;;  %v1581_v6 = vrot.slane %v9332_v3, 2 }
  0xb1   :  { %7255 = vmatmul.mubr.msk.f32.gmra.mrb[52].mxu0 %vm397_vm2, %v9635_v19  ;;  %6817 = vmatprep.mubr.msk.f32.mxu1 %vm397_vm2, %v11801_v40  ;;  %v11805_v40 = vld [vmem:[#allocation48_spill] sm:$0xff] }
  0xb2   :  { %7257 = vmatprep.mubr.msk.f32.mxu0 %vm397_vm2, %v9639_v30  ;;  %v9673_v57 = vsel %vm1429_vm3, %v1580_v63, %v1581_v6  ;;  %v11808_v30 = vld [vmem:[#allocation49_spill] sm:$0xff] }
  0xb3   :  { %11807 = vst [vmem:[#allocation33_spill] sm:$0xff] %v9673_v57 }
  0xb4   :  { %6818 = vmatmul.mubr.msk.f32.gmra.mrb[22].mxu1 %vm397_vm2, %v11804_v42  ;;  %v1586_v42 = vrot.slane %v9373_v12, 2 }
  0xb5   :  { %7258 = vmatmul.mubr.msk.f32.gmra.mrb[54].mxu0 %vm397_vm2, %v9652_v14  ;;  %6820 = vmatprep.mubr.msk.f32.mxu1 %vm397_vm2, %v11805_v40  ;;  %v9682_v40 = vld [vmem:[%s11383_s0 + $0x330] sm:$0xff]  ;;  %v3112_v14 = vrot.slane %v9687_v18, 2 }
  0xb6   :  { %7260 = vmatprep.mubr.msk.f32.mxu0 %vm397_vm2, %v9656_v22  ;;  %v9700_v63 = vsel %vm1429_vm3, %v1585_v11, %v1586_v42  ;;  %v3111_v22 = vrot.slane %v9682_v40, 2  ;;  %v9718_v55 = vsel %vm1429_vm3, %v1586_v42, %v1588_v33  ;;  %v11820_v33 = vld [vmem:[#allocation62_spill] sm:$0xff] }
  0xb7   :  { %11811 = vst [vmem:[#allocation37_spill] sm:$0xff] %v9700_v63  ;;  %11815 = vst [vmem:[#allocation41_spill] sm:$0xff] %v9718_v55 }
  0xb8   :  { %6821 = vmatmul.mubr.msk.f32.gmra.mrb[24].mxu1 %vm397_vm2, %v11808_v30  ;;  %v9696_v30 = vsel %vm1429_vm3, %v1581_v6, %v1583_v17  ;;  %v11814_v6 = vld [vmem:[#allocation57_spill] sm:$0xff]  ;;  %v9722_v11 = vsel %vm1429_vm3, %v3111_v22, %v3112_v14  ;;  %v11821_v22 = vld [vmem:[#allocation68_spill] sm:$0xff] }
  0xb9   :  { %7261 = vmatmul.mubr.msk.f32.gmra.mrb[56].mxu0 %vm397_vm2, %v9669_v39  ;;  %6823 = vmatprep.mubr.msk.f32.mxu1 %vm397_vm2, %v11809_v46  ;;  %11810 = vst [vmem:[#allocation36_spill] sm:$0xff] %v9696_v30  ;;  %v9707_v39 = vld [vmem:[%s11383_s0 + $0x340] sm:$0x3]  ;;  %v11813_v46 = vld [vmem:[#allocation54_spill] sm:$0xff]  ;;  %11816 = vst [vmem:[#allocation44_spill] sm:$0xff] %v9722_v11 }
  0xba   :  { %7263 = vmatprep.mubr.msk.f32.mxu0 %vm397_vm2, %v9673_v57  ;;  %11812 = vst [vmem:[#allocation40_spill] sm:$0xff] %v9707_v39  ;;  %v3114_v17 = vrot.slane %v9707_v39, 2  ;;  %v11817_v57 = vld [vmem:[#allocation58_spill] sm:$0xff]  ;;  %v9844_v39 = vld [vmem:[%s11383_s0 + $0xa8] sm:$0xff] }
  0xbc   :  { %6824 = vmatmul.mubr.msk.f32.gmra.mrb[26].mxu1 %vm397_vm2, %v11813_v46  ;;  %v11818_v46 = vld [vmem:[#allocation61_spill] sm:$0xff]  ;;  %v9733_v42 = vsel %vm1429_vm3, %v3112_v14, %v3114_v17  ;;  %v9753_v14 = vld [vmem:[%s11383_s0 + $0x38] sm:$0xff]  ;;  %v9762_v17 = vld [vmem:[%s11384_s1 + $0x20] sm:$0xf] }
  0xbd   :  { %7264 = vmatmul.mubr.msk.f32.gmra.mrb[58].mxu0 %vm397_vm2, %v9696_v30  ;;  %6826 = vmatprep.mubr.msk.f32.mxu1 %vm397_vm2, %v11814_v6  ;;  %11819 = vst [vmem:[#allocation45_spill] sm:$0xff] %v9733_v42  ;;  %v11822_v6 = vld [vmem:[#allocation69_spill] sm:$0xff]  ;;  %11831 = vst [vmem:[#allocation61_spill] sm:$0xff] %v9844_v39 }
  0xbe   :  { %7266 = vmatprep.mubr.msk.f32.mxu0 %vm397_vm2, %v9700_v63 }
  0xc0   :  { %6827 = vmatmul.mubr.msk.f32.gmra.mrb[28].mxu1 %vm397_vm2, %v11817_v57  ;;  %v9744_v57 = vld [vmem:[%s11383_s0 + $0x30] sm:$0xff] }
  0xc1   :  { %7267 = vmatmul.mubr.msk.f32.gmra.mrb[60].mxu0 %vm397_vm2, %v9718_v55  ;;  %6829 = vmatprep.mubr.msk.f32.mxu1 %vm397_vm2, %v11818_v46  ;;  %v11823_v46 = vld [vmem:[#allocation30_spill] sm:$0xff] }
  0xc2   :  { %7269 = vmatprep.mubr.msk.f32.mxu0 %vm397_vm2, %v9722_v11  ;;  %v9835_v11 = vld [vmem:[%s11383_s0 + $0x98] sm:$0xff] }
  0xc3   :  { %11830 = vst [vmem:[#allocation58_spill] sm:$0xff] %v9835_v11 }
  0xc4   :  { %6830 = vmatmul.mubr.msk.f32.gmra.mrb[30].mxu1 %vm397_vm2, %v11820_v33  ;;  %v11824_v33 = vrot.slane %v11823_v46, 4  ;;  %v9808_v46 = vld [vmem:[%s11383_s0 + $0x78] sm:$0xff] }
  0xc5   :  { %7270 = vmatmul.mubr.msk.f32.gmra.mrb[62].mxu0 %vm397_vm2, %v9733_v42  ;;  %6832 = vmatprep.mubr.msk.f32.mxu1 %vm397_vm2, %v11821_v22  ;;  %v9770_v22 = vld [vmem:[%s11383_s0 + $0x48] sm:$0xff]  ;;  %11827 = vst [vmem:[#allocation53_spill] sm:$0xff] %v9808_v46  ;;  %v9826_v42 = vld [vmem:[%s11383_s0 + $0x90] sm:$0xff] }
  0xc6   :  { %7274 = vmatprep.mubr.msk.f32.mxu0 %vm397_vm2, %v9744_v57  ;;  %11829 = vst [vmem:[#allocation57_spill] sm:$0xff] %v9826_v42 }
  0xc8   :  { %6833 = vmatmul.mubr.msk.f32.gmra.mrb[32].mxu1 %vm397_vm2, %v11822_v6  ;;  %v9790_v6 = vld [vmem:[%s11383_s0 + $0x60] sm:$0xff] }
  0xc9   :  { %7275 = vmatmul.mubr.msk.f32.vlgmr.msra.gmra.mrb[0].mxu0 %vm397_vm2, %v9753_v14  ;;  %6835 = vmatprep.mubr.msk.f32.mxu1 %vm397_vm2, %v8798_v44  ;;  %v9781_v44 = vld [vmem:[%s11383_s0 + $0x50] sm:$0xff]  ;;  %11825 = vst [vmem:[#allocation48_spill] sm:$0xff] %v9790_v6 }
  0xca   :  { %7371 = vmatpush3.msk.msra.mxu0 %vm526_vm0, %v11824_v33  ;;  %7277 = vmatprep.mubr.msk.f32.mxu0 %vm397_vm2, %v9770_v22  ;;  %v9817_v33 = vld [vmem:[%s11383_s0 + $0x80] sm:$0xff] }
  0xcb   :  { %7468 = vmatprep.subr.msk.mxu0 %vm526_vm0, %v9762_v17  ;;  %11828 = vst [vmem:[#allocation54_spill] sm:$0xff] %v9817_v33 }
  0xcc   :  { %6836 = vmatmul.mubr.msk.f32.gmra.mrb[34].mxu1 %vm397_vm2, %v11764_v43  ;;  %v9799_v43 = vld [vmem:[%s11383_s0 + $0x68] sm:$0xff] }
  0xcd   :  { %7278 = vmatmul.mubr.msk.f32.gmra.mrb[2].mxu0 %vm397_vm2, %v9781_v44  ;;  %6838 = vmatprep.mubr.msk.f32.mxu1 %vm397_vm2, %v8833_v4  ;;  %11826 = vst [vmem:[#allocation49_spill] sm:$0xff] %v9799_v43 }
  0xce   :  { %7280 = vmatprep.mubr.msk.f32.mxu0 %vm397_vm2, %v9790_v6  ;;  %v11851_v6 = vld [vmem:[#allocation74_spill] sm:$0xff] }
  0xd0   :  { %6839 = vmatmul.mubr.msk.f32.gmra.mrb[36].mxu1 %vm397_vm2, %v8838_v34 }
  0xd1   :  { %7281 = vmatmul.mubr.msk.f32.gmra.mrb[4].mxu0 %vm397_vm2, %v9799_v43  ;;  %6841 = vmatprep.mubr.msk.f32.mxu1 %vm397_vm2, %v8872_v24 }
  0xd2   :  { %7283 = vmatprep.mubr.msk.f32.mxu0 %vm397_vm2, %v9808_v46 }
  0xd4   :  { %6842 = vmatmul.mubr.msk.f32.gmra.mrb[38].mxu1 %vm397_vm2, %v8877_v36 }
  0xd5   :  { %7284 = vmatmul.mubr.msk.f32.gmra.mrb[6].mxu0 %vm397_vm2, %v9817_v33  ;;  %6844 = vmatprep.mubr.msk.f32.mxu1 %vm397_vm2, %v8914_v28  ;;  %v8114_v33 = vld [vmem:[%s11383_s0 + $0x8] sm:$0xff] }
  0xd6   :  { %7286 = vmatprep.mubr.msk.f32.mxu0 %vm397_vm2, %v9826_v42  ;;  %v9853_v42 = vld [vmem:[%s11383_s0 + $0xb0] sm:$0xff]  ;;  %v1431_v46 = vrot.slane %v8114_v33, 2  ;;  %v10035_v33 = vld [vmem:[%s11383_s0 + $0x1a0] sm:$0xff] }
  0xd7   :  { %11832 = vst [vmem:[#allocation62_spill] sm:$0xff] %v9853_v42 }
  0xd8   :  { %6845 = vmatmul.mubr.msk.f32.gmra.mrb[40].mxu1 %vm397_vm2, %v8919_v50 }
  0xd9   :  { %7287 = vmatmul.mubr.msk.f32.gmra.mrb[8].mxu0 %vm397_vm2, %v9835_v11  ;;  %6847 = vmatprep.mubr.msk.f32.mxu1 %vm397_vm2, %v8958_v38  ;;  %v9862_v11 = vld [vmem:[%s11383_s0 + $0xc0] sm:$0xff] }
  0xda   :  { %7289 = vmatprep.mubr.msk.f32.mxu0 %vm397_vm2, %v9844_v39  ;;  %11833 = vst [vmem:[#allocation68_spill] sm:$0xff] %v9862_v11  ;;  %v9871_v39 = vld [vmem:[%s11383_s0 + $0xc8] sm:$0xff] }
  0xdb   :  { %11834 = vst [vmem:[#allocation69_spill] sm:$0xff] %v9871_v39 }
  0xdc   :  { %6848 = vmatmul.mubr.msk.f32.gmra.mrb[42].mxu1 %vm397_vm2, %v8963_v58 }
  0xdd   :  { %7290 = vmatmul.mubr.msk.f32.gmra.mrb[10].mxu0 %vm397_vm2, %v9853_v42  ;;  %6850 = vmatprep.mubr.msk.f32.mxu1 %vm397_vm2, %v8999_v47  ;;  %v9880_v42 = vld [vmem:[%s11383_s0 + $0xd8] sm:$0xff] }
  0xde   :  { %7292 = vmatprep.mubr.msk.f32.mxu0 %vm397_vm2, %v9862_v11  ;;  %11835 = vst [vmem:[#allocation30_spill] sm:$0xff] %v9880_v42  ;;  %v9889_v11 = vld [vmem:[%s11383_s0 + $0xe0] sm:$0xff] }
  0xdf   :  { %11836 = vst [vmem:[#allocation133_spill] sm:$0xff] %v9889_v11 }
  0xe0   :  { %6851 = vmatmul.mubr.msk.f32.gmra.mrb[44].mxu1 %vm397_vm2, %v9004_v21 }
  0xe1   :  { %7293 = vmatmul.mubr.msk.f32.gmra.mrb[12].mxu0 %vm397_vm2, %v9871_v39  ;;  %6853 = vmatprep.mubr.msk.f32.mxu1 %vm397_vm2, %v9040_v23  ;;  %v9898_v39 = vld [vmem:[%s11383_s0 + $0xf0] sm:$0xff] }
  0xe2   :  { %7295 = vmatprep.mubr.msk.f32.mxu0 %vm397_vm2, %v9880_v42  ;;  %11837 = vst [vmem:[#allocation134_spill] sm:$0xff] %v9898_v39  ;;  %v9907_v42 = vld [vmem:[%s11383_s0 + $0xf8] sm:$0xff] }
  0xe3   :  { %11838 = vst [vmem:[#allocation135_spill] sm:$0xff] %v9907_v42 }
  0xe4   :  { %6854 = vmatmul.mubr.msk.f32.gmra.mrb[46].mxu1 %vm397_vm2, %v9045_v13 }
  0xe5   :  { %7296 = vmatmul.mubr.msk.f32.gmra.mrb[14].mxu0 %vm397_vm2, %v9889_v11  ;;  %6856 = vmatprep.mubr.msk.f32.mxu1 %vm397_vm2, %v9081_v0  ;;  %v9916_v11 = vld [vmem:[%s11383_s0 + $0x108] sm:$0xff] }
  0xe6   :  { %7298 = vmatprep.mubr.msk.f32.mxu0 %vm397_vm2, %v9898_v39  ;;  %11839 = vst [vmem:[#allocation136_spill] sm:$0xff] %v9916_v11  ;;  %v9925_v39 = vld [vmem:[%s11383_s0 + $0x110] sm:$0xff] }
  0xe7   :  { %11840 = vst [vmem:[#allocation137_spill] sm:$0xff] %v9925_v39 }
  0xe8   :  { %6857 = vmatmul.mubr.msk.f32.gmra.mrb[48].mxu1 %vm397_vm2, %v9086_v16 }
  0xe9   :  { %7299 = vmatmul.mubr.msk.f32.gmra.mrb[16].mxu0 %vm397_vm2, %v9907_v42  ;;  %6859 = vmatprep.mubr.msk.f32.mxu1 %vm397_vm2, %v9122_v48  ;;  %v9934_v42 = vld [vmem:[%s11383_s0 + $0x120] sm:$0xff] }
  0xea   :  { %7301 = vmatprep.mubr.msk.f32.mxu0 %vm397_vm2, %v9916_v11  ;;  %11841 = vst [vmem:[#allocation138_spill] sm:$0xff] %v9934_v42  ;;  %v9943_v11 = vld [vmem:[%s11383_s0 + $0x128] sm:$0xff] }
  0xeb   :  { %11842 = vst [vmem:[#allocation139_spill] sm:$0xff] %v9943_v11 }
  0xec   :  { %6860 = vmatmul.mubr.msk.f32.gmra.mrb[50].mxu1 %vm397_vm2, %v9127_v61 }
  0xed   :  { %7302 = vmatmul.mubr.msk.f32.gmra.mrb[18].mxu0 %vm397_vm2, %v9925_v39  ;;  %6862 = vmatprep.mubr.msk.f32.mxu1 %vm397_vm2, %v9163_v26  ;;  %v9952_v39 = vld [vmem:[%s11383_s0 + $0x138] sm:$0xff] }
  0xee   :  { %7304 = vmatprep.mubr.msk.f32.mxu0 %vm397_vm2, %v9934_v42  ;;  %11843 = vst [vmem:[#allocation140_spill] sm:$0xff] %v9952_v39  ;;  %v9961_v42 = vld [vmem:[%s11383_s0 + $0x140] sm:$0xff] }
  0xef   :  { %11844 = vst [vmem:[#allocation141_spill] sm:$0xff] %v9961_v42 }
  0xf0   :  { %6863 = vmatmul.mubr.msk.f32.gmra.mrb[52].mxu1 %vm397_vm2, %v9168_v31 }
  0xf1   :  { %7305 = vmatmul.mubr.msk.f32.gmra.mrb[20].mxu0 %vm397_vm2, %v9943_v11  ;;  %6865 = vmatprep.mubr.msk.f32.mxu1 %vm397_vm2, %v9204_v1  ;;  %v9970_v11 = vld [vmem:[%s11383_s0 + $0x150] sm:$0xff] }
  0xf2   :  { %7307 = vmatprep.mubr.msk.f32.mxu0 %vm397_vm2, %v9952_v39  ;;  %11845 = vst [vmem:[#allocation142_spill] sm:$0xff] %v9970_v11  ;;  %v9979_v39 = vld [vmem:[%s11383_s0 + $0x158] sm:$0xff] }
  0xf3   :  { %11846 = vst [vmem:[#allocation143_spill] sm:$0xff] %v9979_v39 }
  0xf4   :  { %6866 = vmatmul.mubr.msk.f32.gmra.mrb[54].mxu1 %vm397_vm2, %v9209_v59 }
  0xf5   :  { %7308 = vmatmul.mubr.msk.f32.gmra.mrb[22].mxu0 %vm397_vm2, %v9961_v42  ;;  %6868 = vmatprep.mubr.msk.f32.mxu1 %vm397_vm2, %v9245_v8  ;;  %v9988_v42 = vld [vmem:[%s11383_s0 + $0x168] sm:$0xff] }
  0xf6   :  { %7310 = vmatprep.mubr.msk.f32.mxu0 %vm397_vm2, %v9970_v11  ;;  %11847 = vst [vmem:[#allocation144_spill] sm:$0xff] %v9988_v42  ;;  %v9997_v11 = vld [vmem:[%s11383_s0 + $0x170] sm:$0xff] }
  0xf7   :  { %11848 = vst [vmem:[#allocation145_spill] sm:$0xff] %v9997_v11 }
  0xf8   :  { %6869 = vmatmul.mubr.msk.f32.gmra.mrb[56].mxu1 %vm397_vm2, %v9250_v49 }
  0xf9   :  { %7311 = vmatmul.mubr.msk.f32.gmra.mrb[24].mxu0 %vm397_vm2, %v9979_v39  ;;  %6871 = vmatprep.mubr.msk.f32.mxu1 %vm397_vm2, %v9286_v27 }
  0xfa   :  { %7313 = vmatprep.mubr.msk.f32.mxu0 %vm397_vm2, %v9988_v42  ;;  %v8113_v42 = vld [vmem:[%s11383_s0] sm:$0xff] }
  0xfb   :  { %v1430_v39 = vrot.slane %v8113_v42, 2  ;;  %v10024_v42 = vld [vmem:[%s11383_s0 + $0x188] sm:$0xff] }
  0xfc   :  { %6872 = vmatmul.mubr.msk.f32.gmra.mrb[58].mxu1 %vm397_vm2, %v9291_v35  ;;  %11849 = vst [vmem:[#allocation146_spill] sm:$0xff] %v10024_v42 }
  0xfd   :  { %7314 = vmatmul.mubr.msk.f32.gmra.mrb[26].mxu0 %vm397_vm2, %v9997_v11  ;;  %6874 = vmatprep.mubr.msk.f32.mxu1 %vm397_vm2, %v9327_v5  ;;  %v10014_v11 = vld [vmem:[%s11383_s0 + $0x198] sm:$0xff] }
  0xfe   :  { %7316 = vmatprep.mubr.msk.f32.mxu0 %vm397_vm2, %v8736_v9  ;;  %v8115_v9 = vld [vmem:[%s11383_s0 + $0x10] sm:$0x3] }
  0xff   :  { %v1433_v43 = vrot.slane %v8115_v9, 2  ;;  %v1432_v9 = vsel %vm1429_vm3, %v1430_v39, %v1431_v46  ;;  %v11850_v39 = vrot.slane %v11768_v52, 4  ;;  %v11855_v52 = vld [vmem:[#allocation81_spill] sm:$0xff] }
 0x100   :  { %6875 = vmatmul.mubr.msk.f32.gmra.mrb[60].mxu1 %vm397_vm2, %v9332_v3 }
 0x101   :  { %7317 = vmatmul.mubr.msk.f32.gmra.mrb[28].mxu0 %vm397_vm2, %v10024_v42  ;;  %6877 = vmatprep.mubr.msk.f32.mxu1 %vm397_vm2, %v9368_v10  ;;  %v1434_v42 = vsel %vm1429_vm3, %v1431_v46, %v1433_v43  ;;  %v10059_v43 = vld [vmem:[%s11384_s1 + $0x10] sm:$0xff] }
 0x102   :  { %7319 = vmatprep.mubr.msk.f32.mxu0 %vm397_vm2, %v10014_v11 }
 0x104   :  { %6878 = vmatmul.mubr.msk.f32.gmra.mrb[62].mxu1 %vm397_vm2, %v9373_v12 }
 0x105   :  { %7320 = vmatmul.mubr.msk.f32.gmra.mrb[30].mxu0 %vm397_vm2, %v10035_v33  ;;  %6882 = vmatprep.mubr.msk.f32.mxu1 %vm397_vm2, %v1432_v9  ;;  %v8120_v9 = vld [vmem:[%s11383_s0 + $0x1c0] sm:$0x3] }
 0x106   :  { %7322 = vmatprep.mubr.msk.f32.mxu0 %vm397_vm2, %v8833_v4  ;;  %v11852_v4 = vld [vmem:[#allocation75_spill] sm:$0xff] }
 0x108   :  { %6883 = vmatmul.mubr.msk.f32.vlgmr.msra.gmra.mrb[0].mxu1 %vm397_vm2, %v1434_v42  ;;  %v11879_v42 = vld [vmem:[#allocation127_spill] sm:$0xff] }
 0x109   :  { %7323 = vmatmul.mubr.msk.f32.gmra.mrb[32].mxu0 %vm397_vm2, %v8838_v34  ;;  %6979 = vmatpush3.msk.msra.mxu1 %vm526_vm0, %v11850_v39  ;;  %v11853_v34 = vld [vmem:[#allocation77_spill] sm:$0xff]  ;;  %v1513_v39 = vrot.slane %v8120_v9, 2 }
 0x10a   :  { %6885 = vmatprep.mubr.msk.f32.mxu1 %vm397_vm2, %v11851_v6  ;;  %7325 = vmatprep.mubr.msk.f32.mxu0 %vm397_vm2, %v8872_v24  ;;  %v11854_v24 = vld [vmem:[#allocation79_spill] sm:$0xff]  ;;  %v11881_v9 = vld [vmem:[#allocation17_spill] sm:$0xff] }
 0x10b   :  { %7566 = vmatprep.subr.msk.mxu1 %vm526_vm0, %v10059_v43  ;;  %v11856_v6 = vld [vmem:[#allocation83_spill] sm:$0xff] }
 0x10c   :  { %6886 = vmatmul.mubr.msk.f32.gmra.mrb[2].mxu1 %vm397_vm2, %v11852_v4  ;;  %v10192_v4 = vld [vmem:[%s11383_s0 + $0x350] sm:$0xff] }
 0x10d   :  { %7326 = vmatmul.mubr.msk.f32.gmra.mrb[34].mxu0 %vm397_vm2, %v8877_v36  ;;  %6888 = vmatprep.mubr.msk.f32.mxu1 %vm397_vm2, %v11853_v34  ;;  %v11857_v36 = vld [vmem:[#allocation85_spill] sm:$0xff]  ;;  %11880 = vst [vmem:[#allocation75_spill] sm:$0xff] %v10192_v4 }
 0x10e   :  { %7328 = vmatprep.mubr.msk.f32.mxu0 %vm397_vm2, %v8914_v28  ;;  %v11858_v28 = vld [vmem:[#allocation87_spill] sm:$0xff] }
 0x110   :  { %6889 = vmatmul.mubr.msk.f32.gmra.mrb[4].mxu1 %vm397_vm2, %v11854_v24 }
 0x111   :  { %7329 = vmatmul.mubr.msk.f32.gmra.mrb[36].mxu0 %vm397_vm2, %v8919_v50  ;;  %6891 = vmatprep.mubr.msk.f32.mxu1 %vm397_vm2, %v11855_v52  ;;  %v11859_v50 = vld [vmem:[#allocation89_spill] sm:$0xff] }
 0x112   :  { %7331 = vmatprep.mubr.msk.f32.mxu0 %vm397_vm2, %v8958_v38  ;;  %v11860_v38 = vld [vmem:[#allocation91_spill] sm:$0xff] }
 0x114   :  { %6892 = vmatmul.mubr.msk.f32.gmra.mrb[6].mxu1 %vm397_vm2, %v11856_v6 }
 0x115   :  { %7332 = vmatmul.mubr.msk.f32.gmra.mrb[38].mxu0 %vm397_vm2, %v8963_v58  ;;  %6894 = vmatprep.mubr.msk.f32.mxu1 %vm397_vm2, %v11857_v36  ;;  %v11861_v58 = vld [vmem:[#allocation93_spill] sm:$0xff] }
 0x116   :  { %7334 = vmatprep.mubr.msk.f32.mxu0 %vm397_vm2, %v8999_v47  ;;  %v11862_v47 = vld [vmem:[#allocation95_spill] sm:$0xff] }
 0x118   :  { %6895 = vmatmul.mubr.msk.f32.gmra.mrb[8].mxu1 %vm397_vm2, %v11858_v28 }
 0x119   :  { %7335 = vmatmul.mubr.msk.f32.gmra.mrb[40].mxu0 %vm397_vm2, %v9004_v21  ;;  %6897 = vmatprep.mubr.msk.f32.mxu1 %vm397_vm2, %v11859_v50  ;;  %v11863_v21 = vld [vmem:[#allocation97_spill] sm:$0xff] }
 0x11a   :  { %7337 = vmatprep.mubr.msk.f32.mxu0 %vm397_vm2, %v9040_v23  ;;  %v11864_v23 = vld [vmem:[#allocation99_spill] sm:$0xff] }
 0x11c   :  { %6898 = vmatmul.mubr.msk.f32.gmra.mrb[10].mxu1 %vm397_vm2, %v11860_v38 }
 0x11d   :  { %7338 = vmatmul.mubr.msk.f32.gmra.mrb[42].mxu0 %vm397_vm2, %v9045_v13  ;;  %6900 = vmatprep.mubr.msk.f32.mxu1 %vm397_vm2, %v11861_v58  ;;  %v11865_v13 = vld [vmem:[#allocation101_spill] sm:$0xff] }
 0x11e   :  { %7340 = vmatprep.mubr.msk.f32.mxu0 %vm397_vm2, %v9081_v0  ;;  %v11866_v0 = vld [vmem:[#allocation103_spill] sm:$0xff] }
 0x120   :  { %6901 = vmatmul.mubr.msk.f32.gmra.mrb[12].mxu1 %vm397_vm2, %v11862_v47 }
 0x121   :  { %7341 = vmatmul.mubr.msk.f32.gmra.mrb[44].mxu0 %vm397_vm2, %v9086_v16  ;;  %6903 = vmatprep.mubr.msk.f32.mxu1 %vm397_vm2, %v11863_v21  ;;  %v11867_v16 = vld [vmem:[#allocation105_spill] sm:$0xff] }
 0x122   :  { %7343 = vmatprep.mubr.msk.f32.mxu0 %vm397_vm2, %v9122_v48  ;;  %v11868_v48 = vld [vmem:[#allocation107_spill] sm:$0xff] }
 0x124   :  { %6904 = vmatmul.mubr.msk.f32.gmra.mrb[14].mxu1 %vm397_vm2, %v11864_v23 }
 0x125   :  { %7344 = vmatmul.mubr.msk.f32.gmra.mrb[46].mxu0 %vm397_vm2, %v9127_v61  ;;  %6906 = vmatprep.mubr.msk.f32.mxu1 %vm397_vm2, %v11865_v13  ;;  %v11869_v61 = vld [vmem:[#allocation109_spill] sm:$0xff] }
 0x126   :  { %7346 = vmatprep.mubr.msk.f32.mxu0 %vm397_vm2, %v9163_v26  ;;  %v11870_v26 = vld [vmem:[#allocation111_spill] sm:$0xff] }
 0x128   :  { %6907 = vmatmul.mubr.msk.f32.gmra.mrb[16].mxu1 %vm397_vm2, %v11866_v0 }
 0x129   :  { %7347 = vmatmul.mubr.msk.f32.gmra.mrb[48].mxu0 %vm397_vm2, %v9168_v31  ;;  %6909 = vmatprep.mubr.msk.f32.mxu1 %vm397_vm2, %v11867_v16  ;;  %v11871_v31 = vld [vmem:[#allocation113_spill] sm:$0xff] }
 0x12a   :  { %7349 = vmatprep.mubr.msk.f32.mxu0 %vm397_vm2, %v9204_v1  ;;  %v11872_v1 = vld [vmem:[#allocation115_spill] sm:$0xff] }
 0x12c   :  { %6910 = vmatmul.mubr.msk.f32.gmra.mrb[18].mxu1 %vm397_vm2, %v11868_v48 }
 0x12d   :  { %7350 = vmatmul.mubr.msk.f32.gmra.mrb[50].mxu0 %vm397_vm2, %v9209_v59  ;;  %6912 = vmatprep.mubr.msk.f32.mxu1 %vm397_vm2, %v11869_v61  ;;  %v11873_v59 = vld [vmem:[#allocation117_spill] sm:$0xff] }
 0x12e   :  { %7352 = vmatprep.mubr.msk.f32.mxu0 %vm397_vm2, %v9245_v8  ;;  %v11874_v8 = vld [vmem:[#allocation119_spill] sm:$0xff] }
 0x130   :  { %6913 = vmatmul.mubr.msk.f32.gmra.mrb[20].mxu1 %vm397_vm2, %v11870_v26 }
 0x131   :  { %7353 = vmatmul.mubr.msk.f32.gmra.mrb[52].mxu0 %vm397_vm2, %v9250_v49  ;;  %6915 = vmatprep.mubr.msk.f32.mxu1 %vm397_vm2, %v11871_v31  ;;  %v11875_v49 = vld [vmem:[#allocation121_spill] sm:$0xff] }
 0x132   :  { %7355 = vmatprep.mubr.msk.f32.mxu0 %vm397_vm2, %v9286_v27  ;;  %v11876_v27 = vld [vmem:[#allocation123_spill] sm:$0xff] }
 0x134   :  { %6916 = vmatmul.mubr.msk.f32.gmra.mrb[22].mxu1 %vm397_vm2, %v11872_v1 }
 0x135   :  { %7356 = vmatmul.mubr.msk.f32.gmra.mrb[54].mxu0 %vm397_vm2, %v9291_v35  ;;  %6918 = vmatprep.mubr.msk.f32.mxu1 %vm397_vm2, %v11873_v59  ;;  %v11877_v35 = vld [vmem:[#allocation125_spill] sm:$0xff] }
 0x136   :  { %7358 = vmatprep.mubr.msk.f32.mxu0 %vm397_vm2, %v9327_v5  ;;  %v8118_v5 = vld [vmem:[%s11383_s0 + $0x1b0] sm:$0xff] }
 0x138   :  { %6919 = vmatmul.mubr.msk.f32.gmra.mrb[24].mxu1 %vm397_vm2, %v11874_v8 }
 0x139   :  { %7359 = vmatmul.mubr.msk.f32.gmra.mrb[56].mxu0 %vm397_vm2, %v9332_v3  ;;  %6921 = vmatprep.mubr.msk.f32.mxu1 %vm397_vm2, %v11875_v49  ;;  %v1510_v3 = vrot.slane %v8118_v5, 2 }
 0x13a   :  { %7361 = vmatprep.mubr.msk.f32.mxu0 %vm397_vm2, %v9368_v10  ;;  %v8119_v10 = vld [vmem:[%s11383_s0 + $0x1b8] sm:$0xff] }
 0x13b   :  { %v1511_v46 = vrot.slane %v8119_v10, 2 }
 0x13c   :  { %6922 = vmatmul.mubr.msk.f32.gmra.mrb[26].mxu1 %vm397_vm2, %v11876_v27 }
 0x13d   :  { %7362 = vmatmul.mubr.msk.f32.gmra.mrb[58].mxu0 %vm397_vm2, %v9373_v12  ;;  %6924 = vmatprep.mubr.msk.f32.mxu1 %vm397_vm2, %v11877_v35  ;;  %v10176_v12 = vld [vmem:[%s11383_s0 + $0x348] sm:$0xff]  ;;  %v1512_v5 = vsel %vm1429_vm3, %v1510_v3, %v1511_v46  ;;  %v1514_v10 = vsel %vm1429_vm3, %v1511_v46, %v1513_v39  ;;  %v11883_v3 = vld [vmem:[#allocation19_spill] sm:$0xff]  ;;  %v11885_v39 = vld [vmem:[#allocation22_spill] sm:$0xff] }
 0x13e   :  { %7364 = vmatprep.mubr.msk.f32.mxu0 %vm397_vm2, %v9682_v40  ;;  %11878 = vst [vmem:[#allocation74_spill] sm:$0xff] %v10176_v12  ;;  %v11884_v46 = vld [vmem:[#allocation21_spill] sm:$0xff] }
 0x140   :  { %6925 = vmatmul.mubr.msk.f32.gmra.mrb[28].mxu1 %vm397_vm2, %v11879_v42 }
 0x141   :  { %7365 = vmatmul.mubr.msk.f32.gmra.mrb[60].mxu0 %vm397_vm2, %v9687_v18  ;;  %6927 = vmatprep.mubr.msk.f32.mxu1 %vm397_vm2, %v9402_v25  ;;  %v11882_v25 = vld [vmem:[#allocation18_spill] sm:$0xff] }
 0x142   :  { %7367 = vmatprep.mubr.msk.f32.mxu0 %vm397_vm2, %v10176_v12 }
 0x144   :  { %6928 = vmatmul.mubr.msk.f32.gmra.mrb[30].mxu1 %vm397_vm2, %v9419_v54 }
 0x145   :  { %7368 = vmatmul.mubr.msk.f32.gmra.mrb[62].mxu0 %vm397_vm2, %v10192_v4  ;;  %6930 = vmatprep.mubr.msk.f32.mxu1 %vm397_vm2, %v1512_v5  ;;  %v11890_v5 = vld [vmem:[#allocation31_spill] sm:$0xff] }
 0x146   :  { %7372 = vmatprep.mubr.msk.f32.mxu0 %vm397_vm2, %v11881_v9  ;;  %v11892_v9 = vld [vmem:[#allocation35_spill] sm:$0xff] }
 0x148   :  { %6931 = vmatmul.mubr.msk.f32.gmra.mrb[32].mxu1 %vm397_vm2, %v1514_v10  ;;  %v11891_v10 = vld [vmem:[#allocation34_spill] sm:$0xff] }
 0x149   :  { %7373 = vmatmul.mubr.msk.f32.vlgmr.msra.gmra.mrb[0].mxu0 %vm397_vm2, %v11882_v25  ;;  %6933 = vmatprep.mubr.msk.f32.mxu1 %vm397_vm2, %v9446_v45  ;;  %v11886_v25 = vld [vmem:[#allocation25_spill] sm:$0xff]  ;;  %v11887_v45 = vld [vmem:[#allocation26_spill] sm:$0xff] }
 0x14a   :  { %7469 = vmatpush3.msk.msra.mxu0 %vm526_vm0, %v9762_v17  ;;  %7375 = vmatprep.mubr.msk.f32.mxu0 %vm397_vm2, %v11883_v3  ;;  %v11889_v17 = vld [vmem:[#allocation8_spill] sm:$0xff]  ;;  %v11893_v3 = vld [vmem:[#allocation38_spill] sm:$0xff] }
 0x14c   :  { %6934 = vmatmul.mubr.msk.f32.gmra.mrb[34].mxu1 %vm397_vm2, %v9459_v15  ;;  %v11888_v15 = vld [vmem:[#allocation29_spill] sm:$0xff] }
 0x14d   :  { %7376 = vmatmul.mubr.msk.f32.gmra.mrb[2].mxu0 %vm397_vm2, %v11884_v46  ;;  %6936 = vmatprep.mubr.msk.f32.mxu1 %vm397_vm2, %v9464_v29  ;;  %v11894_v46 = vld [vmem:[#allocation50_spill] sm:$0xff] }
 0x14e   :  { %7378 = vmatprep.mubr.msk.f32.mxu0 %vm397_vm2, %v11885_v39  ;;  %v11895_v39 = vld [vmem:[#allocation39_spill] sm:$0xff] }
 0x150   :  { %6937 = vmatmul.mubr.msk.f32.gmra.mrb[36].mxu1 %vm397_vm2, %v9479_v7 }
 0x151   :  { %7379 = vmatmul.mubr.msk.f32.gmra.mrb[4].mxu0 %vm397_vm2, %v11886_v25  ;;  %6939 = vmatprep.mubr.msk.f32.mxu1 %vm397_vm2, %v9483_v37  ;;  %v11896_v25 = vld [vmem:[#allocation42_spill] sm:$0xff] }
 0x152   :  { %7381 = vmatprep.mubr.msk.f32.mxu0 %vm397_vm2, %v11887_v45  ;;  %v11897_v45 = vld [vmem:[#allocation9_spill] sm:$0xff] }
 0x154   :  { %6940 = vmatmul.mubr.msk.f32.gmra.mrb[38].mxu1 %vm397_vm2, %v9499_v2 }
 0x155   :  { %7382 = vmatmul.mubr.msk.f32.gmra.mrb[6].mxu0 %vm397_vm2, %v11888_v15  ;;  %6942 = vmatprep.mubr.msk.f32.mxu1 %vm397_vm2, %v11889_v17  ;;  %v11898_v15 = vld [vmem:[#allocation43_spill] sm:$0xff] }
 0x156   :  { %7384 = vmatprep.mubr.msk.f32.mxu0 %vm397_vm2, %v11890_v5  ;;  %v11899_v5 = vld [vmem:[#allocation46_spill] sm:$0xff] }
 0x158   :  { %6943 = vmatmul.mubr.msk.f32.gmra.mrb[40].mxu1 %vm397_vm2, %v9516_v20 }
 0x159   :  { %7385 = vmatmul.mubr.msk.f32.gmra.mrb[8].mxu0 %vm397_vm2, %v11891_v10  ;;  %6945 = vmatprep.mubr.msk.f32.mxu1 %vm397_vm2, %v9520_v51  ;;  %v11900_v10 = vld [vmem:[#allocation11_spill] sm:$0xff] }
 0x15a   :  { %7387 = vmatprep.mubr.msk.f32.mxu0 %vm397_vm2, %v11892_v9  ;;  %v11901_v9 = vld [vmem:[#allocation47_spill] sm:$0xff] }
 0x15c   :  { %6946 = vmatmul.mubr.msk.f32.gmra.mrb[42].mxu1 %vm397_vm2, %v9533_v32 }
 0x15d   :  { %7388 = vmatmul.mubr.msk.f32.gmra.mrb[10].mxu0 %vm397_vm2, %v11893_v3  ;;  %6948 = vmatprep.mubr.msk.f32.mxu1 %vm397_vm2, %v11894_v46  ;;  %v11902_v3 = vld [vmem:[#allocation51_spill] sm:$0xff] }
 0x15e   :  { %7390 = vmatprep.mubr.msk.f32.mxu0 %vm397_vm2, %v11895_v39  ;;  %v11903_v39 = vld [vmem:[#allocation13_spill] sm:$0xff] }
 0x160   :  { %6949 = vmatmul.mubr.msk.f32.gmra.mrb[44].mxu1 %vm397_vm2, %v9550_v60 }
 0x161   :  { %7391 = vmatmul.mubr.msk.f32.gmra.mrb[12].mxu0 %vm397_vm2, %v11896_v25  ;;  %6951 = vmatprep.mubr.msk.f32.mxu1 %vm397_vm2, %v11897_v45  ;;  %v11904_v25 = vld [vmem:[#allocation52_spill] sm:$0xff] }
 0x162   :  { %7393 = vmatprep.mubr.msk.f32.mxu0 %vm397_vm2, %v11898_v15  ;;  %v11905_v15 = vld [vmem:[#allocation55_spill] sm:$0xff] }
 0x164   :  { %6952 = vmatmul.mubr.msk.f32.gmra.mrb[46].mxu1 %vm397_vm2, %v9567_v53 }
 0x165   :  { %7394 = vmatmul.mubr.msk.f32.gmra.mrb[14].mxu0 %vm397_vm2, %v11899_v5  ;;  %6954 = vmatprep.mubr.msk.f32.mxu1 %vm397_vm2, %v11900_v10  ;;  %v11906_v5 = vld [vmem:[#allocation15_spill] sm:$0xff]  ;;  %v11944_v10 = vld [vmem:[#allocation106_spill] sm:$0xff] }
 0x166   :  { %7396 = vmatprep.mubr.msk.f32.mxu0 %vm397_vm2, %v11901_v9  ;;  %v11907_v9 = vld [vmem:[#allocation56_spill] sm:$0xff] }
 0x168   :  { %6955 = vmatmul.mubr.msk.f32.gmra.mrb[48].mxu1 %vm397_vm2, %v9584_v41  ;;  %v11922_v41 = vld [vmem:[#allocation73_spill] sm:$0xff] }
 0x169   :  { %7397 = vmatmul.mubr.msk.f32.gmra.mrb[16].mxu0 %vm397_vm2, %v11902_v3  ;;  %6957 = vmatprep.mubr.msk.f32.mxu1 %vm397_vm2, %v11903_v39  ;;  %v11908_v3 = vld [vmem:[#allocation59_spill] sm:$0xff]  ;;  %v11909_v39 = vld [vmem:[#allocation20_spill] sm:$0xff] }
 0x16a   :  { %7399 = vmatprep.mubr.msk.f32.mxu0 %vm397_vm2, %v11904_v25  ;;  %v11910_v25 = vld [vmem:[#allocation60_spill] sm:$0xff] }
 0x16c   :  { %6958 = vmatmul.mubr.msk.f32.gmra.mrb[50].mxu1 %vm397_vm2, %v9601_v62 }
 0x16d   :  { %7400 = vmatmul.mubr.msk.f32.gmra.mrb[18].mxu0 %vm397_vm2, %v11905_v15  ;;  %6960 = vmatprep.mubr.msk.f32.mxu1 %vm397_vm2, %v11906_v5  ;;  %v11911_v15 = vld [vmem:[#allocation63_spill] sm:$0xff]  ;;  %v11912_v5 = vld [vmem:[#allocation24_spill] sm:$0xff] }
 0x16e   :  { %7402 = vmatprep.mubr.msk.f32.mxu0 %vm397_vm2, %v11907_v9  ;;  %v11913_v9 = vld [vmem:[#allocation64_spill] sm:$0xff] }
 0x170   :  { %6961 = vmatmul.mubr.msk.f32.gmra.mrb[52].mxu1 %vm397_vm2, %v9618_v56  ;;  %v11914_v56 = vld [vmem:[#allocation27_spill] sm:$0xff] }
 0x171   :  { %7403 = vmatmul.mubr.msk.f32.gmra.mrb[20].mxu0 %vm397_vm2, %v11908_v3  ;;  %6963 = vmatprep.mubr.msk.f32.mxu1 %vm397_vm2, %v11909_v39  ;;  %v11915_v3 = vld [vmem:[#allocation66_spill] sm:$0xff]  ;;  %v11916_v39 = vld [vmem:[#allocation28_spill] sm:$0xff] }
 0x172   :  { %7405 = vmatprep.mubr.msk.f32.mxu0 %vm397_vm2, %v11910_v25  ;;  %v11917_v25 = vld [vmem:[#allocation67_spill] sm:$0xff] }
 0x174   :  { %6964 = vmatmul.mubr.msk.f32.gmra.mrb[54].mxu1 %vm397_vm2, %v9635_v19  ;;  %v4043_v19 = vrot.slane %v10035_v33, 1 }
 0x175   :  { %7406 = vmatmul.mubr.msk.f32.gmra.mrb[22].mxu0 %vm397_vm2, %v11911_v15  ;;  %6966 = vmatprep.mubr.msk.f32.mxu1 %vm397_vm2, %v11912_v5  ;;  %v4042_v15 = vrot.slane %v10014_v11, 1  ;;  %v11918_v5 = vld [vmem:[#allocation32_spill] sm:$0xff] }
 0x176   :  { %7408 = vmatprep.mubr.msk.f32.mxu0 %vm397_vm2, %v11913_v9  ;;  %v10313_v9 = vld [vmem:[%s11383_s0 + $0x1a8] sm:$0x3] }
 0x177   :  { %v4044_v62 = vsel %vm234_vm1, %v4042_v15, %v4043_v19  ;;  %v11923_v15 = vld [vmem:[#allocation80_spill] sm:$0xff] }
 0x178   :  { %6967 = vmatmul.mubr.msk.f32.gmra.mrb[56].mxu1 %vm397_vm2, %v11914_v56  ;;  %v11919_v56 = vld [vmem:[#allocation70_spill] sm:$0xff] }
 0x179   :  { %7409 = vmatmul.mubr.msk.f32.gmra.mrb[24].mxu0 %vm397_vm2, %v11915_v3  ;;  %6969 = vmatprep.mubr.msk.f32.mxu1 %vm397_vm2, %v11916_v39  ;;  %v11920_v3 = vld [vmem:[#allocation33_spill] sm:$0xff]  ;;  %v11921_v39 = vld [vmem:[#allocation71_spill] sm:$0xff] }
 0x17a   :  { %7411 = vmatprep.mubr.msk.f32.mxu0 %vm397_vm2, %v11917_v25  ;;  %v4045_v25 = vrot.slane %v10313_v9, 1 }
 0x17c   :  { %6970 = vmatmul.mubr.msk.f32.gmra.mrb[58].mxu1 %vm397_vm2, %v11918_v5  ;;  %v11942_v5 = vld [vmem:[#allocation104_spill] sm:$0xff] }
 0x17d   :  { %7412 = vmatmul.mubr.msk.f32.gmra.mrb[26].mxu0 %vm397_vm2, %v11919_v56  ;;  %6972 = vmatprep.mubr.msk.f32.mxu1 %vm397_vm2, %v11920_v3  ;;  %v4046_v56 = vsel %vm234_vm1, %v4043_v19, %v4045_v25  ;;  %v11925_v19 = vld [vmem:[#allocation84_spill] sm:$0xff]  ;;  %v11926_v25 = vld [vmem:[#allocation86_spill] sm:$0xff] }
 0x17e   :  { %7414 = vmatprep.mubr.msk.f32.mxu0 %vm397_vm2, %v11921_v39  ;;  %v8121_v39 = vld [vmem:[%s11383_s0 + $0x18] sm:$0xff] }
 0x17f   :  { %v11940_v3 = vld [vmem:[#allocation102_spill] sm:$0xff] }
 0x180   :  { %6973 = vmatmul.mubr.msk.f32.gmra.mrb[60].mxu1 %vm397_vm2, %v9696_v30  ;;  %v11938_v30 = vld [vmem:[#allocation100_spill] sm:$0xff] }
 0x181   :  { %7415 = vmatmul.mubr.msk.f32.gmra.mrb[28].mxu0 %vm397_vm2, %v11922_v41  ;;  %6975 = vmatprep.mubr.msk.f32.mxu1 %vm397_vm2, %v9700_v63  ;;  %v8122_v41 = vld [vmem:[%s11383_s0 + $0x20] sm:$0xff]  ;;  %v11936_v63 = vld [vmem:[#allocation98_spill] sm:$0xff] }
 0x182   :  { %7417 = vmatprep.mubr.msk.f32.mxu0 %vm397_vm2, %v4044_v62  ;;  %v11924_v62 = vld [vmem:[#allocation82_spill] sm:$0xff] }
 0x184   :  { %6976 = vmatmul.mubr.msk.f32.gmra.mrb[62].mxu1 %vm397_vm2, %v9718_v55  ;;  %v11934_v55 = vld [vmem:[#allocation96_spill] sm:$0xff] }
 0x185   :  { %7418 = vmatmul.mubr.msk.f32.gmra.mrb[30].mxu0 %vm397_vm2, %v4046_v56  ;;  %6980 = vmatprep.mubr.msk.f32.mxu1 %vm397_vm2, %v8121_v39  ;;  %v11927_v56 = vld [vmem:[#allocation88_spill] sm:$0xff] }
 0x186   :  { %7420 = vmatprep.mubr.msk.f32.mxu0 %vm397_vm2, %v11923_v15  ;;  %v11930_v39 = vld [vmem:[#allocation92_spill] sm:$0xff] }
 0x188   :  { %6981 = vmatmul.mubr.msk.f32.vlgmr.msra.gmra.mrb[0].mxu1 %vm397_vm2, %v8122_v41  ;;  %v11932_v41 = vld [vmem:[#allocation94_spill] sm:$0xff] }
 0x189   :  { %7421 = vmatmul.mubr.msk.f32.gmra.mrb[32].mxu0 %vm397_vm2, %v11924_v62  ;;  %7567 = vmatpush3.msk.msra.mxu1 %vm526_vm0, %v10059_v43  ;;  %v11928_v43 = vld [vmem:[#allocation90_spill] sm:$0xff] }
 0x18a   :  { %6983 = vmatprep.mubr.msk.f32.mxu1 %vm397_vm2, %v9744_v57  ;;  %7423 = vmatprep.mubr.msk.f32.mxu0 %vm397_vm2, %v11925_v19  ;;  %v11929_v57 = vld [vmem:[#allocation48_spill] sm:$0xff] }
 0x18c   :  { %6984 = vmatmul.mubr.msk.f32.gmra.mrb[2].mxu1 %vm397_vm2, %v9753_v14  ;;  %v11931_v14 = vld [vmem:[#allocation49_spill] sm:$0xff] }
 0x18d   :  { %7424 = vmatmul.mubr.msk.f32.gmra.mrb[34].mxu0 %vm397_vm2, %v11926_v25  ;;  %6986 = vmatprep.mubr.msk.f32.mxu1 %vm397_vm2, %v9770_v22  ;;  %v11933_v22 = vld [vmem:[#allocation53_spill] sm:$0xff] }
 0x18e   :  { %7426 = vmatprep.mubr.msk.f32.mxu0 %vm397_vm2, %v11927_v56 }
 0x190   :  { %6987 = vmatmul.mubr.msk.f32.gmra.mrb[4].mxu1 %vm397_vm2, %v9781_v44  ;;  %v11935_v44 = vld [vmem:[#allocation54_spill] sm:$0xff] }
 0x191   :  { %7427 = vmatmul.mubr.msk.f32.gmra.mrb[36].mxu0 %vm397_vm2, %v11928_v43  ;;  %6989 = vmatprep.mubr.msk.f32.mxu1 %vm397_vm2, %v11929_v57  ;;  %v11937_v57 = vld [vmem:[#allocation57_spill] sm:$0xff] }
 0x192   :  { %7429 = vmatprep.mubr.msk.f32.mxu0 %vm397_vm2, %v11930_v39 }
 0x194   :  { %6990 = vmatmul.mubr.msk.f32.gmra.mrb[6].mxu1 %vm397_vm2, %v11931_v14  ;;  %v11939_v14 = vld [vmem:[#allocation58_spill] sm:$0xff] }
 0x195   :  { %7430 = vmatmul.mubr.msk.f32.gmra.mrb[38].mxu0 %vm397_vm2, %v11932_v41  ;;  %6992 = vmatprep.mubr.msk.f32.mxu1 %vm397_vm2, %v11933_v22  ;;  %v11941_v22 = vld [vmem:[#allocation61_spill] sm:$0xff] }
 0x196   :  { %7432 = vmatprep.mubr.msk.f32.mxu0 %vm397_vm2, %v11934_v55 }
 0x198   :  { %6993 = vmatmul.mubr.msk.f32.gmra.mrb[8].mxu1 %vm397_vm2, %v11935_v44  ;;  %v11943_v44 = vld [vmem:[#allocation62_spill] sm:$0xff] }
 0x199   :  { %7433 = vmatmul.mubr.msk.f32.gmra.mrb[40].mxu0 %vm397_vm2, %v11936_v63  ;;  %6995 = vmatprep.mubr.msk.f32.mxu1 %vm397_vm2, %v11937_v57  ;;  %v11945_v57 = vld [vmem:[#allocation68_spill] sm:$0xff]  ;;  %v4048_v63 = vrot.slane %v10192_v4, 1 }
 0x19a   :  { %7435 = vmatprep.mubr.msk.f32.mxu0 %vm397_vm2, %v11938_v30  ;;  %v11946_v30 = vld [vmem:[#allocation108_spill] sm:$0xff] }
 0x19c   :  { %6996 = vmatmul.mubr.msk.f32.gmra.mrb[10].mxu1 %vm397_vm2, %v11939_v14  ;;  %v11947_v14 = vld [vmem:[#allocation69_spill] sm:$0xff] }
 0x19d   :  { %7436 = vmatmul.mubr.msk.f32.gmra.mrb[42].mxu0 %vm397_vm2, %v11940_v3  ;;  %6998 = vmatprep.mubr.msk.f32.mxu1 %vm397_vm2, %v11941_v22  ;;  %v11948_v3 = vld [vmem:[#allocation110_spill] sm:$0xff] }
 0x19e   :  { %7438 = vmatprep.mubr.msk.f32.mxu0 %vm397_vm2, %v11942_v5  ;;  %v11949_v22 = vld [vmem:[#allocation30_spill] sm:$0xff]  ;;  %v11950_v5 = vld [vmem:[#allocation112_spill] sm:$0xff] }
 0x1a0   :  { %6999 = vmatmul.mubr.msk.f32.gmra.mrb[12].mxu1 %vm397_vm2, %v11943_v44  ;;  %v11951_v44 = vld [vmem:[#allocation133_spill] sm:$0xff] }
 0x1a1   :  { %7439 = vmatmul.mubr.msk.f32.gmra.mrb[44].mxu0 %vm397_vm2, %v11944_v10  ;;  %7001 = vmatprep.mubr.msk.f32.mxu1 %vm397_vm2, %v11945_v57  ;;  %v11952_v10 = vld [vmem:[#allocation114_spill] sm:$0xff] }
 0x1a2   :  { %7441 = vmatprep.mubr.msk.f32.mxu0 %vm397_vm2, %v11946_v30  ;;  %v11953_v57 = vld [vmem:[#allocation134_spill] sm:$0xff]  ;;  %v11954_v30 = vld [vmem:[#allocation116_spill] sm:$0xff] }
 0x1a4   :  { %7002 = vmatmul.mubr.msk.f32.gmra.mrb[14].mxu1 %vm397_vm2, %v11947_v14  ;;  %v11955_v14 = vld [vmem:[#allocation135_spill] sm:$0xff] }
 0x1a5   :  { %7442 = vmatmul.mubr.msk.f32.gmra.mrb[46].mxu0 %vm397_vm2, %v11948_v3  ;;  %7004 = vmatprep.mubr.msk.f32.mxu1 %vm397_vm2, %v11949_v22  ;;  %v11956_v3 = vld [vmem:[#allocation118_spill] sm:$0xff]  ;;  %v11957_v22 = vld [vmem:[#allocation136_spill] sm:$0xff] }
 0x1a6   :  { %7444 = vmatprep.mubr.msk.f32.mxu0 %vm397_vm2, %v11950_v5  ;;  %v11958_v5 = vld [vmem:[#allocation120_spill] sm:$0xff] }
 0x1a8   :  { %7005 = vmatmul.mubr.msk.f32.gmra.mrb[16].mxu1 %vm397_vm2, %v11951_v44  ;;  %v11959_v44 = vld [vmem:[#allocation137_spill] sm:$0xff] }
 0x1a9   :  { %7445 = vmatmul.mubr.msk.f32.gmra.mrb[48].mxu0 %vm397_vm2, %v11952_v10  ;;  %7007 = vmatprep.mubr.msk.f32.mxu1 %vm397_vm2, %v11953_v57  ;;  %v11960_v10 = vld [vmem:[#allocation122_spill] sm:$0xff] }
 0x1aa   :  { %7447 = vmatprep.mubr.msk.f32.mxu0 %vm397_vm2, %v11954_v30  ;;  %v11961_v57 = vld [vmem:[#allocation138_spill] sm:$0xff]  ;;  %v11962_v30 = vld [vmem:[#allocation124_spill] sm:$0xff] }
 0x1ac   :  { %7008 = vmatmul.mubr.msk.f32.gmra.mrb[18].mxu1 %vm397_vm2, %v11955_v14  ;;  %v11963_v14 = vld [vmem:[#allocation139_spill] sm:$0xff] }
 0x1ad   :  { %7448 = vmatmul.mubr.msk.f32.gmra.mrb[50].mxu0 %vm397_vm2, %v11956_v3  ;;  %7010 = vmatprep.mubr.msk.f32.mxu1 %vm397_vm2, %v11957_v22  ;;  %v11964_v3 = vld [vmem:[#allocation126_spill] sm:$0xff]  ;;  %v11965_v22 = vld [vmem:[#allocation140_spill] sm:$0xff] }
 0x1ae   :  { %7450 = vmatprep.mubr.msk.f32.mxu0 %vm397_vm2, %v11958_v5  ;;  %v11966_v5 = vld [vmem:[#allocation128_spill] sm:$0xff] }
 0x1b0   :  { %7011 = vmatmul.mubr.msk.f32.gmra.mrb[20].mxu1 %vm397_vm2, %v11959_v44  ;;  %v2641_v44 = vrot.slane %v9682_v40, 1 }
 0x1b1   :  { %7451 = vmatmul.mubr.msk.f32.gmra.mrb[52].mxu0 %vm397_vm2, %v11960_v10  ;;  %7013 = vmatprep.mubr.msk.f32.mxu1 %vm397_vm2, %v11961_v57  ;;  %v2642_v10 = vrot.slane %v9687_v18, 1  ;;  %v11967_v57 = vld [vmem:[#allocation141_spill] sm:$0xff] }
 0x1b2   :  { %7453 = vmatprep.mubr.msk.f32.mxu0 %vm397_vm2, %v11962_v30  ;;  %v11968_v30 = vld [vmem:[#allocation65_spill] sm:$0xff] }
 0x1b3   :  { %v10456_v45 = vsel %vm234_vm1, %v2641_v44, %v2642_v10 }
 0x1b4   :  { %7014 = vmatmul.mubr.msk.f32.gmra.mrb[22].mxu1 %vm397_vm2, %v11963_v14  ;;  %v11969_v14 = vld [vmem:[#allocation142_spill] sm:$0xff] }
 0x1b5   :  { %7454 = vmatmul.mubr.msk.f32.gmra.mrb[54].mxu0 %vm397_vm2, %v11964_v3  ;;  %7016 = vmatprep.mubr.msk.f32.mxu1 %vm397_vm2, %v11965_v22  ;;  %v11970_v3 = vld [vmem:[#allocation130_spill] sm:$0xff]  ;;  %v11971_v22 = vld [vmem:[#allocation40_spill] sm:$0xff] }
 0x1b6   :  { %7456 = vmatprep.mubr.msk.f32.mxu0 %vm397_vm2, %v11966_v5  ;;  %v2644_v53 = vrot.slane %v11971_v22, 1  ;;  %v4047_v5 = vrot.slane %v10176_v12, 1  ;;  %v11975_v12 = vld [vmem:[#allocation145_spill] sm:$0xff] }
 0x1b8   :  { %7017 = vmatmul.mubr.msk.f32.gmra.mrb[24].mxu1 %vm397_vm2, %v11967_v57  ;;  %v10461_v57 = vld [vmem:[%s11383_s0 + $0x358] sm:$0x3]  ;;  %v10472_v44 = vsel %vm234_vm1, %v2642_v10, %v2644_v53  ;;  %v4049_v4 = vsel %vm234_vm1, %v4047_v5, %v4048_v63  ;;  %v11977_v5 = vld [vmem:[#allocation129_spill] sm:$0xff] }
 0x1b9   :  { %7457 = vmatmul.mubr.msk.f32.gmra.mrb[56].mxu0 %vm397_vm2, %v11968_v30  ;;  %7019 = vmatprep.mubr.msk.f32.mxu1 %vm397_vm2, %v11969_v14  ;;  %v11972_v30 = vld [vmem:[#allocation143_spill] sm:$0xff]  ;;  %v11973_v14 = vld [vmem:[#allocation72_spill] sm:$0xff]  ;;  %v4050_v22 = vrot.slane %v10461_v57, 1  ;;  %v11976_v10 = vld [vmem:[#allocation146_spill] sm:$0xff] }
 0x1ba   :  { %7459 = vmatprep.mubr.msk.f32.mxu0 %vm397_vm2, %v11970_v3  ;;  %v11974_v3 = vld [vmem:[#allocation144_spill] sm:$0xff] }
 0x1bb   :  { %v4051_v53 = vsel %vm234_vm1, %v4048_v63, %v4050_v22  ;;  %v8126_v63 = vld [vmem:[%s11383_s0 + $0x1e0] sm:$0xff]  ;;  %v8151_v22 = vld [vmem:[%s11383_s0 + $0x308] sm:$0xff] }
 0x1bc   :  { %7020 = vmatmul.mubr.msk.f32.gmra.mrb[26].mxu1 %vm397_vm2, %v11972_v30  ;;  %v8123_v30 = vld [vmem:[%s11383_s0 + $0x180] sm:$0xff] }
 0x1bd   :  { %7460 = vmatmul.mubr.msk.f32.gmra.mrb[58].mxu0 %vm397_vm2, %v11973_v14  ;;  %7022 = vmatprep.mubr.msk.f32.mxu1 %vm397_vm2, %v11974_v3  ;;  %v4513_v3 = vrot.slane %v10035_v33, 2 }
 0x1be   :  { %7462 = vmatprep.mubr.msk.f32.mxu0 %vm397_vm2, %v10456_v45 }
 0x1c0   :  { %7023 = vmatmul.mubr.msk.f32.gmra.mrb[28].mxu1 %vm397_vm2, %v11975_v12  ;;  %v8124_v12 = vld [vmem:[%s11383_s0 + $0x1c8] sm:$0xff] }
 0x1c1   :  { %7463 = vmatmul.mubr.msk.f32.gmra.mrb[60].mxu0 %vm397_vm2, %v10472_v44  ;;  %7025 = vmatprep.mubr.msk.f32.mxu1 %vm397_vm2, %v8123_v30  ;;  %v11978_v30 = vld [vmem:[#allocation131_spill] sm:$0xff] }
 0x1c2   :  { %7465 = vmatprep.mubr.msk.f32.mxu0 %vm397_vm2, %v4049_v4  ;;  %v8125_v4 = vld [vmem:[%s11383_s0 + $0x1d0] sm:$0xff] }
 0x1c4   :  { %7026 = vmatmul.mubr.msk.f32.gmra.mrb[30].mxu1 %vm397_vm2, %v11976_v10 }
 0x1c5   :  { %7466 = vmatmul.mubr.msk.f32.gmra.mrb[62].mxu0 %vm397_vm2, %v4051_v53  ;;  %7028 = vmatprep.mubr.msk.f32.mxu1 %vm397_vm2, %v8124_v12  ;;  %v8153_v53 = vld [vmem:[%s11383_s0 + $0x320] sm:$0xff]  ;;  %v11981_v12 = vld [vmem:[#allocation78_spill] sm:$0xff] }
 0x1c6   :  { %7470 = vmatprep.mubr.msk.f32.mxu0 %vm397_vm2, %v11853_v34  ;;  %v8127_v34 = vld [vmem:[%s11383_s0 + $0x1e8] sm:$0xff] }
 0x1c8   :  { %7029 = vmatmul.mubr.msk.f32.gmra.mrb[32].mxu1 %vm397_vm2, %v8125_v4  ;;  %v12003_v4 = vld [vmem:[#allocation118_spill] sm:$0xff] }
 0x1c9   :  { %7471 = vmatmul.mubr.msk.f32.vlgmr.msra.gmra.mrb[0].mxu0 %vm397_vm2, %v11854_v24  ;;  %7031 = vmatprep.mubr.msk.f32.mxu1 %vm397_vm2, %v8126_v63  ;;  %v8128_v24 = vld [vmem:[%s11383_s0 + $0x1f8] sm:$0xff] }
 0x1ca   :  { %7473 = vmatprep.mubr.msk.f32.mxu0 %vm397_vm2, %v11855_v52  ;;  %v8129_v52 = vld [vmem:[%s11383_s0 + $0x200] sm:$0xff] }
 0x1cb   :  { %v12004_v63 = vld [vmem:[#allocation27_spill] sm:$0xff] }
 0x1cc   :  { %7032 = vmatmul.mubr.msk.f32.gmra.mrb[34].mxu1 %vm397_vm2, %v8127_v34  ;;  %v12005_v34 = vld [vmem:[#allocation120_spill] sm:$0xff] }
 0x1cd   :  { %7474 = vmatmul.mubr.msk.f32.gmra.mrb[2].mxu0 %vm397_vm2, %v11856_v6  ;;  %7034 = vmatprep.mubr.msk.f32.mxu1 %vm397_vm2, %v8128_v24  ;;  %v8130_v6 = vld [vmem:[%s11383_s0 + $0x210] sm:$0xff]  ;;  %v12006_v24 = vld [vmem:[#allocation28_spill] sm:$0xff] }
 0x1ce   :  { %7476 = vmatprep.mubr.msk.f32.mxu0 %vm397_vm2, %v11857_v36  ;;  %v8131_v36 = vld [vmem:[%s11383_s0 + $0x218] sm:$0xff] }
 0x1d0   :  { %7035 = vmatmul.mubr.msk.f32.gmra.mrb[36].mxu1 %vm397_vm2, %v8129_v52  ;;  %v12007_v52 = vld [vmem:[#allocation122_spill] sm:$0xff] }
 0x1d1   :  { %7477 = vmatmul.mubr.msk.f32.gmra.mrb[4].mxu0 %vm397_vm2, %v11858_v28  ;;  %7037 = vmatprep.mubr.msk.f32.mxu1 %vm397_vm2, %v8130_v6  ;;  %v8132_v28 = vld [vmem:[%s11383_s0 + $0x228] sm:$0xff] }
 0x1d2   :  { %7479 = vmatprep.mubr.msk.f32.mxu0 %vm397_vm2, %v11859_v50  ;;  %v8133_v50 = vld [vmem:[%s11383_s0 + $0x230] sm:$0xff]  ;;  %v12008_v6 = vld [vmem:[#allocation32_spill] sm:$0xff] }
 0x1d4   :  { %7038 = vmatmul.mubr.msk.f32.gmra.mrb[38].mxu1 %vm397_vm2, %v8131_v36  ;;  %v12009_v36 = vld [vmem:[#allocation124_spill] sm:$0xff] }
 0x1d5   :  { %7480 = vmatmul.mubr.msk.f32.gmra.mrb[6].mxu0 %vm397_vm2, %v11860_v38  ;;  %7040 = vmatprep.mubr.msk.f32.mxu1 %vm397_vm2, %v8132_v28  ;;  %v8134_v38 = vld [vmem:[%s11383_s0 + $0x240] sm:$0xff]  ;;  %v12010_v28 = vld [vmem:[#allocation33_spill] sm:$0xff] }
 0x1d6   :  { %7482 = vmatprep.mubr.msk.f32.mxu0 %vm397_vm2, %v11861_v58  ;;  %v8135_v58 = vld [vmem:[%s11383_s0 + $0x248] sm:$0xff] }
 0x1d8   :  { %7041 = vmatmul.mubr.msk.f32.gmra.mrb[40].mxu1 %vm397_vm2, %v8133_v50  ;;  %v12011_v50 = vld [vmem:[#allocation126_spill] sm:$0xff] }
 0x1d9   :  { %7483 = vmatmul.mubr.msk.f32.gmra.mrb[8].mxu0 %vm397_vm2, %v11862_v47  ;;  %7043 = vmatprep.mubr.msk.f32.mxu1 %vm397_vm2, %v8134_v38  ;;  %v8136_v47 = vld [vmem:[%s11383_s0 + $0x258] sm:$0xff]  ;;  %v12012_v38 = vld [vmem:[#allocation36_spill] sm:$0xff] }
 0x1da   :  { %7485 = vmatprep.mubr.msk.f32.mxu0 %vm397_vm2, %v11863_v21  ;;  %v8137_v21 = vld [vmem:[%s11383_s0 + $0x260] sm:$0xff] }
 0x1dc   :  { %7044 = vmatmul.mubr.msk.f32.gmra.mrb[42].mxu1 %vm397_vm2, %v8135_v58  ;;  %v12013_v58 = vld [vmem:[#allocation128_spill] sm:$0xff] }
 0x1dd   :  { %7486 = vmatmul.mubr.msk.f32.gmra.mrb[10].mxu0 %vm397_vm2, %v11864_v23  ;;  %7046 = vmatprep.mubr.msk.f32.mxu1 %vm397_vm2, %v8136_v47  ;;  %v8138_v23 = vld [vmem:[%s11383_s0 + $0x270] sm:$0xff] }
 0x1de   :  { %7488 = vmatprep.mubr.msk.f32.mxu0 %vm397_vm2, %v11865_v13  ;;  %v8139_v13 = vld [vmem:[%s11383_s0 + $0x278] sm:$0xff]  ;;  %v12014_v47 = vld [vmem:[#allocation37_spill] sm:$0xff] }
 0x1e0   :  { %7047 = vmatmul.mubr.msk.f32.gmra.mrb[44].mxu1 %vm397_vm2, %v8137_v21  ;;  %v12015_v21 = vld [vmem:[#allocation74_spill] sm:$0xff] }
 0x1e1   :  { %7489 = vmatmul.mubr.msk.f32.gmra.mrb[12].mxu0 %vm397_vm2, %v11866_v0  ;;  %7049 = vmatprep.mubr.msk.f32.mxu1 %vm397_vm2, %v8138_v23  ;;  %v8140_v0 = vld [vmem:[%s11383_s0 + $0x288] sm:$0xff]  ;;  %v4517_v23 = vrot.slane %v12015_v21, 2 }
 0x1e2   :  { %7491 = vmatprep.mubr.msk.f32.mxu0 %vm397_vm2, %v11867_v16  ;;  %v8141_v16 = vld [vmem:[%s11383_s0 + $0x290] sm:$0xff] }
 0x1e4   :  { %7050 = vmatmul.mubr.msk.f32.gmra.mrb[46].mxu1 %vm397_vm2, %v8139_v13  ;;  %v12016_v13 = vld [vmem:[#allocation75_spill] sm:$0xff] }
 0x1e5   :  { %7492 = vmatmul.mubr.msk.f32.gmra.mrb[14].mxu0 %vm397_vm2, %v11868_v48  ;;  %7052 = vmatprep.mubr.msk.f32.mxu1 %vm397_vm2, %v8140_v0  ;;  %v8142_v48 = vld [vmem:[%s11383_s0 + $0x2a0] sm:$0xff]  ;;  %v4518_v0 = vrot.slane %v12016_v13, 2 }
 0x1e6   :  { %7494 = vmatprep.mubr.msk.f32.mxu0 %vm397_vm2, %v11869_v61  ;;  %v8143_v61 = vld [vmem:[%s11383_s0 + $0x2a8] sm:$0xff] }
 0x1e8   :  { %7053 = vmatmul.mubr.msk.f32.gmra.mrb[48].mxu1 %vm397_vm2, %v8141_v16  ;;  %v12017_v16 = vld [vmem:[#allocation65_spill] sm:$0xff] }
 0x1e9   :  { %7495 = vmatmul.mubr.msk.f32.gmra.mrb[16].mxu0 %vm397_vm2, %v11870_v26  ;;  %7055 = vmatprep.mubr.msk.f32.mxu1 %vm397_vm2, %v8142_v48  ;;  %v8144_v26 = vld [vmem:[%s11383_s0 + $0x2b8] sm:$0xff]  ;;  %v12018_v48 = vld [vmem:[#allocation41_spill] sm:$0xff] }
 0x1ea   :  { %7497 = vmatprep.mubr.msk.f32.mxu0 %vm397_vm2, %v11871_v31  ;;  %v8145_v31 = vld [vmem:[%s11383_s0 + $0x2c0] sm:$0xff] }
 0x1ec   :  { %7056 = vmatmul.mubr.msk.f32.gmra.mrb[50].mxu1 %vm397_vm2, %v8143_v61  ;;  %v12019_v61 = vld [vmem:[#allocation130_spill] sm:$0xff] }
 0x1ed   :  { %7498 = vmatmul.mubr.msk.f32.gmra.mrb[18].mxu0 %vm397_vm2, %v11872_v1  ;;  %7058 = vmatprep.mubr.msk.f32.mxu1 %vm397_vm2, %v8144_v26  ;;  %v8146_v1 = vld [vmem:[%s11383_s0 + $0x2d0] sm:$0xff]  ;;  %v12020_v26 = vld [vmem:[#allocation44_spill] sm:$0xff] }
 0x1ee   :  { %7500 = vmatprep.mubr.msk.f32.mxu0 %vm397_vm2, %v11873_v59  ;;  %v8147_v59 = vld [vmem:[%s11383_s0 + $0x2d8] sm:$0xff] }
 0x1f0   :  { %7059 = vmatmul.mubr.msk.f32.gmra.mrb[52].mxu1 %vm397_vm2, %v8145_v31  ;;  %v4520_v31 = vrot.slane %v10461_v57, 2 }
 0x1f1   :  { %7501 = vmatmul.mubr.msk.f32.gmra.mrb[20].mxu0 %vm397_vm2, %v11874_v8  ;;  %7061 = vmatprep.mubr.msk.f32.mxu1 %vm397_vm2, %v8146_v1  ;;  %v8148_v8 = vld [vmem:[%s11383_s0 + $0x2e8] sm:$0xff]  ;;  %v4519_v1 = vsel %vm1429_vm3, %v4517_v23, %v4518_v0 }
 0x1f2   :  { %7503 = vmatprep.mubr.msk.f32.mxu0 %vm397_vm2, %v11875_v49  ;;  %v8149_v49 = vld [vmem:[%s11383_s0 + $0x2f0] sm:$0xff] }
 0x1f4   :  { %7062 = vmatmul.mubr.msk.f32.gmra.mrb[54].mxu1 %vm397_vm2, %v8147_v59  ;;  %v12021_v59 = vld [vmem:[#allocation45_spill] sm:$0xff] }
 0x1f5   :  { %7504 = vmatmul.mubr.msk.f32.gmra.mrb[22].mxu0 %vm397_vm2, %v11876_v27  ;;  %7064 = vmatprep.mubr.msk.f32.mxu1 %vm397_vm2, %v8148_v8  ;;  %v8150_v27 = vld [vmem:[%s11383_s0 + $0x300] sm:$0xff]  ;;  %v4521_v8 = vsel %vm1429_vm3, %v4518_v0, %v4520_v31 }
 0x1f6   :  { %7506 = vmatprep.mubr.msk.f32.mxu0 %vm397_vm2, %v11877_v35  ;;  %v4512_v35 = vrot.slane %v10014_v11, 2  ;;  %v4515_v11 = vrot.slane %v10313_v9, 2  ;;  %v11980_v9 = vld [vmem:[#allocation76_spill] sm:$0xff] }
 0x1f8   :  { %7065 = vmatmul.mubr.msk.f32.gmra.mrb[56].mxu1 %vm397_vm2, %v8149_v49  ;;  %v4514_v33 = vsel %vm1429_vm3, %v4512_v35, %v4513_v3  ;;  %v4516_v10 = vsel %vm1429_vm3, %v4513_v3, %v4515_v11 }
 0x1f9   :  { %7507 = vmatmul.mubr.msk.f32.gmra.mrb[24].mxu0 %vm397_vm2, %v11879_v42  ;;  %7067 = vmatprep.mubr.msk.f32.mxu1 %vm397_vm2, %v8150_v27  ;;  %v8152_v42 = vld [vmem:[%s11383_s0 + $0x318] sm:$0xff] }
 0x1fa   :  { %7509 = vmatprep.mubr.msk.f32.mxu0 %vm397_vm2, %v11977_v5 }
 0x1fc   :  { %7068 = vmatmul.mubr.msk.f32.gmra.mrb[58].mxu1 %vm397_vm2, %v8151_v22 }
 0x1fd   :  { %7510 = vmatmul.mubr.msk.f32.gmra.mrb[26].mxu0 %vm397_vm2, %v9419_v54  ;;  %7070 = vmatprep.mubr.msk.f32.mxu1 %vm397_vm2, %v8152_v42  ;;  %v11979_v54 = vld [vmem:[#allocation132_spill] sm:$0xff] }
 0x1fe   :  { %7512 = vmatprep.mubr.msk.f32.mxu0 %vm397_vm2, %v11978_v30 }
 0x200   :  { %7071 = vmatmul.mubr.msk.f32.gmra.mrb[60].mxu1 %vm397_vm2, %v8153_v53 }
 0x201   :  { %7513 = vmatmul.mubr.msk.f32.gmra.mrb[28].mxu0 %vm397_vm2, %v11979_v54  ;;  %7073 = vmatprep.mubr.msk.f32.mxu1 %vm397_vm2, %v9682_v40  ;;  %v11990_v40 = vld [vmem:[#allocation13_spill] sm:$0xff] }
 0x202   :  { %7515 = vmatprep.mubr.msk.f32.mxu0 %vm397_vm2, %v4514_v33 }
 0x204   :  { %7074 = vmatmul.mubr.msk.f32.gmra.mrb[62].mxu1 %vm397_vm2, %v9687_v18  ;;  %v11991_v18 = vld [vmem:[#allocation106_spill] sm:$0xff] }
 0x205   :  { %7516 = vmatmul.mubr.msk.f32.gmra.mrb[30].mxu0 %vm397_vm2, %v4516_v10  ;;  %7126 = vmatprep.mubr.msk.f32.mxu1 %vm397_vm2, %v11980_v9 }
 0x206   :  { %7518 = vmatprep.mubr.msk.f32.mxu0 %vm397_vm2, %v9464_v29  ;;  %v11982_v29 = vld [vmem:[#allocation9_spill] sm:$0xff] }
 0x208   :  { %7127 = vmatmul.mubr.msk.f32.vlgmr.msra.gmra.mrb[32].mxu1 %vm397_vm2, %v11981_v12 }
 0x209   :  { %7519 = vmatmul.mubr.msk.f32.gmra.mrb[32].mxu0 %vm397_vm2, %v9479_v7  ;;  %7129 = vmatprep.mubr.msk.f32.mxu1 %vm397_vm2, %v11923_v15  ;;  %v11983_v7 = vld [vmem:[#allocation98_spill] sm:$0xff] }
 0x20a   :  { %7521 = vmatprep.mubr.msk.f32.mxu0 %vm397_vm2, %v9483_v37  ;;  %v11984_v37 = vld [vmem:[#allocation10_spill] sm:$0xff] }
 0x20b   :  { %v11995_v15 = vld [vmem:[#allocation110_spill] sm:$0xff] }
 0x20c   :  { %7130 = vmatmul.mubr.msk.f32.gmra.mrb[34].mxu1 %vm397_vm2, %v11924_v62  ;;  %v11996_v62 = vld [vmem:[#allocation16_spill] sm:$0xff] }
 0x20d   :  { %7522 = vmatmul.mubr.msk.f32.gmra.mrb[34].mxu0 %vm397_vm2, %v9499_v2  ;;  %7132 = vmatprep.mubr.msk.f32.mxu1 %vm397_vm2, %v11925_v19  ;;  %v11985_v2 = vld [vmem:[#allocation100_spill] sm:$0xff] }
 0x20e   :  { %7524 = vmatprep.mubr.msk.f32.mxu0 %vm397_vm2, %v11889_v17  ;;  %v11993_v17 = vld [vmem:[#allocation108_spill] sm:$0xff] }
 0x20f   :  { %v11997_v19 = vld [vmem:[#allocation112_spill] sm:$0xff] }
 0x210   :  { %7133 = vmatmul.mubr.msk.f32.gmra.mrb[36].mxu1 %vm397_vm2, %v11926_v25  ;;  %v11998_v25 = vld [vmem:[#allocation20_spill] sm:$0xff] }
 0x211   :  { %7525 = vmatmul.mubr.msk.f32.gmra.mrb[36].mxu0 %vm397_vm2, %v9516_v20  ;;  %7135 = vmatprep.mubr.msk.f32.mxu1 %vm397_vm2, %v11927_v56  ;;  %v11986_v20 = vld [vmem:[#allocation11_spill] sm:$0xff]  ;;  %v11999_v56 = vld [vmem:[#allocation114_spill] sm:$0xff] }
 0x212   :  { %7527 = vmatprep.mubr.msk.f32.mxu0 %vm397_vm2, %v9520_v51  ;;  %v11987_v51 = vld [vmem:[#allocation102_spill] sm:$0xff] }
 0x214   :  { %7136 = vmatmul.mubr.msk.f32.gmra.mrb[38].mxu1 %vm397_vm2, %v11928_v43  ;;  %v12000_v43 = vld [vmem:[#allocation23_spill] sm:$0xff] }
 0x215   :  { %7528 = vmatmul.mubr.msk.f32.gmra.mrb[38].mxu0 %vm397_vm2, %v9533_v32  ;;  %7138 = vmatprep.mubr.msk.f32.mxu1 %vm397_vm2, %v11930_v39  ;;  %v11988_v32 = vld [vmem:[#allocation12_spill] sm:$0xff] }
 0x216   :  { %7530 = vmatprep.mubr.msk.f32.mxu0 %vm397_vm2, %v11894_v46  ;;  %v11994_v46 = vld [vmem:[#allocation15_spill] sm:$0xff]  ;;  %v12001_v39 = vld [vmem:[#allocation116_spill] sm:$0xff] }
 0x218   :  { %7139 = vmatmul.mubr.msk.f32.gmra.mrb[40].mxu1 %vm397_vm2, %v11932_v41  ;;  %v12002_v41 = vld [vmem:[#allocation24_spill] sm:$0xff] }
 0x219   :  { %7531 = vmatmul.mubr.msk.f32.gmra.mrb[40].mxu0 %vm397_vm2, %v9550_v60  ;;  %7141 = vmatprep.mubr.msk.f32.mxu1 %vm397_vm2, %v11934_v55  ;;  %v11989_v60 = vld [vmem:[#allocation104_spill] sm:$0xff]  ;;  %v11992_v55 = vld [vmem:[#allocation14_spill] sm:$0xff] }
 0x21a   :  { %7533 = vmatprep.mubr.msk.f32.mxu0 %vm397_vm2, %v11982_v29 }
 0x21c   :  { %7142 = vmatmul.mubr.msk.f32.gmra.mrb[42].mxu1 %vm397_vm2, %v11983_v7 }
 0x21d   :  { %7534 = vmatmul.mubr.msk.f32.gmra.mrb[42].mxu0 %vm397_vm2, %v11984_v37  ;;  %7144 = vmatprep.mubr.msk.f32.mxu1 %vm397_vm2, %v11985_v2 }
 0x21e   :  { %7536 = vmatprep.mubr.msk.f32.mxu0 %vm397_vm2, %v11986_v20 }
 0x220   :  { %7145 = vmatmul.mubr.msk.f32.gmra.mrb[44].mxu1 %vm397_vm2, %v11987_v51 }
 0x221   :  { %7537 = vmatmul.mubr.msk.f32.gmra.mrb[44].mxu0 %vm397_vm2, %v11988_v32  ;;  %7147 = vmatprep.mubr.msk.f32.mxu1 %vm397_vm2, %v11989_v60 }
 0x222   :  { %7539 = vmatprep.mubr.msk.f32.mxu0 %vm397_vm2, %v11990_v40 }
 0x224   :  { %7148 = vmatmul.mubr.msk.f32.gmra.mrb[46].mxu1 %vm397_vm2, %v11991_v18 }
 0x225   :  { %7540 = vmatmul.mubr.msk.f32.gmra.mrb[46].mxu0 %vm397_vm2, %v11992_v55  ;;  %7150 = vmatprep.mubr.msk.f32.mxu1 %vm397_vm2, %v11993_v17 }
 0x226   :  { %7542 = vmatprep.mubr.msk.f32.mxu0 %vm397_vm2, %v11994_v46 }
 0x228   :  { %7151 = vmatmul.mubr.msk.f32.gmra.mrb[48].mxu1 %vm397_vm2, %v11995_v15 }
 0x229   :  { %7543 = vmatmul.mubr.msk.f32.gmra.mrb[48].mxu0 %vm397_vm2, %v11996_v62  ;;  %7153 = vmatprep.mubr.msk.f32.mxu1 %vm397_vm2, %v11997_v19  ;;  %v10866_v62 = vld [vmem:[%s11385_s2] ss:$0 sm:$0xff] }
 0x22a   :  { %7545 = vmatprep.mubr.msk.f32.mxu0 %vm397_vm2, %v11998_v25 }
 0x22c   :  { %7154 = vmatmul.mubr.msk.f32.gmra.mrb[50].mxu1 %vm397_vm2, %v11999_v56 }
 0x22d   :  { %7546 = vmatmul.mubr.msk.f32.gmra.mrb[50].mxu0 %vm397_vm2, %v12000_v43  ;;  %7156 = vmatprep.mubr.msk.f32.mxu1 %vm397_vm2, %v12001_v39 }
 0x22e   :  { %7548 = vmatprep.mubr.msk.f32.mxu0 %vm397_vm2, %v12002_v41 }
 0x230   :  { %7157 = vmatmul.mubr.msk.f32.gmra.mrb[52].mxu1 %vm397_vm2, %v12003_v4 }
 0x231   :  { %7549 = vmatmul.mubr.msk.f32.gmra.mrb[52].mxu0 %vm397_vm2, %v12004_v63  ;;  %7159 = vmatprep.mubr.msk.f32.mxu1 %vm397_vm2, %v12005_v34 }
 0x232   :  { %7551 = vmatprep.mubr.msk.f32.mxu0 %vm397_vm2, %v12006_v24 }
 0x234   :  { %7160 = vmatmul.mubr.msk.f32.gmra.mrb[54].mxu1 %vm397_vm2, %v12007_v52 }
 0x235   :  { %7552 = vmatmul.mubr.msk.f32.gmra.mrb[54].mxu0 %vm397_vm2, %v12008_v6  ;;  %7162 = vmatprep.mubr.msk.f32.mxu1 %vm397_vm2, %v12009_v36 }
 0x236   :  { %7554 = vmatprep.mubr.msk.f32.mxu0 %vm397_vm2, %v12010_v28 }
 0x238   :  { %7163 = vmatmul.mubr.msk.f32.gmra.mrb[56].mxu1 %vm397_vm2, %v12011_v50 }
 0x239   :  { %7555 = vmatmul.mubr.msk.f32.gmra.mrb[56].mxu0 %vm397_vm2, %v12012_v38  ;;  %7165 = vmatprep.mubr.msk.f32.mxu1 %vm397_vm2, %v12013_v58 }
 0x23a   :  { %7557 = vmatprep.mubr.msk.f32.mxu0 %vm397_vm2, %v12014_v47 }
 0x23c   :  { %7166 = vmatmul.mubr.msk.f32.gmra.mrb[58].mxu1 %vm397_vm2, %v12017_v16 }
 0x23d   :  { %7558 = vmatmul.mubr.msk.f32.gmra.mrb[58].mxu0 %vm397_vm2, %v12018_v48  ;;  %7168 = vmatprep.mubr.msk.f32.mxu1 %vm397_vm2, %v12019_v61 }
 0x23e   :  { %7560 = vmatprep.mubr.msk.f32.mxu0 %vm397_vm2, %v12020_v26 }
 0x240   :  { %7169 = vmatmul.mubr.msk.f32.gmra.mrb[60].mxu1 %vm397_vm2, %v11973_v14 }
 0x241   :  { %7561 = vmatmul.mubr.msk.f32.gmra.mrb[60].mxu0 %vm397_vm2, %v12021_v59  ;;  %7171 = vmatprep.mubr.msk.f32.mxu1 %vm397_vm2, %v10456_v45 }
 0x242   :  { %7563 = vmatprep.mubr.msk.f32.mxu0 %vm397_vm2, %v4519_v1 }
 0x244   :  { %7172 = vmatmul.mubr.msk.f32.gmra.mrb[62].mxu1 %vm397_vm2, %v10472_v44 }
 0x245   :  { %7564 = vmatmul.mubr.msk.f32.gmra.mrb[62].mxu0 %vm397_vm2, %v4521_v8 }
 0x25b   :  { %v6982_v57 = vpop.f32.mrb[0].mxu1 }
 0x25c   :  { %v2251_v49 = vpop.f32.mrb[1].mxu1 }
 0x25f   :  { %v6985_v27 = vpop.f32.mrb[2].mxu1 }
 0x260   :  { %v2261_v5 = vpop.f32.mrb[3].mxu1 }
 0x263   :  { %v6988_v14 = vpop.f32.mrb[4].mxu1 }
 0x264   :  { %v2271_v35 = vpop.f32.mrb[5].mxu1 }
 0x267   :  { %v10811_v3 = vpop.f32.mrb[6].mxu1 }
 0x268   :  { %v10813_v22 = vpop.f32.mrb[7].mxu1 }
 0x26b   :  { %v10815_v45 = vpop.f32.mrb[8].mxu1 }
 0x26c   :  { %v10817_v42 = vpop.f32.mrb[9].mxu1 }
 0x26f   :  { %v10819_v30 = vpop.f32.mrb[10].mxu1 }
 0x270   :  { %v10821_v11 = vpop.f32.mrb[11].mxu1 }
 0x273   :  { %v10823_v44 = vpop.f32.mrb[12].mxu1 }
 0x274   :  { %v10825_v33 = vpop.f32.mrb[13].mxu1 }
 0x277   :  { %v10827_v53 = vpop.f32.mrb[14].mxu1 }
 0x278   :  { %v10829_v54 = vpop.f32.mrb[15].mxu1 }
 0x27b   :  { %v10831_v10 = vpop.f32.mrb[16].mxu1 }
 0x27c   :  { %v10833_v9 = vpop.f32.mrb[17].mxu1 }
 0x27f   :  { %v10835_v12 = vpop.f32.mrb[18].mxu1 }
 0x280   :  { %v10837_v29 = vpop.f32.mrb[19].mxu1 }
 0x283   :  { %v10839_v7 = vpop.f32.mrb[20].mxu1 }
 0x284   :  { %v10841_v37 = vpop.f32.mrb[21].mxu1 }
 0x287   :  { %v10843_v2 = vpop.f32.mrb[22].mxu1 }
 0x288   :  { %v10845_v20 = vpop.f32.mrb[23].mxu1 }
 0x28b   :  { %v10847_v51 = vpop.f32.mrb[24].mxu1 }
 0x28c   :  { %v10849_v32 = vpop.f32.mrb[25].mxu1 }
 0x28f   :  { %v10851_v60 = vpop.f32.mrb[26].mxu1 }
 0x290   :  { %v10853_v40 = vpop.f32.mrb[27].mxu1 }
 0x293   :  { %v10855_v18 = vpop.f32.mrb[28].mxu1 }
 0x294   :  { %v10857_v55 = vpop.f32.mrb[29].mxu1 }
 0x297   :  { %v10859_v17 = vpop.f32.mrb[30].mxu1 }
 0x298   :  { %v10861_v46 = vpop.f32.mrb[31].mxu1 }
 0x29c   :  { %v7472_v15 = vpop.f32.mrb[0].mxu0 }
 0x29d   :  { %v7568_v19 = vadd.f32 %v7472_v15, %v6982_v57  ;;  %v4599_v25 = vpop.f32.mrb[1].mxu0 }
 0x29e   :  { %v7569_v56 = vadd.f32 %v4599_v25, %v2251_v49 }
 0x29f   :  { %v4990_v43 = vadd.f32 %v7568_v19, %v10866_v62  ;;  %v8203_v19 = vmov 0.0  }
 0x2a0   :  { %v4989_v39 = vadd.f32 %v7569_v56, %v10866_v62  ;;  %v7475_v41 = vpop.f32.mrb[2].mxu0  ;;  %5122 = vst.msk [vmem:[#allocation2] sm:$0x1] %vm5121_vm4, %v8203_v19  ;;  %5123 = vst.msk [vmem:[#allocation4] sm:$0x1] %vm5121_vm4, %v8203_v19 }
 0x2a1   :  { %5054 = vst.msk [vmem:[%s11388_s5 + $0x8] sm:$0xff] %vm397_vm2, %v4990_v43  ;;  %v5126_v4 = vsel %vm397_vm2, %v4990_v43, 0.0  ;;  %v5263_v63 = vmul.f32 %v4990_v43, %v4990_v43  ;;  %v7570_v34 = vadd.f32 %v7475_v41, %v6985_v27  ;;  %v4609_v24 = vpop.f32.mrb[3].mxu0 }
 0x2a2   :  { %5053 = vst.msk [vmem:[%s11388_s5] sm:$0xff] %vm397_vm2, %v4989_v39  ;;  %v5125_v52 = vsel %vm397_vm2, %v4989_v39, 0.0  ;;  %v5262_v6 = vmul.f32 %v4989_v39, %v4989_v39  ;;  %v7571_v36 = vadd.f32 %v4609_v24, %v2261_v5 }
 0x2a3   :  { %v5327_v28 = vsel %vm397_vm2, %v5263_v63, 0.0  ;;  %v5127_v50 = vadd.f32 %v5126_v4, %v5125_v52  ;;  %v4992_v38 = vadd.f32 %v7570_v34, %v10866_v62 }
 0x2a4   :  { %v5326_v58 = vsel %vm397_vm2, %v5262_v6, 0.0  ;;  %v4991_v47 = vadd.f32 %v7571_v36, %v10866_v62  ;;  %v7478_v21 = vpop.f32.mrb[4].mxu0 }
 0x2a5   :  { %v5328_v23 = vadd.f32 %v5327_v28, %v5326_v58  ;;  %5056 = vst.msk [vmem:[%s11388_s5 + $0x18] sm:$0xff] %vm397_vm2, %v4992_v38  ;;  %v5265_v13 = vmul.f32 %v4992_v38, %v4992_v38  ;;  %v7572_v0 = vadd.f32 %v7478_v21, %v6988_v14  ;;  %v4619_v16 = vpop.f32.mrb[5].mxu0  ;;  %v5130_v59 = vsel %vm397_vm2, %v4992_v38, 0.0 }
 0x2a6   :  { %5055 = vst.msk [vmem:[%s11388_s5 + $0x10] sm:$0xff] %vm397_vm2, %v4991_v47  ;;  %v5128_v48 = vsel %vm397_vm2, %v4991_v47, 0.0  ;;  %v5264_v61 = vmul.f32 %v4991_v47, %v4991_v47  ;;  %v7573_v26 = vadd.f32 %v4619_v16, %v2271_v35 }
 0x2a7   :  { %v5129_v31 = vadd.f32 %v5128_v48, %v5127_v50  ;;  %v4994_v1 = vadd.f32 %v7572_v0, %v10866_v62  ;;  %v5331_v27 = vsel %vm397_vm2, %v5265_v13, 0.0 }
 0x2a8   :  { %v5329_v8 = vsel %vm397_vm2, %v5264_v61, 0.0  ;;  %v4993_v57 = vadd.f32 %v7573_v26, %v10866_v62  ;;  %v7481_v49 = vpop.f32.mrb[6].mxu0 }
 0x2a9   :  { %v5131_v5 = vadd.f32 %v5130_v59, %v5129_v31  ;;  %v5330_v14 = vadd.f32 %v5329_v8, %v5328_v23  ;;  %5058 = vst.msk [vmem:[%s11388_s5 + $0x28] sm:$0xff] %vm397_vm2, %v4994_v1  ;;  %v5267_v35 = vmul.f32 %v4994_v1, %v4994_v1  ;;  %v4629_v15 = vpop.f32.mrb[7].mxu0  ;;  %v7574_v43 = vadd.f32 %v7481_v49, %v10811_v3 }
 0x2aa   :  { %5057 = vst.msk [vmem:[%s11388_s5 + $0x20] sm:$0xff] %vm397_vm2, %v4993_v57  ;;  %v5132_v25 = vsel %vm397_vm2, %v4993_v57, 0.0  ;;  %v5266_v56 = vmul.f32 %v4993_v57, %v4993_v57  ;;  %v7575_v39 = vadd.f32 %v4629_v15, %v10813_v22  ;;  %v5134_v63 = vsel %vm397_vm2, %v4994_v1, 0.0 }
 0x2ab   :  { %v5332_v41 = vadd.f32 %v5331_v27, %v5330_v14  ;;  %v5133_v4 = vadd.f32 %v5132_v25, %v5131_v5  ;;  %v4996_v24 = vadd.f32 %v7574_v43, %v10866_v62  ;;  %v5335_v3 = vsel %vm397_vm2, %v5267_v35, 0.0 }
 0x2ac   :  { %v5333_v34 = vsel %vm397_vm2, %v5266_v56, 0.0  ;;  %v4995_v52 = vadd.f32 %v7575_v39, %v10866_v62  ;;  %v7484_v6 = vpop.f32.mrb[8].mxu0 }
 0x2ad   :  { %v5334_v36 = vadd.f32 %v5333_v34, %v5332_v41  ;;  %v5135_v28 = vadd.f32 %v5134_v63, %v5133_v4  ;;  %v7576_v50 = vadd.f32 %v7484_v6, %v10815_v45  ;;  %v4639_v38 = vpop.f32.mrb[9].mxu0  ;;  %5060 = vst.msk [vmem:[%s11388_s5 + $0x38] sm:$0xff] %vm397_vm2, %v4996_v24  ;;  %v5269_v22 = vmul.f32 %v4996_v24, %v4996_v24 }
 0x2ae   :  { %5059 = vst.msk [vmem:[%s11388_s5 + $0x30] sm:$0xff] %vm397_vm2, %v4995_v52  ;;  %v5136_v58 = vsel %vm397_vm2, %v4995_v52, 0.0  ;;  %v5268_v47 = vmul.f32 %v4995_v52, %v4995_v52  ;;  %v7577_v13 = vadd.f32 %v4639_v38, %v10817_v42  ;;  %v5138_v48 = vsel %vm397_vm2, %v4996_v24, 0.0 }
 0x2af   :  { %v5336_v21 = vadd.f32 %v5335_v3, %v5334_v36  ;;  %v5137_v23 = vadd.f32 %v5136_v58, %v5135_v28  ;;  %v4998_v45 = vadd.f32 %v7576_v50, %v10866_v62  ;;  %v5339_v61 = vsel %vm397_vm2, %v5269_v22, 0.0 }
 0x2b0   :  { %v5337_v0 = vsel %vm397_vm2, %v5268_v47, 0.0  ;;  %v7487_v16 = vpop.f32.mrb[10].mxu0  ;;  %v4997_v31 = vadd.f32 %v7577_v13, %v10866_v62 }
 0x2b1   :  { %v5338_v26 = vadd.f32 %v5337_v0, %v5336_v21  ;;  %5062 = vst.msk [vmem:[%s11388_s5 + $0x48] sm:$0xff] %vm397_vm2, %v4998_v45  ;;  %v4649_v1 = vpop.f32.mrb[11].mxu0  ;;  %v5271_v59 = vmul.f32 %v4998_v45, %v4998_v45  ;;  %v5139_v8 = vadd.f32 %v5138_v48, %v5137_v23  ;;  %v7578_v42 = vadd.f32 %v7487_v16, %v10819_v30 }
 0x2b2   :  { %v7579_v57 = vadd.f32 %v4649_v1, %v10821_v11  ;;  %5061 = vst.msk [vmem:[%s11388_s5 + $0x40] sm:$0xff] %vm397_vm2, %v4997_v31  ;;  %v5140_v49 = vsel %vm397_vm2, %v4997_v31, 0.0  ;;  %v5270_v27 = vmul.f32 %v4997_v31, %v4997_v31  ;;  %v5142_v25 = vsel %vm397_vm2, %v4998_v45, 0.0 }
 0x2b3   :  { %v5340_v5 = vadd.f32 %v5339_v61, %v5338_v26  ;;  %v5141_v14 = vadd.f32 %v5140_v49, %v5139_v8  ;;  %v5000_v35 = vadd.f32 %v7578_v42, %v10866_v62  ;;  %v5343_v43 = vsel %vm397_vm2, %v5271_v59, 0.0 }
 0x2b4   :  { %v4999_v15 = vadd.f32 %v7579_v57, %v10866_v62  ;;  %v7490_v19 = vpop.f32.mrb[12].mxu0  ;;  %v5341_v30 = vsel %vm397_vm2, %v5270_v27, 0.0 }
 0x2b5   :  { %v7580_v11 = vadd.f32 %v7490_v19, %v10823_v44  ;;  %v4659_v56 = vpop.f32.mrb[13].mxu0  ;;  %v5342_v39 = vadd.f32 %v5341_v30, %v5340_v5  ;;  %5064 = vst.msk [vmem:[%s11388_s5 + $0x58] sm:$0xff] %vm397_vm2, %v5000_v35  ;;  %v5273_v41 = vmul.f32 %v5000_v35, %v5000_v35  ;;  %v5143_v4 = vadd.f32 %v5142_v25, %v5141_v14 }
 0x2b6   :  { %5063 = vst.msk [vmem:[%s11388_s5 + $0x50] sm:$0xff] %vm397_vm2, %v4999_v15  ;;  %v5144_v63 = vsel %vm397_vm2, %v4999_v15, 0.0  ;;  %v5272_v34 = vmul.f32 %v4999_v15, %v4999_v15  ;;  %v7581_v24 = vadd.f32 %v4659_v56, %v10825_v33  ;;  %v5146_v28 = vsel %vm397_vm2, %v5000_v35, 0.0 }
 0x2b7   :  { %v5002_v44 = vadd.f32 %v7580_v11, %v10866_v62  ;;  %v5145_v52 = vadd.f32 %v5144_v63, %v5143_v4  ;;  %v5344_v6 = vadd.f32 %v5343_v43, %v5342_v39  ;;  %v5347_v23 = vsel %vm397_vm2, %v5273_v41, 0.0 }
 0x2b8   :  { %v7493_v36 = vpop.f32.mrb[14].mxu0  ;;  %v5345_v50 = vsel %vm397_vm2, %v5272_v34, 0.0  ;;  %v5001_v3 = vadd.f32 %v7581_v24, %v10866_v62 }
 0x2b9   :  { %5066 = vst.msk [vmem:[%s11388_s5 + $0x68] sm:$0xff] %vm397_vm2, %v5002_v44  ;;  %v5275_v38 = vmul.f32 %v5002_v44, %v5002_v44  ;;  %v4669_v22 = vpop.f32.mrb[15].mxu0  ;;  %v5346_v58 = vadd.f32 %v5345_v50, %v5344_v6  ;;  %v5147_v47 = vadd.f32 %v5146_v28, %v5145_v52  ;;  %v7582_v33 = vadd.f32 %v7493_v36, %v10827_v53 }
 0x2ba   :  { %v7583_v21 = vadd.f32 %v4669_v22, %v10829_v54  ;;  %5065 = vst.msk [vmem:[%s11388_s5 + $0x60] sm:$0xff] %vm397_vm2, %v5001_v3  ;;  %v5148_v45 = vsel %vm397_vm2, %v5001_v3, 0.0  ;;  %v5274_v13 = vmul.f32 %v5001_v3, %v5001_v3  ;;  %v5150_v53 = vsel %vm397_vm2, %v5002_v44, 0.0 }
 0x2bb   :  { %v5149_v0 = vadd.f32 %v5148_v45, %v5147_v47  ;;  %v5348_v16 = vadd.f32 %v5347_v23, %v5346_v58  ;;  %v5004_v48 = vadd.f32 %v7582_v33, %v10866_v62  ;;  %v5351_v59 = vsel %vm397_vm2, %v5275_v38, 0.0 }
 0x2bc   :  { %v5003_v61 = vadd.f32 %v7583_v21, %v10866_v62  ;;  %v7496_v26 = vpop.f32.mrb[16].mxu0  ;;  %v5349_v54 = vsel %vm397_vm2, %v5274_v13, 0.0 }
 0x2bd   :  { %v7584_v31 = vadd.f32 %v7496_v26, %v10831_v10  ;;  %v4679_v1 = vpop.f32.mrb[17].mxu0  ;;  %v5350_v8 = vadd.f32 %v5349_v54, %v5348_v16  ;;  %5068 = vst.msk [vmem:[%s11388_s5 + $0x78] sm:$0xff] %vm397_vm2, %v5004_v48  ;;  %v5277_v42 = vmul.f32 %v5004_v48, %v5004_v48  ;;  %v5151_v57 = vadd.f32 %v5150_v53, %v5149_v0 }
 0x2be   :  { %5067 = vst.msk [vmem:[%s11388_s5 + $0x70] sm:$0xff] %vm397_vm2, %v5003_v61  ;;  %v5152_v49 = vsel %vm397_vm2, %v5003_v61, 0.0  ;;  %v5276_v27 = vmul.f32 %v5003_v61, %v5003_v61  ;;  %v7585_v5 = vadd.f32 %v4679_v1, %v10833_v9  ;;  %v5154_v19 = vsel %vm397_vm2, %v5004_v48, 0.0 }
 0x2bf   :  { %v5006_v10 = vadd.f32 %v7584_v31, %v10866_v62  ;;  %v5153_v14 = vadd.f32 %v5152_v49, %v5151_v57  ;;  %v5352_v35 = vadd.f32 %v5351_v59, %v5350_v8  ;;  %v5355_v4 = vsel %vm397_vm2, %v5277_v42, 0.0 }
 0x2c0   :  { %v7499_v15 = vpop.f32.mrb[18].mxu0  ;;  %v5353_v25 = vsel %vm397_vm2, %v5276_v27, 0.0  ;;  %v5005_v11 = vadd.f32 %v7585_v5, %v10866_v62 }
 0x2c1   :  { %5070 = vst.msk [vmem:[%s11388_s5 + $0x88] sm:$0xff] %vm397_vm2, %v5006_v10  ;;  %v5279_v30 = vmul.f32 %v5006_v10, %v5006_v10  ;;  %v4689_v56 = vpop.f32.mrb[19].mxu0  ;;  %v5354_v43 = vadd.f32 %v5353_v25, %v5352_v35  ;;  %v5155_v39 = vadd.f32 %v5154_v19, %v5153_v14  ;;  %v7586_v9 = vadd.f32 %v7499_v15, %v10835_v12 }
 0x2c2   :  { %v7587_v41 = vadd.f32 %v4689_v56, %v10837_v29  ;;  %5069 = vst.msk [vmem:[%s11388_s5 + $0x80] sm:$0xff] %vm397_vm2, %v5005_v11  ;;  %v5156_v63 = vsel %vm397_vm2, %v5005_v11, 0.0  ;;  %v5278_v34 = vmul.f32 %v5005_v11, %v5005_v11  ;;  %v5158_v12 = vsel %vm397_vm2, %v5006_v10, 0.0 }
 0x2c3   :  { %v5157_v44 = vadd.f32 %v5156_v63, %v5155_v39  ;;  %v5356_v24 = vadd.f32 %v5355_v4, %v5354_v43  ;;  %v5008_v52 = vadd.f32 %v7586_v9, %v10866_v62  ;;  %v5359_v38 = vsel %vm397_vm2, %v5279_v30, 0.0 }
 0x2c4   :  { %v5007_v6 = vadd.f32 %v7587_v41, %v10866_v62  ;;  %v7502_v36 = vpop.f32.mrb[20].mxu0  ;;  %v5357_v29 = vsel %vm397_vm2, %v5278_v34, 0.0 }
 0x2c5   :  { %v7588_v28 = vadd.f32 %v7502_v36, %v10839_v7  ;;  %v4699_v50 = vpop.f32.mrb[21].mxu0  ;;  %v5358_v3 = vadd.f32 %v5357_v29, %v5356_v24  ;;  %5072 = vst.msk [vmem:[%s11388_s5 + $0x98] sm:$0xff] %vm397_vm2, %v5008_v52  ;;  %v5281_v22 = vmul.f32 %v5008_v52, %v5008_v52  ;;  %v5159_v58 = vadd.f32 %v5158_v12, %v5157_v44 }
 0x2c6   :  { %5071 = vst.msk [vmem:[%s11388_s5 + $0x90] sm:$0xff] %vm397_vm2, %v5007_v6  ;;  %v5160_v47 = vsel %vm397_vm2, %v5007_v6, 0.0  ;;  %v5280_v33 = vmul.f32 %v5007_v6, %v5007_v6  ;;  %v7589_v21 = vadd.f32 %v4699_v50, %v10841_v37  ;;  %v5162_v0 = vsel %vm397_vm2, %v5008_v52, 0.0 }
 0x2c7   :  { %v5010_v7 = vadd.f32 %v7588_v28, %v10866_v62  ;;  %v5161_v23 = vadd.f32 %v5160_v47, %v5159_v58  ;;  %v5360_v45 = vadd.f32 %v5359_v38, %v5358_v3  ;;  %v5363_v1 = vsel %vm397_vm2, %v5281_v22, 0.0 }
 0x2c8   :  { %v7505_v13 = vpop.f32.mrb[22].mxu0  ;;  %v5361_v16 = vsel %vm397_vm2, %v5280_v33, 0.0  ;;  %v5009_v61 = vadd.f32 %v7589_v21, %v10866_v62 }
 0x2c9   :  { %5074 = vst.msk [vmem:[%s11388_s5 + $0xa8] sm:$0xff] %vm397_vm2, %v5010_v7  ;;  %v5283_v48 = vmul.f32 %v5010_v7, %v5010_v7  ;;  %v4709_v26 = vpop.f32.mrb[23].mxu0  ;;  %v5362_v53 = vadd.f32 %v5361_v16, %v5360_v45  ;;  %v5163_v54 = vadd.f32 %v5162_v0, %v5161_v23  ;;  %v7590_v37 = vadd.f32 %v7505_v13, %v10843_v2 }
 0x2ca   :  { %v7591_v31 = vadd.f32 %v4709_v26, %v10845_v20  ;;  %5073 = vst.msk [vmem:[%s11388_s5 + $0xa0] sm:$0xff] %vm397_vm2, %v5009_v61  ;;  %v5164_v59 = vsel %vm397_vm2, %v5009_v61, 0.0  ;;  %v5282_v8 = vmul.f32 %v5009_v61, %v5009_v61  ;;  %v5166_v2 = vsel %vm397_vm2, %v5010_v7, 0.0 }
 0x2cb   :  { %v5165_v42 = vadd.f32 %v5164_v59, %v5163_v54  ;;  %v5364_v57 = vadd.f32 %v5363_v1, %v5362_v53  ;;  %v5012_v49 = vadd.f32 %v7590_v37, %v10866_v62  ;;  %v5367_v35 = vsel %vm397_vm2, %v5283_v48, 0.0 }
 0x2cc   :  { %v5011_v27 = vadd.f32 %v7591_v31, %v10866_v62  ;;  %v7508_v10 = vpop.f32.mrb[24].mxu0  ;;  %v5365_v20 = vsel %vm397_vm2, %v5282_v8, 0.0 }
 0x2cd   :  { %v7592_v5 = vadd.f32 %v7508_v10, %v10847_v51  ;;  %v4719_v14 = vpop.f32.mrb[25].mxu0  ;;  %v5366_v15 = vadd.f32 %v5365_v20, %v5364_v57  ;;  %5076 = vst.msk [vmem:[%s11388_s5 + $0xb8] sm:$0xff] %vm397_vm2, %v5012_v49  ;;  %v5285_v19 = vmul.f32 %v5012_v49, %v5012_v49  ;;  %v5167_v25 = vadd.f32 %v5166_v2, %v5165_v42 }
 0x2ce   :  { %5075 = vst.msk [vmem:[%s11388_s5 + $0xb0] sm:$0xff] %vm397_vm2, %v5011_v27  ;;  %v5168_v30 = vsel %vm397_vm2, %v5011_v27, 0.0  ;;  %v5284_v11 = vmul.f32 %v5011_v27, %v5011_v27  ;;  %v7593_v56 = vadd.f32 %v4719_v14, %v10849_v32  ;;  %v5170_v41 = vsel %vm397_vm2, %v5012_v49, 0.0 }
 0x2cf   :  { %v5014_v51 = vadd.f32 %v7592_v5, %v10866_v62  ;;  %v5169_v43 = vadd.f32 %v5168_v30, %v5167_v25  ;;  %v5368_v39 = vadd.f32 %v5367_v35, %v5366_v15  ;;  %v5371_v36 = vsel %vm397_vm2, %v5285_v19, 0.0 }
 0x2d0   :  { %v7511_v9 = vpop.f32.mrb[26].mxu0  ;;  %v5369_v4 = vsel %vm397_vm2, %v5284_v11, 0.0  ;;  %v5013_v34 = vadd.f32 %v7593_v56, %v10866_v62 }
 0x2d1   :  { %5078 = vst.msk [vmem:[%s11388_s5 + $0xc8] sm:$0xff] %vm397_vm2, %v5014_v51  ;;  %v5287_v63 = vmul.f32 %v5014_v51, %v5014_v51  ;;  %v4729_v44 = vpop.f32.mrb[27].mxu0  ;;  %v5370_v24 = vadd.f32 %v5369_v4, %v5368_v39  ;;  %v5171_v52 = vadd.f32 %v5170_v41, %v5169_v43  ;;  %v7594_v32 = vadd.f32 %v7511_v9, %v10851_v60 }
 0x2d2   :  { %v7595_v6 = vadd.f32 %v4729_v44, %v10853_v40  ;;  %5077 = vst.msk [vmem:[%s11388_s5 + $0xc0] sm:$0xff] %vm397_vm2, %v5013_v34  ;;  %v5172_v12 = vsel %vm397_vm2, %v5013_v34, 0.0  ;;  %v5286_v29 = vmul.f32 %v5013_v34, %v5013_v34  ;;  %v5174_v60 = vsel %vm397_vm2, %v5014_v51, 0.0 }
 0x2d3   :  { %v5173_v28 = vadd.f32 %v5172_v12, %v5171_v52  ;;  %v5372_v50 = vadd.f32 %v5371_v36, %v5370_v24  ;;  %v5016_v38 = vadd.f32 %v7594_v32, %v10866_v62  ;;  %v5375_v33 = vsel %vm397_vm2, %v5287_v63, 0.0 }
 0x2d4   :  { %v5015_v3 = vadd.f32 %v7595_v6, %v10866_v62  ;;  %v7514_v22 = vpop.f32.mrb[28].mxu0  ;;  %v5373_v40 = vsel %vm397_vm2, %v5286_v29, 0.0 }
 0x2d5   :  { %v7596_v58 = vadd.f32 %v7514_v22, %v10855_v18  ;;  %v4739_v47 = vpop.f32.mrb[29].mxu0  ;;  %v5374_v7 = vadd.f32 %v5373_v40, %v5372_v50  ;;  %5080 = vst.msk [vmem:[%s11388_s5 + $0xd8] sm:$0xff] %vm397_vm2, %v5016_v38  ;;  %v5289_v21 = vmul.f32 %v5016_v38, %v5016_v38  ;;  %v5175_v23 = vadd.f32 %v5174_v60, %v5173_v28 }
 0x2d6   :  { %5079 = vst.msk [vmem:[%s11388_s5 + $0xd0] sm:$0xff] %vm397_vm2, %v5015_v3  ;;  %v5176_v45 = vsel %vm397_vm2, %v5015_v3, 0.0  ;;  %v5288_v13 = vmul.f32 %v5015_v3, %v5015_v3  ;;  %v7597_v0 = vadd.f32 %v4739_v47, %v10857_v55  ;;  %v5178_v26 = vsel %vm397_vm2, %v5016_v38, 0.0 }
 0x2d7   :  { %v5018_v18 = vadd.f32 %v7596_v58, %v10866_v62  ;;  %v5177_v16 = vadd.f32 %v5176_v45, %v5175_v23  ;;  %v5376_v48 = vadd.f32 %v5375_v33, %v5374_v7  ;;  %v5379_v42 = vsel %vm397_vm2, %v5289_v21, 0.0 }
 0x2d8   :  { %v7517_v61 = vpop.f32.mrb[30].mxu0  ;;  %v5377_v53 = vsel %vm397_vm2, %v5288_v13, 0.0  ;;  %v5017_v37 = vadd.f32 %v7597_v0, %v10866_v62 }
 0x2d9   :  { %5082 = vst.msk [vmem:[%s11388_s5 + $0xe8] sm:$0xff] %vm397_vm2, %v5018_v18  ;;  %v5291_v54 = vmul.f32 %v5018_v18, %v5018_v18  ;;  %v4749_v31 = vpop.f32.mrb[31].mxu0  ;;  %v5378_v1 = vadd.f32 %v5377_v53, %v5376_v48  ;;  %v5179_v59 = vadd.f32 %v5178_v26, %v5177_v16  ;;  %v7598_v55 = vadd.f32 %v7517_v61, %v10859_v17 }
 0x2da   :  { %v7599_v8 = vadd.f32 %v4749_v31, %v10861_v46  ;;  %5081 = vst.msk [vmem:[%s11388_s5 + $0xe0] sm:$0xff] %vm397_vm2, %v5017_v37  ;;  %v5180_v57 = vsel %vm397_vm2, %v5017_v37, 0.0  ;;  %v5290_v49 = vmul.f32 %v5017_v37, %v5017_v37  ;;  %v5182_v46 = vsel %vm397_vm2, %v5018_v18, 0.0 }
 0x2db   :  { %v7128_v27 = vpop.f32.mrb[32].mxu1  ;;  %v5181_v10 = vadd.f32 %v5180_v57, %v5179_v59  ;;  %v5380_v2 = vadd.f32 %v5379_v42, %v5378_v1  ;;  %v5020_v20 = vadd.f32 %v7598_v55, %v10866_v62  ;;  %v5383_v25 = vsel %vm397_vm2, %v5291_v54, 0.0 }
 0x2dc   :  { %v5019_v5 = vadd.f32 %v7599_v8, %v10866_v62  ;;  %v7520_v17 = vpop.f32.mrb[32].mxu0  ;;  %v2883_v14 = vpop.f32.mrb[33].mxu1  ;;  %v5381_v35 = vsel %vm397_vm2, %v5290_v49, 0.0 }
 0x2dd   :  { %v7600_v15 = vadd.f32 %v7520_v17, %v7128_v27  ;;  %v4759_v19 = vpop.f32.mrb[33].mxu0  ;;  %v5382_v30 = vadd.f32 %v5381_v35, %v5380_v2  ;;  %5084 = vst.msk [vmem:[%s11388_s5 + $0xf8] sm:$0xff] %vm397_vm2, %v5020_v20  ;;  %v5293_v11 = vmul.f32 %v5020_v20, %v5020_v20  ;;  %v5183_v51 = vadd.f32 %v5182_v46, %v5181_v10 }
 0x2de   :  { %5083 = vst.msk [vmem:[%s11388_s5 + $0xf0] sm:$0xff] %vm397_vm2, %v5019_v5  ;;  %v5184_v56 = vsel %vm397_vm2, %v5019_v5, 0.0  ;;  %v5292_v43 = vmul.f32 %v5019_v5, %v5019_v5  ;;  %v7601_v9 = vadd.f32 %v4759_v19, %v2883_v14  ;;  %v5186_v24 = vsel %vm397_vm2, %v5020_v20, 0.0 }
 0x2df   :  { %v5022_v39 = vadd.f32 %v7600_v15, %v10866_v62  ;;  %v7131_v41 = vpop.f32.mrb[34].mxu1  ;;  %v5185_v4 = vadd.f32 %v5184_v56, %v5183_v51  ;;  %v5384_v63 = vadd.f32 %v5383_v25, %v5382_v30  ;;  %v5387_v38 = vsel %vm397_vm2, %v5293_v11, 0.0 }
 0x2e0   :  { %v7523_v34 = vpop.f32.mrb[34].mxu0  ;;  %v2893_v44 = vpop.f32.mrb[35].mxu1  ;;  %v5385_v52 = vsel %vm397_vm2, %v5292_v43, 0.0  ;;  %v5021_v6 = vadd.f32 %v7601_v9, %v10866_v62 }
 0x2e1   :  { %5086 = vst.msk [vmem:[%s11388_s5 + $0x108] sm:$0xff] %vm397_vm2, %v5022_v39  ;;  %v5295_v32 = vmul.f32 %v5022_v39, %v5022_v39  ;;  %v4769_v36 = vpop.f32.mrb[35].mxu0  ;;  %v5386_v12 = vadd.f32 %v5385_v52, %v5384_v63  ;;  %v5187_v29 = vadd.f32 %v5186_v24, %v5185_v4  ;;  %v7602_v28 = vadd.f32 %v7523_v34, %v7131_v41 }
 0x2e2   :  { %v7603_v50 = vadd.f32 %v4769_v36, %v2893_v44  ;;  %5085 = vst.msk [vmem:[%s11388_s5 + $0x100] sm:$0xff] %vm397_vm2, %v5021_v6  ;;  %v5188_v3 = vsel %vm397_vm2, %v5021_v6, 0.0  ;;  %v5294_v22 = vmul.f32 %v5021_v6, %v5021_v6  ;;  %v5190_v23 = vsel %vm397_vm2, %v5022_v39, 0.0 }
 0x2e3   :  { %v7134_v60 = vpop.f32.mrb[36].mxu1  ;;  %v5189_v40 = vadd.f32 %v5188_v3, %v5187_v29  ;;  %v5388_v58 = vadd.f32 %v5387_v38, %v5386_v12  ;;  %v5024_v47 = vadd.f32 %v7602_v28, %v10866_v62  ;;  %v5391_v0 = vsel %vm397_vm2, %v5295_v32, 0.0 }
 0x2e4   :  { %v5023_v33 = vadd.f32 %v7603_v50, %v10866_v62  ;;  %v7526_v7 = vpop.f32.mrb[36].mxu0  ;;  %v2903_v21 = vpop.f32.mrb[37].mxu1  ;;  %v5389_v45 = vsel %vm397_vm2, %v5294_v22, 0.0 }
 0x2e5   :  { %v7604_v13 = vadd.f32 %v7526_v7, %v7134_v60  ;;  %v4779_v18 = vpop.f32.mrb[37].mxu0  ;;  %v5390_v16 = vadd.f32 %v5389_v45, %v5388_v58  ;;  %5088 = vst.msk [vmem:[%s11388_s5 + $0x118] sm:$0xff] %vm397_vm2, %v5024_v47  ;;  %v5297_v48 = vmul.f32 %v5024_v47, %v5024_v47  ;;  %v5191_v61 = vadd.f32 %v5190_v23, %v5189_v40 }
 0x2e6   :  { %5087 = vst.msk [vmem:[%s11388_s5 + $0x110] sm:$0xff] %vm397_vm2, %v5023_v33  ;;  %v5192_v26 = vsel %vm397_vm2, %v5023_v33, 0.0  ;;  %v5296_v53 = vmul.f32 %v5023_v33, %v5023_v33  ;;  %v7605_v37 = vadd.f32 %v4779_v18, %v2903_v21  ;;  %v5194_v42 = vsel %vm397_vm2, %v5024_v47, 0.0 }
 0x2e7   :  { %v5026_v54 = vadd.f32 %v7604_v13, %v10866_v62  ;;  %v7137_v31 = vpop.f32.mrb[38].mxu1  ;;  %v5193_v1 = vadd.f32 %v5192_v26, %v5191_v61  ;;  %v5392_v59 = vadd.f32 %v5391_v0, %v5390_v16  ;;  %v5395_v14 = vsel %vm397_vm2, %v5297_v48, 0.0 }
 0x2e8   :  { %v7529_v55 = vpop.f32.mrb[38].mxu0  ;;  %v2913_v8 = vpop.f32.mrb[39].mxu1  ;;  %v5393_v57 = vsel %vm397_vm2, %v5296_v53, 0.0  ;;  %v5025_v27 = vadd.f32 %v7605_v37, %v10866_v62 }
 0x2e9   :  { %5090 = vst.msk [vmem:[%s11388_s5 + $0x128] sm:$0xff] %vm397_vm2, %v5026_v54  ;;  %v5299_v49 = vmul.f32 %v5026_v54, %v5026_v54  ;;  %v4789_v10 = vpop.f32.mrb[39].mxu0  ;;  %v5394_v2 = vadd.f32 %v5393_v57, %v5392_v59  ;;  %v5195_v20 = vadd.f32 %v5194_v42, %v5193_v1  ;;  %v7606_v5 = vadd.f32 %v7529_v55, %v7137_v31 }
 0x2ea   :  { %v7607_v17 = vadd.f32 %v4789_v10, %v2913_v8  ;;  %5089 = vst.msk [vmem:[%s11388_s5 + $0x120] sm:$0xff] %vm397_vm2, %v5025_v27  ;;  %v5196_v46 = vsel %vm397_vm2, %v5025_v27, 0.0  ;;  %v5298_v35 = vmul.f32 %v5025_v27, %v5025_v27  ;;  %v5198_v43 = vsel %vm397_vm2, %v5026_v54, 0.0 }
 0x2eb   :  { %v7140_v15 = vpop.f32.mrb[40].mxu1  ;;  %v5197_v19 = vadd.f32 %v5196_v46, %v5195_v20  ;;  %v5396_v25 = vadd.f32 %v5395_v14, %v5394_v2  ;;  %v5028_v30 = vadd.f32 %v7606_v5, %v10866_v62  ;;  %v5399_v4 = vsel %vm397_vm2, %v5299_v49, 0.0 }
 0x2ec   :  { %v5027_v11 = vadd.f32 %v7607_v17, %v10866_v62  ;;  %v7532_v51 = vpop.f32.mrb[40].mxu0  ;;  %v2923_v56 = vpop.f32.mrb[41].mxu1  ;;  %v5397_v39 = vsel %vm397_vm2, %v5298_v35, 0.0 }
 0x2ed   :  { %v7608_v9 = vadd.f32 %v7532_v51, %v7140_v15  ;;  %v4799_v41 = vpop.f32.mrb[41].mxu0  ;;  %v5398_v63 = vadd.f32 %v5397_v39, %v5396_v25  ;;  %5092 = vst.msk [vmem:[%s11388_s5 + $0x138] sm:$0xff] %vm397_vm2, %v5028_v30  ;;  %v5301_v34 = vmul.f32 %v5028_v30, %v5028_v30  ;;  %v5199_v44 = vadd.f32 %v5198_v43, %v5197_v19 }
 0x2ee   :  { %5091 = vst.msk [vmem:[%s11388_s5 + $0x130] sm:$0xff] %vm397_vm2, %v5027_v11  ;;  %v5200_v24 = vsel %vm397_vm2, %v5027_v11, 0.0  ;;  %v5300_v52 = vmul.f32 %v5027_v11, %v5027_v11  ;;  %v7609_v6 = vadd.f32 %v4799_v41, %v2923_v56  ;;  %v5202_v38 = vsel %vm397_vm2, %v5028_v30, 0.0 }
 0x2ef   :  { %v5030_v32 = vadd.f32 %v7608_v9, %v10866_v62  ;;  %v7143_v36 = vpop.f32.mrb[42].mxu1  ;;  %v5201_v12 = vadd.f32 %v5200_v24, %v5199_v44  ;;  %v5400_v29 = vadd.f32 %v5399_v4, %v5398_v63  ;;  %v5403_v21 = vsel %vm397_vm2, %v5301_v34, 0.0 }
 0x2f0   :  { %v7535_v28 = vpop.f32.mrb[42].mxu0  ;;  %v2933_v50 = vpop.f32.mrb[43].mxu1  ;;  %v5401_v3 = vsel %vm397_vm2, %v5300_v52, 0.0  ;;  %v5029_v60 = vadd.f32 %v7609_v6, %v10866_v62 }
 0x2f1   :  { %5094 = vst.msk [vmem:[%s11388_s5 + $0x148] sm:$0xff] %vm397_vm2, %v5030_v32  ;;  %v5303_v22 = vmul.f32 %v5030_v32, %v5030_v32  ;;  %v4809_v40 = vpop.f32.mrb[43].mxu0  ;;  %v5402_v58 = vadd.f32 %v5401_v3, %v5400_v29  ;;  %v5203_v47 = vadd.f32 %v5202_v38, %v5201_v12  ;;  %v7610_v33 = vadd.f32 %v7535_v28, %v7143_v36 }
 0x2f2   :  { %v7611_v7 = vadd.f32 %v4809_v40, %v2933_v50  ;;  %5093 = vst.msk [vmem:[%s11388_s5 + $0x140] sm:$0xff] %vm397_vm2, %v5029_v60  ;;  %v5204_v23 = vsel %vm397_vm2, %v5029_v60, 0.0  ;;  %v5302_v45 = vmul.f32 %v5029_v60, %v5029_v60  ;;  %v5206_v53 = vsel %vm397_vm2, %v5030_v32, 0.0 }
 0x2f3   :  { %v7146_v13 = vpop.f32.mrb[44].mxu1  ;;  %v5205_v18 = vadd.f32 %v5204_v23, %v5203_v47  ;;  %v5404_v0 = vadd.f32 %v5403_v21, %v5402_v58  ;;  %v5032_v16 = vadd.f32 %v7610_v33, %v10866_v62  ;;  %v5407_v1 = vsel %vm397_vm2, %v5303_v22, 0.0 }
 0x2f4   :  { %v5031_v48 = vadd.f32 %v7611_v7, %v10866_v62  ;;  %v7538_v61 = vpop.f32.mrb[44].mxu0  ;;  %v2943_v26 = vpop.f32.mrb[45].mxu1  ;;  %v5405_v54 = vsel %vm397_vm2, %v5302_v45, 0.0 }
 0x2f5   :  { %v7612_v37 = vadd.f32 %v7538_v61, %v7146_v13  ;;  %v4819_v31 = vpop.f32.mrb[45].mxu0  ;;  %v5406_v59 = vadd.f32 %v5405_v54, %v5404_v0  ;;  %5096 = vst.msk [vmem:[%s11388_s5 + $0x158] sm:$0xff] %vm397_vm2, %v5032_v16  ;;  %v5305_v55 = vmul.f32 %v5032_v16, %v5032_v16  ;;  %v5207_v8 = vadd.f32 %v5206_v53, %v5205_v18 }
 0x2f6   :  { %5095 = vst.msk [vmem:[%s11388_s5 + $0x150] sm:$0xff] %vm397_vm2, %v5031_v48  ;;  %v5208_v42 = vsel %vm397_vm2, %v5031_v48, 0.0  ;;  %v5304_v57 = vmul.f32 %v5031_v48, %v5031_v48  ;;  %v7613_v27 = vadd.f32 %v4819_v31, %v2943_v26  ;;  %v5210_v14 = vsel %vm397_vm2, %v5032_v16, 0.0 }
 0x2f7   :  { %v5034_v49 = vadd.f32 %v7612_v37, %v10866_v62  ;;  %v7149_v10 = vpop.f32.mrb[46].mxu1  ;;  %v5209_v2 = vadd.f32 %v5208_v42, %v5207_v8  ;;  %v5408_v20 = vadd.f32 %v5407_v1, %v5406_v59  ;;  %v5411_v56 = vsel %vm397_vm2, %v5305_v55, 0.0 }
 0x2f8   :  { %v7541_v5 = vpop.f32.mrb[46].mxu0  ;;  %v2953_v17 = vpop.f32.mrb[47].mxu1  ;;  %v5409_v46 = vsel %vm397_vm2, %v5304_v57, 0.0  ;;  %v5033_v15 = vadd.f32 %v7613_v27, %v10866_v62 }
 0x2f9   :  { %5098 = vst.msk [vmem:[%s11388_s5 + $0x168] sm:$0xff] %vm397_vm2, %v5034_v49  ;;  %v5307_v35 = vmul.f32 %v5034_v49, %v5034_v49  ;;  %v4829_v19 = vpop.f32.mrb[47].mxu0  ;;  %v5410_v25 = vadd.f32 %v5409_v46, %v5408_v20  ;;  %v5211_v30 = vadd.f32 %v5210_v14, %v5209_v2  ;;  %v7614_v11 = vadd.f32 %v7541_v5, %v7149_v10 }
 0x2fa   :  { %v7615_v51 = vadd.f32 %v4829_v19, %v2953_v17  ;;  %5097 = vst.msk [vmem:[%s11388_s5 + $0x160] sm:$0xff] %vm397_vm2, %v5033_v15  ;;  %v5212_v43 = vsel %vm397_vm2, %v5033_v15, 0.0  ;;  %v5306_v39 = vmul.f32 %v5033_v15, %v5033_v15  ;;  %v5214_v52 = vsel %vm397_vm2, %v5034_v49, 0.0 }
 0x2fb   :  { %v7152_v9 = vpop.f32.mrb[48].mxu1  ;;  %v5213_v41 = vadd.f32 %v5212_v43, %v5211_v30  ;;  %v5412_v4 = vadd.f32 %v5411_v56, %v5410_v25  ;;  %v5036_v63 = vadd.f32 %v7614_v11, %v10866_v62  ;;  %v5415_v12 = vsel %vm397_vm2, %v5307_v35, 0.0 }
 0x2fc   :  { %v5035_v34 = vadd.f32 %v7615_v51, %v10866_v62  ;;  %v7544_v44 = vpop.f32.mrb[48].mxu0  ;;  %v2963_v24 = vpop.f32.mrb[49].mxu1  ;;  %v5413_v32 = vsel %vm397_vm2, %v5306_v39, 0.0 }
 0x2fd   :  { %v7616_v6 = vadd.f32 %v7544_v44, %v7152_v9  ;;  %v4839_v36 = vpop.f32.mrb[49].mxu0  ;;  %v5414_v29 = vadd.f32 %v5413_v32, %v5412_v4  ;;  %5100 = vst.msk [vmem:[%s11388_s5 + $0x178] sm:$0xff] %vm397_vm2, %v5036_v63  ;;  %v5309_v28 = vmul.f32 %v5036_v63, %v5036_v63  ;;  %v5215_v50 = vadd.f32 %v5214_v52, %v5213_v41 }
 0x2fe   :  { %5099 = vst.msk [vmem:[%s11388_s5 + $0x170] sm:$0xff] %vm397_vm2, %v5035_v34  ;;  %v5216_v38 = vsel %vm397_vm2, %v5035_v34, 0.0  ;;  %v5308_v3 = vmul.f32 %v5035_v34, %v5035_v34  ;;  %v7617_v60 = vadd.f32 %v4839_v36, %v2963_v24  ;;  %v5218_v21 = vsel %vm397_vm2, %v5036_v63, 0.0 }
 0x2ff   :  { %v5038_v22 = vadd.f32 %v7616_v6, %v10866_v62  ;;  %v7155_v40 = vpop.f32.mrb[50].mxu1  ;;  %v5217_v58 = vadd.f32 %v5216_v38, %v5215_v50  ;;  %v5416_v47 = vadd.f32 %v5415_v12, %v5414_v29  ;;  %v5419_v26 = vsel %vm397_vm2, %v5309_v28, 0.0  ;;  %v11275_v28 = vld [vmem:[%s11385_s2] ss:$0 sm:$0xff]  ;;  %s8159_s2 = scalar_lea.vmem %s5490_s23, 32 }
 0x300   :  { %v7547_v33 = vpop.f32.mrb[50].mxu0  ;;  %v2973_v7 = vpop.f32.mrb[51].mxu1  ;;  %v5417_v23 = vsel %vm397_vm2, %v5308_v3, 0.0  ;;  %v5037_v13 = vadd.f32 %v7617_v60, %v10866_v62  ;;  %p8161_p2 = scmp.lt.s32.totalorder %s8159_s2, %s8155_s28 }
 0x301   :  { %5102 = vst.msk [vmem:[%s11388_s5 + $0x188] sm:$0xff] %vm397_vm2, %v5038_v22  ;;  %v5311_v45 = vmul.f32 %v5038_v22, %v5038_v22  ;;  %v4849_v18 = vpop.f32.mrb[51].mxu0  ;;  %v5418_v0 = vadd.f32 %v5417_v23, %v5416_v47  ;;  %v5219_v16 = vadd.f32 %v5218_v21, %v5217_v58  ;;  %v7618_v48 = vadd.f32 %v7547_v33, %v7155_v40 }
 0x302   :  { %v7619_v61 = vadd.f32 %v4849_v18, %v2973_v7  ;;  %5101 = vst.msk [vmem:[%s11388_s5 + $0x180] sm:$0xff] %vm397_vm2, %v5037_v13  ;;  %v5220_v53 = vsel %vm397_vm2, %v5037_v13, 0.0  ;;  %v5310_v54 = vmul.f32 %v5037_v13, %v5037_v13  ;;  %v5222_v57 = vsel %vm397_vm2, %v5038_v22, 0.0  ;;  %p8162_p3 = por %p8161_p2, %p8160_p1 }
 0x303   :  { %v7158_v37 = vpop.f32.mrb[52].mxu1  ;;  %v5221_v31 = vadd.f32 %v5220_v53, %v5219_v16  ;;  %v5420_v1 = vadd.f32 %v5419_v26, %v5418_v0  ;;  %v5040_v59 = vadd.f32 %v7618_v48, %v10866_v62  ;;  %v5423_v2 = vsel %vm397_vm2, %v5311_v45, 0.0 }
 0x304   :  { %v5039_v55 = vadd.f32 %v7619_v61, %v10866_v62  ;;  %v7550_v8 = vpop.f32.mrb[52].mxu0  ;;  %v2983_v42 = vpop.f32.mrb[53].mxu1  ;;  %v5421_v49 = vsel %vm397_vm2, %v5310_v54, 0.0  ;;  %p8163_p4 = pnand %p8162_p3, %p8156_p0 }
 0x305   :  { %v7620_v27 = vadd.f32 %v7550_v8, %v7158_v37  ;;  %v4859_v10 = vpop.f32.mrb[53].mxu0  ;;  %v5422_v20 = vadd.f32 %v5421_v49, %v5420_v1  ;;  %5104 = vst.msk [vmem:[%s11388_s5 + $0x198] sm:$0xff] %vm397_vm2, %v5040_v59  ;;  %v5313_v5 = vmul.f32 %v5040_v59, %v5040_v59  ;;  %v5223_v17 = vadd.f32 %v5222_v57, %v5221_v31 }
 0x306   :  { %5103 = vst.msk [vmem:[%s11388_s5 + $0x190] sm:$0xff] %vm397_vm2, %v5039_v55  ;;  %v5224_v14 = vsel %vm397_vm2, %v5039_v55, 0.0  ;;  %v5312_v46 = vmul.f32 %v5039_v55, %v5039_v55  ;;  %v7621_v15 = vadd.f32 %v4859_v10, %v2983_v42  ;;  %v5226_v56 = vsel %vm397_vm2, %v5040_v59, 0.0 }
 0x307   :  { %v5042_v35 = vadd.f32 %v7620_v27, %v10866_v62  ;;  %v7161_v19 = vpop.f32.mrb[54].mxu1  ;;  %v5225_v25 = vadd.f32 %v5224_v14, %v5223_v17  ;;  %v5424_v30 = vadd.f32 %v5423_v2, %v5422_v20  ;;  %v5427_v24 = vsel %vm397_vm2, %v5313_v5, 0.0 }
 0x308   :  { %v7553_v11 = vpop.f32.mrb[54].mxu0  ;;  %v2993_v51 = vpop.f32.mrb[55].mxu1  ;;  %v5425_v43 = vsel %vm397_vm2, %v5312_v46, 0.0  ;;  %v5041_v9 = vadd.f32 %v7621_v15, %v10866_v62 }
 0x309   :  { %5106 = vst.msk [vmem:[%s11388_s5 + $0x1a8] sm:$0xff] %vm397_vm2, %v5042_v35  ;;  %v5315_v39 = vmul.f32 %v5042_v35, %v5042_v35  ;;  %v4869_v41 = vpop.f32.mrb[55].mxu0  ;;  %v5426_v4 = vadd.f32 %v5425_v43, %v5424_v30  ;;  %v5227_v63 = vadd.f32 %v5226_v56, %v5225_v25  ;;  %v7622_v34 = vadd.f32 %v7553_v11, %v7161_v19 }
 0x30a   :  { %v7623_v44 = vadd.f32 %v4869_v41, %v2993_v51  ;;  %5105 = vst.msk [vmem:[%s11388_s5 + $0x1a0] sm:$0xff] %vm397_vm2, %v5041_v9  ;;  %v5228_v52 = vsel %vm397_vm2, %v5041_v9, 0.0  ;;  %v5314_v32 = vmul.f32 %v5041_v9, %v5041_v9  ;;  %v5230_v22 = vsel %vm397_vm2, %v5042_v35, 0.0 }
 0x30b   :  { %v7164_v6 = vpop.f32.mrb[56].mxu1  ;;  %v5229_v36 = vadd.f32 %v5228_v52, %v5227_v63  ;;  %v5428_v12 = vadd.f32 %v5427_v24, %v5426_v4  ;;  %v5044_v29 = vadd.f32 %v7622_v34, %v10866_v62  ;;  %v5431_v47 = vsel %vm397_vm2, %v5315_v39, 0.0 }
 0x30c   :  { %v5043_v50 = vadd.f32 %v11275_v28, %v7623_v44  ;;  %v7556_v38 = vpop.f32.mrb[56].mxu0  ;;  %v3003_v3 = vpop.f32.mrb[57].mxu1  ;;  %v5429_v60 = vsel %vm397_vm2, %v5314_v32, 0.0 }
 0x30d   :  { %v7624_v40 = vadd.f32 %v7556_v38, %v7164_v6  ;;  %v4879_v58 = vpop.f32.mrb[57].mxu0  ;;  %v5430_v33 = vadd.f32 %v5429_v60, %v5428_v12  ;;  %5108 = vst.msk [vmem:[%s11388_s5 + $0x1b8] sm:$0xff] %vm397_vm2, %v5044_v29  ;;  %v5317_v62 = vmul.f32 %v5044_v29, %v5044_v29  ;;  %v5231_v7 = vadd.f32 %v5230_v22, %v5229_v36 }
 0x30e   :  { %5107 = vst.msk [vmem:[%s11388_s5 + $0x1b0] sm:$0xff] %vm397_vm2, %v5043_v50  ;;  %v5232_v21 = vsel %vm397_vm2, %v5043_v50, 0.0  ;;  %v5316_v23 = vmul.f32 %v5043_v50, %v5043_v50  ;;  %v7625_v13 = vadd.f32 %v4879_v58, %v3003_v3  ;;  %v5234_v26 = vsel %vm397_vm2, %v5044_v29, 0.0 }
 0x30f   :  { %v5046_v45 = vadd.f32 %v11275_v28, %v7624_v40  ;;  %v7167_v18 = vpop.f32.mrb[58].mxu1  ;;  %v5233_v0 = vadd.f32 %v5232_v21, %v5231_v7  ;;  %v5432_v16 = vadd.f32 %v5431_v47, %v5430_v33  ;;  %v5435_v42 = vsel %vm397_vm2, %v5317_v62, 0.0 }
 0x310   :  { %v7559_v48 = vpop.f32.mrb[58].mxu0  ;;  %v3013_v61 = vpop.f32.mrb[59].mxu1  ;;  %v5433_v53 = vsel %vm397_vm2, %v5316_v23, 0.0  ;;  %v5045_v37 = vadd.f32 %v11275_v28, %v7625_v13 }
 0x311   :  { %5110 = vst.msk [vmem:[%s11388_s5 + $0x1c8] sm:$0xff] %vm397_vm2, %v5046_v45  ;;  %v5319_v54 = vmul.f32 %v5046_v45, %v5046_v45  ;;  %v4889_v31 = vpop.f32.mrb[59].mxu0  ;;  %v5434_v1 = vadd.f32 %v5433_v53, %v5432_v16  ;;  %v5235_v59 = vadd.f32 %v5234_v26, %v5233_v0  ;;  %v7626_v55 = vadd.f32 %v7559_v48, %v7167_v18 }
 0x312   :  { %v7627_v8 = vadd.f32 %v4889_v31, %v3013_v61  ;;  %5109 = vst.msk [vmem:[%s11388_s5 + $0x1c0] sm:$0xff] %vm397_vm2, %v5045_v37  ;;  %v5236_v57 = vsel %vm397_vm2, %v5045_v37, 0.0  ;;  %v5318_v49 = vmul.f32 %v5045_v37, %v5045_v37  ;;  %v5238_v46 = vsel %vm397_vm2, %v5046_v45, 0.0 }
 0x313   :  { %v7170_v27 = vpop.f32.mrb[60].mxu1  ;;  %v5237_v10 = vadd.f32 %v5236_v57, %v5235_v59  ;;  %v5436_v2 = vadd.f32 %v5435_v42, %v5434_v1  ;;  %v5048_v20 = vadd.f32 %v11275_v28, %v7626_v55  ;;  %v5439_v25 = vsel %vm397_vm2, %v5319_v54, 0.0 }
 0x314   :  { %v5047_v5 = vadd.f32 %v11275_v28, %v7627_v8  ;;  %v7562_v17 = vpop.f32.mrb[60].mxu0  ;;  %v3023_v14 = vpop.f32.mrb[61].mxu1  ;;  %v5437_v35 = vsel %vm397_vm2, %v5318_v49, 0.0 }
 0x315   :  { %v7628_v15 = vadd.f32 %v7562_v17, %v7170_v27  ;;  %v4899_v19 = vpop.f32.mrb[61].mxu0  ;;  %v5438_v30 = vadd.f32 %v5437_v35, %v5436_v2  ;;  %5112 = vst.msk [vmem:[%s11388_s5 + $0x1d8] sm:$0xff] %vm397_vm2, %v5048_v20  ;;  %v5321_v11 = vmul.f32 %v5048_v20, %v5048_v20  ;;  %v5239_v51 = vadd.f32 %v5238_v46, %v5237_v10  ;;  %v5124_v10 = vld [vmem:[#allocation2] sm:$0x1] }
 0x316   :  { %5111 = vst.msk [vmem:[%s11388_s5 + $0x1d0] sm:$0xff] %vm397_vm2, %v5047_v5  ;;  %v5240_v56 = vsel %vm397_vm2, %v5047_v5, 0.0  ;;  %v5320_v43 = vmul.f32 %v5047_v5, %v5047_v5  ;;  %v7629_v9 = vadd.f32 %v4899_v19, %v3023_v14  ;;  %v5242_v24 = vsel %vm397_vm2, %v5048_v20, 0.0  ;;  %v5261_v5 = vld [vmem:[#allocation4] sm:$0x1] }
 0x317   :  { %v5050_v39 = vadd.f32 %v11275_v28, %v7628_v15  ;;  %v7173_v41 = vpop.f32.mrb[62].mxu1  ;;  %v5241_v4 = vadd.f32 %v5240_v56, %v5239_v51  ;;  %v5440_v63 = vadd.f32 %v5439_v25, %v5438_v30  ;;  %v5443_v38 = vsel %vm397_vm2, %v5321_v11, 0.0 }
 0x318   :  { %v7565_v34 = vpop.f32.mrb[62].mxu0  ;;  %v3033_v44 = vpop.f32.mrb[63].mxu1  ;;  %v5441_v52 = vsel %vm397_vm2, %v5320_v43, 0.0  ;;  %v5049_v32 = vadd.f32 %v11275_v28, %v7629_v9  ;;  %v5472_v43 = vld [vmem:[%s11386_s3] sm:$0x1] }
 0x319   :  { %5114 = vst.msk [vmem:[%s11388_s5 + $0x1e8] sm:$0xff] %vm397_vm2, %v5050_v39  ;;  %v4909_v6 = vpop.f32.mrb[63].mxu0  ;;  %v5442_v36 = vadd.f32 %v5441_v52, %v5440_v63  ;;  %v5243_v12 = vadd.f32 %v5242_v24, %v5241_v4  ;;  %v7630_v29 = vadd.f32 %v7565_v34, %v7173_v41  ;;  %v5323_v3 = vmul.f32 %v5050_v39, %v5050_v39  ;;  %v5477_v41 = vld [vmem:[%s11387_s4] sm:$0x1] }
 0x31a   :  { %v7631_v50 = vadd.f32 %v4909_v6, %v3033_v44  ;;  %5113 = vst.msk [vmem:[%s11388_s5 + $0x1e0] sm:$0xff] %vm397_vm2, %v5049_v32  ;;  %v5244_v22 = vsel %vm397_vm2, %v5049_v32, 0.0  ;;  %v5322_v60 = vmul.f32 %v5049_v32, %v5049_v32  ;;  %v5246_v62 = vsel %vm397_vm2, %v5050_v39, 0.0 }
 0x31b   :  { %v5245_v40 = vadd.f32 %v5244_v22, %v5243_v12  ;;  %v5444_v58 = vadd.f32 %v5443_v38, %v5442_v36  ;;  %v5052_v47 = vadd.f32 %v11275_v28, %v7630_v29  ;;  %v5447_v45 = vsel %vm397_vm2, %v5323_v3, 0.0 }
 0x31c   :  { %v5051_v33 = vadd.f32 %v11275_v28, %v7631_v50  ;;  %v5445_v7 = vsel %vm397_vm2, %v5322_v60, 0.0 }
 0x31d   :  { %v5446_v21 = vadd.f32 %v5445_v7, %v5444_v58  ;;  %5116 = vst.msk [vmem:[%s11388_s5 + $0x1f8] sm:$0xff] %vm397_vm2, %v5052_v47  ;;  %v5247_v23 = vadd.f32 %v5246_v62, %v5245_v40  ;;  %v5325_v13 = vmul.f32 %v5052_v47, %v5052_v47  ;;  %v5250_v48 = vsel %vm397_vm2, %v5052_v47, 0.0 }
 0x31e   :  { %5115 = vst.msk [vmem:[%s11388_s5 + $0x1f0] sm:$0xff] %vm397_vm2, %v5051_v33  ;;  %v5248_v28 = vsel %vm397_vm2, %v5051_v33, 0.0  ;;  %v5324_v18 = vmul.f32 %v5051_v33, %v5051_v33 }
 0x31f   :  { %v5249_v0 = vadd.f32 %v5248_v28, %v5247_v23  ;;  %v5448_v16 = vadd.f32 %v5447_v45, %v5446_v21  ;;  %v5451_v54 = vsel %vm397_vm2, %v5325_v13, 0.0 }
 0x320   :  { %v5449_v61 = vsel %vm397_vm2, %v5324_v18, 0.0 }
 0x321   :  { %v5251_v26 = vadd.f32 %v5250_v48, %v5249_v0  ;;  %v5450_v53 = vadd.f32 %v5449_v61, %v5448_v16 }
 0x323   :  { %v5252_v37 = vrot.slane %v5251_v26, 4  ;;  %v5452_v31 = vadd.f32 %v5451_v54, %v5450_v53 }
 0x325   :  { %v5253_v1 = vadd.f32 %v5252_v37, %v5251_v26  ;;  %v5453_v59 = vrot.slane %v5452_v31, 4 }
 0x327   :  { %v5254_v55 = vrot.slane %v5253_v1, 2  ;;  %v5454_v8 = vadd.f32 %v5453_v59, %v5452_v31 }
 0x329   :  { %v5455_v42 = vrot.slane %v5454_v8, 2  ;;  %v5255_v57 = vadd.f32 %v5254_v55, %v5253_v1 }
 0x32b   :  { %v5456_v49 = vadd.f32 %v5455_v42, %v5454_v8  ;;  %v5256_v27 = vrot.slane %v5255_v57, 1 }
 0x32d   :  { %v5457_v2 = vrot.slane %v5456_v49, 1  ;;  %v5257_v20 = vadd.f32 %v5256_v27, %v5255_v57 }
 0x32f   :  { %v5458_v17 = vadd.f32 %v5457_v2, %v5456_v49  ;;  %v5258_v14 = vadd.f32 %v5257_v20, %v5124_v10 }
 0x331   :  { %5260 = vst.msk [vmem:[#allocation2] sm:$0x1] %vm5121_vm4, %v5258_v14  ;;  %v5459_v46 = vadd.f32 %v5458_v17, %v5261_v5 }
 0x333   :  { %5460 = vst.msk [vmem:[#allocation4] sm:$0x1] %vm5121_vm4, %v5459_v46 }
 0x338   :  { %v5464_v35 = vld [vmem:[#allocation2] sm:$0x1] }
 0x339   :  { %v5466_v15 = vmul.f32 0.001953125, %v5464_v35 }
 0x33a   :  { %v5467_v19 = vld [vmem:[#allocation4] sm:$0x1] }
 0x33b   :  { %v5468_v25 = vmul.f32 0.001953125, %v5467_v19  ;;  %v5469_v30 = vmul.f32 %v5466_v15, %v5466_v15 }
 0x33d   :  { %v5470_v11 = vsub.f32 %v5468_v25, %v5469_v30 }
 0x33f   :  { %v5471_v51 = vmax.f32 %v5470_v11, 0.0 }
 0x341   :  { %v5473_v56 = vadd.f32 1e-05, %v5471_v51 }
 0x343   :  { %8083 = vrsqrt.f32 %v5473_v56 }
 0x34d   :  { %v8084_v39 = vpop.eup %8083 }
 0x34e   :  { %v5475_v9 = vmul.f32 %v8084_v39, %v5472_v43 }
 0x350   :  { %5476 = vst.msk [vmem:[#allocation2] sm:$0x1] %vm5121_vm4, %v5475_v9  ;;  %v5478_v4 = vmul.f32 %v5475_v9, %v5466_v15 }
 0x351   :  { %8166 = shalt.err (!%p8163_p4)
}
 0x352   :  { %s8167_s30 = scalar_lea.hbm %s11389_s6, 16 }
 0x353   :  { %p8168_p5 = scmp.ne.s32.totalorder %s11389_s6, %s8167_s30  ;;  %p8171_p6 = scmp.lt.u32.totalorder %s8167_s30, %s11389_s6 }
 0x355   :  { %p8173_p7 = pnand %p8171_p6, %p8168_p5 }
 0x357   :  { %8176 = shalt.err (!%p8173_p7)
}
 0x358   :  { %5492 = dma.vmem_to_hbm [thread:$0]  %s5490_s23, 16, %s11389_s6, [#allocation3]   ;;  %v5479_v63 = vsub.f32 %v5477_v41, %v5478_v4 }
 0x359   :  { %s8177_s12 = scalar_lea.vmem %s5500_s27, 16  ;;  %s8181_s13 = scalar_lea.vmem %s5500_s27, 32 }
 0x35a   :  { %5480 = vst.msk [vmem:[#allocation4] sm:$0x1] %vm5121_vm4, %v5479_v63  ;;  %p8178_p8 = scmp.ne.s32.totalorder %s5500_s27, %s8177_s12  ;;  %p8182_p9 = scmp.lt.s32.totalorder %s5500_s27, %s5500_s27 }
 0x35b   :  { %p8183_p10 = scmp.lt.s32.totalorder %s8181_s13, %s8177_s12 }
 0x35d   :  { %p8184_p11 = por %p8183_p10, %p8182_p9 }
 0x35f   :  { %p8185_p12 = pnand %p8184_p11, %p8178_p8 }
 0x361   :  { %8188 = shalt.err (!%p8185_p12)
}
 0x362   :  { %s8189_s0 = scalar_lea.hbm %s11390_s7, 16 }
 0x363   :  { %p8190_p13 = scmp.ne.s32.totalorder %s11390_s7, %s8189_s0  ;;  %p8193_p0 = scmp.lt.u32.totalorder %s8189_s0, %s11390_s7 }
 0x365   :  { %p8195_p1 = pnand %p8193_p0, %p8190_p13 }
 0x367   :  { %8198 = shalt.err (!%p8195_p1)
}
 0x368   :  { %5502 = dma.vmem_to_hbm [thread:$0]  %s5500_s27, 16, %s11390_s7, [#allocation5]  }
 0x369   :  { %8199 = dma.done.wait [#allocation3], 16  }
 0x36a   :  { %8200 = vsyncadd [#allocation3], 4294967280 }
 0x36b   :  { %8201 = dma.done.wait [#allocation5], 16  }
 0x36c   :  { %8202 = vsyncadd [#allocation5], 4294967280 }
 0x36d   :  { %5511 = vsyncpa [#allocation3], 1 }
 0x36e   :  { %5512 = vsyncpa [#allocation5], 1 }

</bundles_post_ra>
